<compile_context>
chip_gen: v6e
topology: v6e:2x2x1
jax: 0.10.0
libtpu: 0.0.40
codegen_flags: <defaults>
</compile_context>

<pallas_src>
import numpy as np
import jax
import jax.numpy as jnp
from jax.experimental import pallas as pl
from jax.experimental.pallas import tpu as pltpu


# ----------------------------------------------------------------- shift matrices

def _build_shift_mats():
    """S^T matrices: patch_off = act @ S^T_off gathers the input pixels feeding each
    output pixel for kernel offset off = di*3 + dj (zeros implement conv padding)."""
    # tail0: 3x3 conv, stride 2, pad 0 : 16x16 -> 7x7
    st0 = np.zeros((9, 256, 49), np.float32)
    for di in range(3):
        for dj in range(3):
            off = di * 3 + dj
            for r in range(7):
                for c in range(7):
                    q = (2 * r + di) * 16 + (2 * c + dj)
                    st0[off, q, r * 7 + c] = 1.0
    # 3x3 conv, stride 1, pad 1 : 7x7 -> 7x7 (out-of-range source -> zero padding)
    ss1 = np.zeros((9, 49, 49), np.float32)
    for di in range(3):
        for dj in range(3):
            off = di * 3 + dj
            for r in range(7):
                for c in range(7):
                    ir, ic = r + di - 1, c + dj - 1
                    if 0 <= ir < 7 and 0 <= ic < 7:
                        ss1[off, ir * 7 + ic, r * 7 + c] = 1.0
    return st0, ss1


_SHIFT_T0, _SHIFT_S1 = _build_shift_mats()
_EPS = 1e-5


# --------------------------------------------------------------------------- kernel

def _fishnet_kernel(x_ref, st0_ref, ss1_ref,
                    w1_ref, c1b_ref, n1s_ref, n1b_ref,
                    wt0_ref, ct0b_ref, nt0s_ref, nt0b_ref,
                    wt1_ref, ct1b_ref, nt1s_ref, nt1b_ref,
                    wbt_ref, cbtb_ref, nbts_ref, nbtb_ref,
                    whd_ref, chdb_ref, nhds_ref, nhdb_ref,
                    o_ref):
    f32 = jnp.float32

    def ln_affine(y, s_ref, b_ref):
        # LayerNorm over the whole (C, P) block == (C, H, W) of one batch element.
        # Single pass: sum and sum-of-squares together, var = E[x^2] - mean^2.
        n = float(y.shape[0] * y.shape[1])
        s1 = jnp.sum(jnp.sum(y, axis=1, keepdims=True), axis=0, keepdims=True)
        s2 = jnp.sum(jnp.sum(y * y, axis=1, keepdims=True), axis=0, keepdims=True)
        mean = s1 / n
        var = s2 / n - mean * mean
        inv = jax.lax.rsqrt(var + _EPS)
        return (y - mean) * inv * s_ref[...] + b_ref[...]   # (C,1) affine broadcast

    def conv3x3_relu(a, s_ref, w_ref, b_ref):
        # a: (Cin, Pin); s_ref: (9, Pin, Pout); w_ref: (9, Cout, Cin); b_ref: (Cout, 1)
        co = w_ref.shape[1]
        p_out = s_ref.shape[2]
        acc = jnp.zeros((co, p_out), f32)
        for off in range(9):   # static unroll; both dots run on the MXU
            patch = jnp.dot(a, s_ref[off], preferred_element_type=f32)        # (Cin, Pout)
            acc = acc + jnp.dot(w_ref[off], patch, preferred_element_type=f32)  # (Cout, Pout)
        return jnp.maximum(acc + b_ref[...], 0.0)

    x = x_ref[0]                                                              # (Cin, 256)

    # conv1 (1x1) + ReLU + LN                                   -> (32, 256)
    h = jnp.dot(w1_ref[...], x, preferred_element_type=f32) + c1b_ref[...]
    y0 = ln_affine(jnp.maximum(h, 0.0), n1s_ref, n1b_ref)

    # tail0: 3x3, stride 2, pad 0                               -> (32, 49)
    y1 = ln_affine(conv3x3_relu(y0, st0_ref, wt0_ref, ct0b_ref), nt0s_ref, nt0b_ref)

    # tail1: 3x3, stride 1, pad 1                               -> (16, 49)
    y2 = ln_affine(conv3x3_relu(y1, ss1_ref, wt1_ref, ct1b_ref), nt1s_ref, nt1b_ref)

    # body-trans: stride-1 ConvTranspose == flipped-kernel conv -> (32, 49), + skip
    y3 = ln_affine(conv3x3_relu(y2, ss1_ref, wbt_ref, cbtb_ref), nbts_ref, nbtb_ref) + y1

    # head: 3x3, stride 1, pad 1                                -> (16, 49)
    y4 = ln_affine(conv3x3_relu(y3, ss1_ref, whd_ref, chdb_ref), nhds_ref, nhdb_ref)

    o_ref[0] = y4.astype(o_ref.dtype)


# -------------------------------------------------------------------------- wrapper

def _col(v):
    return jnp.asarray(v, jnp.float32).reshape(-1, 1)


def _stack9(w):
    # Conv2d weight (Cout, Cin, 3, 3) -> (9, Cout, Cin), off = di*3 + dj
    w = jnp.asarray(w, jnp.float32)
    return jnp.transpose(w, (2, 3, 0, 1)).reshape(9, w.shape[0], w.shape[1])


def _stack9_convT(w):
    # ConvTranspose2d weight (Cin, Cout, 3, 3), stride 1 / pad 1 -> equivalent conv
    # with spatially flipped kernel, in/out channels swapped (exact rewrite).
    w = jnp.asarray(w, jnp.float32)
    w_eq = jnp.transpose(jnp.flip(w, axis=(2, 3)), (1, 0, 2, 3))   # (Cout, Cin, 3, 3)
    return _stack9(w_eq)


def _fixed_spec(shape):
    zeros = (0,) * len(shape)
    return pl.BlockSpec(shape, lambda b: zeros)


def fishnet_forward(params, x):
    # x: (B, C_in, 16, 16) NCHW float32 -> (B, 16, 7, 7)
    B, C_in, H, W = x.shape
    HW = H * W
    xf = jnp.asarray(x, jnp.float32).reshape(B, C_in, HW)          # channels-major flat

    w1 = jnp.asarray(params['conv1_w'], jnp.float32)[:, :, 0, 0]   # (32, C_in)

    weight_args = [
        w1, _col(params['conv1_b']), _col(params['norm1_s']), _col(params['norm1_b']),
        _stack9(params['tail0_w']), _col(params['tail0_b']),
        _col(params['tail_norm0_s']), _col(params['tail_norm0_b']),
        _stack9(params['tail1_w']), _col(params['tail1_b']),
        _col(params['tail_norm1_s']), _col(params['tail_norm1_b']),
        _stack9_convT(params['bt0_w']), _col(params['bt0_b']),
        _col(params['bt_norm0_s']), _col(params['bt_norm0_b']),
        _stack9(params['head0_w']), _col(params['head0_b']),
        _col(params['head_norm0_s']), _col(params['head_norm0_b']),
    ]
    args = [xf, _SHIFT_T0, _SHIFT_S1] + weight_args

    in_specs = [pl.BlockSpec((1, C_in, HW), lambda b: (b, 0, 0)),
                _fixed_spec(_SHIFT_T0.shape), _fixed_spec(_SHIFT_S1.shape)]
    in_specs += [_fixed_spec(tuple(a.shape)) for a in weight_args]

    out = pl.pallas_call(
        _fishnet_kernel,
        out_shape=jax.ShapeDtypeStruct((B, 16, 49), jnp.float32),
        grid=(B,),
        in_specs=in_specs,
        out_specs=pl.BlockSpec((1, 16, 49), lambda b: (b, 0, 0)),
        compiler_params=pltpu.CompilerParams(dimension_semantics=("parallel",)),
    )(*args)
    return out.reshape(B, 16, 7, 7)
    # TODO(synk): other input_height configs (max_pool branch for >50, keep_spatial_size
    # strided ConvTranspose with output_padding) are not exercised here and not implemented.


# --------------------------------------------------------------------------- params

def init_fishnet_params(key, input_channels=4):
    ks = jax.random.split(key, 16)
    p = {}

    def w(k, shape):
        return jax.random.normal(k, shape, jnp.float32) * 0.1

    p['conv1_w'] = w(ks[0], (32, input_channels, 1, 1)); p['conv1_b'] = w(ks[1], (32,))
    p['norm1_s'] = jnp.ones((32,), jnp.float32); p['norm1_b'] = jnp.zeros((32,), jnp.float32)
    p['tail0_w'] = w(ks[2], (32, 32, 3, 3)); p['tail0_b'] = w(ks[3], (32,))
    p['tail_norm0_s'] = jnp.ones((32,), jnp.float32); p['tail_norm0_b'] = jnp.zeros((32,), jnp.float32)
    p['tail1_w'] = w(ks[4], (16, 32, 3, 3)); p['tail1_b'] = w(ks[5], (16,))
    p['tail_norm1_s'] = jnp.ones((16,), jnp.float32); p['tail_norm1_b'] = jnp.zeros((16,), jnp.float32)
    p['bt0_w'] = w(ks[6], (16, 32, 3, 3)); p['bt0_b'] = w(ks[7], (32,))        # ConvT (Cin,Cout,kh,kw)
    p['bt_norm0_s'] = jnp.ones((32,), jnp.float32); p['bt_norm0_b'] = jnp.zeros((32,), jnp.float32)
    p['head0_w'] = w(ks[8], (16, 32, 3, 3)); p['head0_b'] = w(ks[9], (16,))
    p['head_norm0_s'] = jnp.ones((16,), jnp.float32); p['head_norm0_b'] = jnp.zeros((16,), jnp.float32)
    return p


# ------------------------------------------------------------------- pure-JAX reference

def _reference_forward(params, x):
    def conv(x, w, b, stride, pad):
        y = jax.lax.conv_general_dilated(
            x, w, window_strides=(stride, stride), padding=[(pad, pad), (pad, pad)],
            dimension_numbers=('NCHW', 'OIHW', 'NCHW'))
        return jax.nn.relu(y + b.reshape(1, -1, 1, 1))

    def convT(x, w, b, pad):
        w_eq = jnp.transpose(jnp.flip(w, axis=(2, 3)), (1, 0, 2, 3))
        return conv(x, w_eq, b, 1, w.shape[2] - 1 - pad)

    def ln(x, s, b):
        m = jnp.mean(x, axis=(1, 2, 3), keepdims=True)
        v = jnp.mean((x - m) ** 2, axis=(1, 2, 3), keepdims=True)
        return (x - m) * jax.lax.rsqrt(v + _EPS) * s.reshape(1, -1, 1, 1) + b.reshape(1, -1, 1, 1)

    x = ln(conv(x, params['conv1_w'], params['conv1_b'], 1, 0), params['norm1_s'], params['norm1_b'])
    skip = ln(conv(x, params['tail0_w'], params['tail0_b'], 2, 0),
              params['tail_norm0_s'], params['tail_norm0_b'])
    x = ln(conv(skip, params['tail1_w'], params['tail1_b'], 1, 1),
           params['tail_norm1_s'], params['tail_norm1_b'])
    x = ln(convT(x, params['bt0_w'], params['bt0_b'], 1),
           params['bt_norm0_s'], params['bt_norm0_b']) + skip
    x = ln(conv(x, params['head0_w'], params['head0_b'], 1, 1),
           params['head_norm0_s'], params['head_norm0_b'])
    return x


# ----------------------------------------------------------------------------- main

if __name__ == "__main__":
    key = jax.random.PRNGKey(0)
    kx, kp = jax.random.split(key)
    B, C, H, W = 2, 4, 16, 16
    x = jax.random.normal(kx, (B, C, H, W), jnp.float32)
    params = init_fishnet_params(kp, input_channels=C)

    fwd = jax.jit(fishnet_forward)
    out = fwd(params, x)
    jax.block_until_ready(out)

    assert out.shape == (B, 16, 7, 7), out.shape
    assert bool(jnp.all(jnp.isfinite(out)))

    ref = _reference_forward(params, x)
    err = float(jnp.max(jnp.abs(out - ref)))
    assert err < 5e-2, f"mismatch vs reference: {err}"

    print("KERNEL_OK")
</pallas_src>

<mosaic_0001>
module attributes {stable_mosaic.version = 11 : i64} {
  func.func @_fishnet_kernel(%arg0: i32, %arg1: memref<1x4x256xf32, #tpu.memory_space<vmem>>, %arg2: memref<9x256x49xf32, #tpu.memory_space<vmem>>, %arg3: memref<9x49x49xf32, #tpu.memory_space<vmem>>, %arg4: memref<32x4xf32, #tpu.memory_space<vmem>>, %arg5: memref<32x1xf32, #tpu.memory_space<vmem>>, %arg6: memref<32x1xf32, #tpu.memory_space<vmem>>, %arg7: memref<32x1xf32, #tpu.memory_space<vmem>>, %arg8: memref<9x32x32xf32, #tpu.memory_space<vmem>>, %arg9: memref<32x1xf32, #tpu.memory_space<vmem>>, %arg10: memref<32x1xf32, #tpu.memory_space<vmem>>, %arg11: memref<32x1xf32, #tpu.memory_space<vmem>>, %arg12: memref<9x16x32xf32, #tpu.memory_space<vmem>>, %arg13: memref<16x1xf32, #tpu.memory_space<vmem>>, %arg14: memref<16x1xf32, #tpu.memory_space<vmem>>, %arg15: memref<16x1xf32, #tpu.memory_space<vmem>>, %arg16: memref<9x32x16xf32, #tpu.memory_space<vmem>>, %arg17: memref<32x1xf32, #tpu.memory_space<vmem>>, %arg18: memref<32x1xf32, #tpu.memory_space<vmem>>, %arg19: memref<32x1xf32, #tpu.memory_space<vmem>>, %arg20: memref<9x16x32xf32, #tpu.memory_space<vmem>>, %arg21: memref<16x1xf32, #tpu.memory_space<vmem>>, %arg22: memref<16x1xf32, #tpu.memory_space<vmem>>, %arg23: memref<16x1xf32, #tpu.memory_space<vmem>>, %arg24: memref<1x16x49xf32, #tpu.memory_space<vmem>>) attributes {dimension_semantics = [#tpu.dimension_semantics<parallel>], iteration_bounds = array<i64: 2>, scalar_prefetch = 0 : i64, scratch_operands = 0 : i64, tpu.core_type = #tpu.core_type<tc>, window_params = [{transform_indices = @transform_0, window_bounds = array<i64: 1, 4, 256>}, {pipeline_mode = #tpu.pipeline_mode<synchronous>, transform_indices = @transform_1, window_bounds = array<i64: 9, 256, 49>}, {pipeline_mode = #tpu.pipeline_mode<synchronous>, transform_indices = @transform_2, window_bounds = array<i64: 9, 49, 49>}, {pipeline_mode = #tpu.pipeline_mode<synchronous>, transform_indices = @transform_3, window_bounds = array<i64: 32, 4>}, {pipeline_mode = #tpu.pipeline_mode<synchronous>, transform_indices = @transform_4, window_bounds = array<i64: 32, 1>}, {pipeline_mode = #tpu.pipeline_mode<synchronous>, transform_indices = @transform_5, window_bounds = array<i64: 32, 1>}, {pipeline_mode = #tpu.pipeline_mode<synchronous>, transform_indices = @transform_6, window_bounds = array<i64: 32, 1>}, {pipeline_mode = #tpu.pipeline_mode<synchronous>, transform_indices = @transform_7, window_bounds = array<i64: 9, 32, 32>}, {pipeline_mode = #tpu.pipeline_mode<synchronous>, transform_indices = @transform_8, window_bounds = array<i64: 32, 1>}, {pipeline_mode = #tpu.pipeline_mode<synchronous>, transform_indices = @transform_9, window_bounds = array<i64: 32, 1>}, {pipeline_mode = #tpu.pipeline_mode<synchronous>, transform_indices = @transform_10, window_bounds = array<i64: 32, 1>}, {pipeline_mode = #tpu.pipeline_mode<synchronous>, transform_indices = @transform_11, window_bounds = array<i64: 9, 16, 32>}, {pipeline_mode = #tpu.pipeline_mode<synchronous>, transform_indices = @transform_12, window_bounds = array<i64: 16, 1>}, {pipeline_mode = #tpu.pipeline_mode<synchronous>, transform_indices = @transform_13, window_bounds = array<i64: 16, 1>}, {pipeline_mode = #tpu.pipeline_mode<synchronous>, transform_indices = @transform_14, window_bounds = array<i64: 16, 1>}, {pipeline_mode = #tpu.pipeline_mode<synchronous>, transform_indices = @transform_15, window_bounds = array<i64: 9, 32, 16>}, {pipeline_mode = #tpu.pipeline_mode<synchronous>, transform_indices = @transform_16, window_bounds = array<i64: 32, 1>}, {pipeline_mode = #tpu.pipeline_mode<synchronous>, transform_indices = @transform_17, window_bounds = array<i64: 32, 1>}, {pipeline_mode = #tpu.pipeline_mode<synchronous>, transform_indices = @transform_18, window_bounds = array<i64: 32, 1>}, {pipeline_mode = #tpu.pipeline_mode<synchronous>, transform_indices = @transform_19, window_bounds = array<i64: 9, 16, 32>}, {pipeline_mode = #tpu.pipeline_mode<synchronous>, transform_indices = @transform_20, window_bounds = array<i64: 16, 1>}, {pipeline_mode = #tpu.pipeline_mode<synchronous>, transform_indices = @transform_21, window_bounds = array<i64: 16, 1>}, {pipeline_mode = #tpu.pipeline_mode<synchronous>, transform_indices = @transform_22, window_bounds = array<i64: 16, 1>}, {transform_indices = @transform_23, window_bounds = array<i64: 1, 16, 49>}]} {
    %c0 = arith.constant 0 : index
    %c0_0 = arith.constant 0 : index
    %c0_1 = arith.constant 0 : index
    %0 = vector.load %arg1[%c0, %c0_0, %c0_1] : memref<1x4x256xf32, #tpu.memory_space<vmem>>, vector<1x4x256xf32>
    %1 = vector.shape_cast %0 : vector<1x4x256xf32> to vector<4x256xf32>
    %c0_2 = arith.constant 0 : index
    %c0_3 = arith.constant 0 : index
    %2 = vector.load %arg4[%c0_2, %c0_3] : memref<32x4xf32, #tpu.memory_space<vmem>>, vector<32x4xf32>
    %cst = arith.constant dense<0.000000e+00> : vector<32x256xf32>
    %3 = tpu.matmul %2, %1, %cst {dimension_numbers = #tpu.dot_dimension_numbers<[1], [0], [0], [1], [0, 0, 1, 1], [], []>} : vector<32x4xf32>, vector<4x256xf32>, vector<32x256xf32> -> vector<32x256xf32>
    %c0_4 = arith.constant 0 : index
    %c0_5 = arith.constant 0 : index
    %4 = vector.load %arg5[%c0_4, %c0_5] : memref<32x1xf32, #tpu.memory_space<vmem>>, vector<32x1xf32>
    %5 = vector.broadcast %4 : vector<32x1xf32> to vector<32x256xf32>
    %6 = arith.addf %3, %5 : vector<32x256xf32>
    %cst_6 = arith.constant 0.000000e+00 : f32
    %7 = vector.broadcast %cst_6 : f32 to vector<32x256xf32>
    %8 = arith.maximumf %6, %7 : vector<32x256xf32>
    %cst_7 = arith.constant dense<0.000000e+00> : vector<32xf32>
    %9 = vector.multi_reduction <add>, %8, %cst_7 [1] : vector<32x256xf32> to vector<32xf32>
    %10 = vector.shape_cast %9 : vector<32xf32> to vector<32x1xf32>
    %cst_8 = arith.constant dense<0.000000e+00> : vector<1xf32>
    %11 = vector.multi_reduction <add>, %10, %cst_8 [0] : vector<32x1xf32> to vector<1xf32>
    %12 = vector.shape_cast %11 : vector<1xf32> to vector<1x1xf32>
    %13 = arith.mulf %8, %8 : vector<32x256xf32>
    %cst_9 = arith.constant dense<0.000000e+00> : vector<32xf32>
    %14 = vector.multi_reduction <add>, %13, %cst_9 [1] : vector<32x256xf32> to vector<32xf32>
    %15 = vector.shape_cast %14 : vector<32xf32> to vector<32x1xf32>
    %cst_10 = arith.constant dense<0.000000e+00> : vector<1xf32>
    %16 = vector.multi_reduction <add>, %15, %cst_10 [0] : vector<32x1xf32> to vector<1xf32>
    %17 = vector.shape_cast %16 : vector<1xf32> to vector<1x1xf32>
    %cst_11 = arith.constant 8.192000e+03 : f32
    %18 = vector.broadcast %cst_11 : f32 to vector<1x1xf32>
    %19 = arith.divf %12, %18 : vector<1x1xf32>
    %cst_12 = arith.constant 8.192000e+03 : f32
    %20 = vector.broadcast %cst_12 : f32 to vector<1x1xf32>
    %21 = arith.divf %17, %20 : vector<1x1xf32>
    %22 = arith.mulf %19, %19 : vector<1x1xf32>
    %23 = arith.subf %21, %22 : vector<1x1xf32>
    %cst_13 = arith.constant 9.99999974E-6 : f32
    %24 = vector.broadcast %cst_13 : f32 to vector<1x1xf32>
    %25 = arith.addf %23, %24 : vector<1x1xf32>
    %26 = math.rsqrt %25 : vector<1x1xf32>
    %27 = vector.broadcast %19 : vector<1x1xf32> to vector<32x256xf32>
    %28 = arith.subf %8, %27 : vector<32x256xf32>
    %29 = vector.broadcast %26 : vector<1x1xf32> to vector<32x256xf32>
    %30 = arith.mulf %28, %29 : vector<32x256xf32>
    %c0_14 = arith.constant 0 : index
    %c0_15 = arith.constant 0 : index
    %31 = vector.load %arg6[%c0_14, %c0_15] : memref<32x1xf32, #tpu.memory_space<vmem>>, vector<32x1xf32>
    %32 = vector.broadcast %31 : vector<32x1xf32> to vector<32x256xf32>
    %33 = arith.mulf %30, %32 : vector<32x256xf32>
    %c0_16 = arith.constant 0 : index
    %c0_17 = arith.constant 0 : index
    %34 = vector.load %arg7[%c0_16, %c0_17] : memref<32x1xf32, #tpu.memory_space<vmem>>, vector<32x1xf32>
    %35 = vector.broadcast %34 : vector<32x1xf32> to vector<32x256xf32>
    %36 = arith.addf %33, %35 : vector<32x256xf32>
    %cst_18 = arith.constant 0.000000e+00 : f32
    %37 = vector.broadcast %cst_18 : f32 to vector<32x49xf32>
    %c0_19 = arith.constant 0 : index
    %c0_20 = arith.constant 0 : index
    %c0_21 = arith.constant 0 : index
    %38 = vector.load %arg2[%c0_19, %c0_20, %c0_21] : memref<9x256x49xf32, #tpu.memory_space<vmem>>, vector<1x256x49xf32>
    %39 = vector.shape_cast %38 : vector<1x256x49xf32> to vector<256x49xf32>
    %cst_22 = arith.constant dense<0.000000e+00> : vector<32x49xf32>
    %40 = tpu.matmul %36, %39, %cst_22 {dimension_numbers = #tpu.dot_dimension_numbers<[1], [0], [0], [1], [0, 0, 1, 1], [], []>} : vector<32x256xf32>, vector<256x49xf32>, vector<32x49xf32> -> vector<32x49xf32>
    %c0_23 = arith.constant 0 : index
    %c0_24 = arith.constant 0 : index
    %c0_25 = arith.constant 0 : index
    %41 = vector.load %arg8[%c0_23, %c0_24, %c0_25] : memref<9x32x32xf32, #tpu.memory_space<vmem>>, vector<1x32x32xf32>
    %42 = vector.shape_cast %41 : vector<1x32x32xf32> to vector<32x32xf32>
    %cst_26 = arith.constant dense<0.000000e+00> : vector<32x49xf32>
    %43 = tpu.matmul %42, %40, %cst_26 {dimension_numbers = #tpu.dot_dimension_numbers<[1], [0], [0], [1], [0, 0, 1, 1], [], []>} : vector<32x32xf32>, vector<32x49xf32>, vector<32x49xf32> -> vector<32x49xf32>
    %44 = arith.addf %37, %43 : vector<32x49xf32>
    %c1 = arith.constant 1 : index
    %c0_27 = arith.constant 0 : index
    %c0_28 = arith.constant 0 : index
    %45 = vector.load %arg2[%c1, %c0_27, %c0_28] : memref<9x256x49xf32, #tpu.memory_space<vmem>>, vector<1x256x49xf32>
    %46 = vector.shape_cast %45 : vector<1x256x49xf32> to vector<256x49xf32>
    %cst_29 = arith.constant dense<0.000000e+00> : vector<32x49xf32>
    %47 = tpu.matmul %36, %46, %cst_29 {dimension_numbers = #tpu.dot_dimension_numbers<[1], [0], [0], [1], [0, 0, 1, 1], [], []>} : vector<32x256xf32>, vector<256x49xf32>, vector<32x49xf32> -> vector<32x49xf32>
    %c1_30 = arith.constant 1 : index
    %c0_31 = arith.constant 0 : index
    %c0_32 = arith.constant 0 : index
    %48 = vector.load %arg8[%c1_30, %c0_31, %c0_32] : memref<9x32x32xf32, #tpu.memory_space<vmem>>, vector<1x32x32xf32>
    %49 = vector.shape_cast %48 : vector<1x32x32xf32> to vector<32x32xf32>
    %cst_33 = arith.constant dense<0.000000e+00> : vector<32x49xf32>
    %50 = tpu.matmul %49, %47, %cst_33 {dimension_numbers = #tpu.dot_dimension_numbers<[1], [0], [0], [1], [0, 0, 1, 1], [], []>} : vector<32x32xf32>, vector<32x49xf32>, vector<32x49xf32> -> vector<32x49xf32>
    %51 = arith.addf %44, %50 : vector<32x49xf32>
    %c2 = arith.constant 2 : index
    %c0_34 = arith.constant 0 : index
    %c0_35 = arith.constant 0 : index
    %52 = vector.load %arg2[%c2, %c0_34, %c0_35] : memref<9x256x49xf32, #tpu.memory_space<vmem>>, vector<1x256x49xf32>
    %53 = vector.shape_cast %52 : vector<1x256x49xf32> to vector<256x49xf32>
    %cst_36 = arith.constant dense<0.000000e+00> : vector<32x49xf32>
    %54 = tpu.matmul %36, %53, %cst_36 {dimension_numbers = #tpu.dot_dimension_numbers<[1], [0], [0], [1], [0, 0, 1, 1], [], []>} : vector<32x256xf32>, vector<256x49xf32>, vector<32x49xf32> -> vector<32x49xf32>
    %c2_37 = arith.constant 2 : index
    %c0_38 = arith.constant 0 : index
    %c0_39 = arith.constant 0 : index
    %55 = vector.load %arg8[%c2_37, %c0_38, %c0_39] : memref<9x32x32xf32, #tpu.memory_space<vmem>>, vector<1x32x32xf32>
    %56 = vector.shape_cast %55 : vector<1x32x32xf32> to vector<32x32xf32>
    %cst_40 = arith.constant dense<0.000000e+00> : vector<32x49xf32>
    %57 = tpu.matmul %56, %54, %cst_40 {dimension_numbers = #tpu.dot_dimension_numbers<[1], [0], [0], [1], [0, 0, 1, 1], [], []>} : vector<32x32xf32>, vector<32x49xf32>, vector<32x49xf32> -> vector<32x49xf32>
    %58 = arith.addf %51, %57 : vector<32x49xf32>
    %c3 = arith.constant 3 : index
    %c0_41 = arith.constant 0 : index
    %c0_42 = arith.constant 0 : index
    %59 = vector.load %arg2[%c3, %c0_41, %c0_42] : memref<9x256x49xf32, #tpu.memory_space<vmem>>, vector<1x256x49xf32>
    %60 = vector.shape_cast %59 : vector<1x256x49xf32> to vector<256x49xf32>
    %cst_43 = arith.constant dense<0.000000e+00> : vector<32x49xf32>
    %61 = tpu.matmul %36, %60, %cst_43 {dimension_numbers = #tpu.dot_dimension_numbers<[1], [0], [0], [1], [0, 0, 1, 1], [], []>} : vector<32x256xf32>, vector<256x49xf32>, vector<32x49xf32> -> vector<32x49xf32>
    %c3_44 = arith.constant 3 : index
    %c0_45 = arith.constant 0 : index
    %c0_46 = arith.constant 0 : index
    %62 = vector.load %arg8[%c3_44, %c0_45, %c0_46] : memref<9x32x32xf32, #tpu.memory_space<vmem>>, vector<1x32x32xf32>
    %63 = vector.shape_cast %62 : vector<1x32x32xf32> to vector<32x32xf32>
    %cst_47 = arith.constant dense<0.000000e+00> : vector<32x49xf32>
    %64 = tpu.matmul %63, %61, %cst_47 {dimension_numbers = #tpu.dot_dimension_numbers<[1], [0], [0], [1], [0, 0, 1, 1], [], []>} : vector<32x32xf32>, vector<32x49xf32>, vector<32x49xf32> -> vector<32x49xf32>
    %65 = arith.addf %58, %64 : vector<32x49xf32>
    %c4 = arith.constant 4 : index
    %c0_48 = arith.constant 0 : index
    %c0_49 = arith.constant 0 : index
    %66 = vector.load %arg2[%c4, %c0_48, %c0_49] : memref<9x256x49xf32, #tpu.memory_space<vmem>>, vector<1x256x49xf32>
    %67 = vector.shape_cast %66 : vector<1x256x49xf32> to vector<256x49xf32>
    %cst_50 = arith.constant dense<0.000000e+00> : vector<32x49xf32>
    %68 = tpu.matmul %36, %67, %cst_50 {dimension_numbers = #tpu.dot_dimension_numbers<[1], [0], [0], [1], [0, 0, 1, 1], [], []>} : vector<32x256xf32>, vector<256x49xf32>, vector<32x49xf32> -> vector<32x49xf32>
    %c4_51 = arith.constant 4 : index
    %c0_52 = arith.constant 0 : index
    %c0_53 = arith.constant 0 : index
    %69 = vector.load %arg8[%c4_51, %c0_52, %c0_53] : memref<9x32x32xf32, #tpu.memory_space<vmem>>, vector<1x32x32xf32>
    %70 = vector.shape_cast %69 : vector<1x32x32xf32> to vector<32x32xf32>
    %cst_54 = arith.constant dense<0.000000e+00> : vector<32x49xf32>
    %71 = tpu.matmul %70, %68, %cst_54 {dimension_numbers = #tpu.dot_dimension_numbers<[1], [0], [0], [1], [0, 0, 1, 1], [], []>} : vector<32x32xf32>, vector<32x49xf32>, vector<32x49xf32> -> vector<32x49xf32>
    %72 = arith.addf %65, %71 : vector<32x49xf32>
    %c5 = arith.constant 5 : index
    %c0_55 = arith.constant 0 : index
    %c0_56 = arith.constant 0 : index
    %73 = vector.load %arg2[%c5, %c0_55, %c0_56] : memref<9x256x49xf32, #tpu.memory_space<vmem>>, vector<1x256x49xf32>
    %74 = vector.shape_cast %73 : vector<1x256x49xf32> to vector<256x49xf32>
    %cst_57 = arith.constant dense<0.000000e+00> : vector<32x49xf32>
    %75 = tpu.matmul %36, %74, %cst_57 {dimension_numbers = #tpu.dot_dimension_numbers<[1], [0], [0], [1], [0, 0, 1, 1], [], []>} : vector<32x256xf32>, vector<256x49xf32>, vector<32x49xf32> -> vector<32x49xf32>
    %c5_58 = arith.constant 5 : index
    %c0_59 = arith.constant 0 : index
    %c0_60 = arith.constant 0 : index
    %76 = vector.load %arg8[%c5_58, %c0_59, %c0_60] : memref<9x32x32xf32, #tpu.memory_space<vmem>>, vector<1x32x32xf32>
    %77 = vector.shape_cast %76 : vector<1x32x32xf32> to vector<32x32xf32>
    %cst_61 = arith.constant dense<0.000000e+00> : vector<32x49xf32>
    %78 = tpu.matmul %77, %75, %cst_61 {dimension_numbers = #tpu.dot_dimension_numbers<[1], [0], [0], [1], [0, 0, 1, 1], [], []>} : vector<32x32xf32>, vector<32x49xf32>, vector<32x49xf32> -> vector<32x49xf32>
    %79 = arith.addf %72, %78 : vector<32x49xf32>
    %c6 = arith.constant 6 : index
    %c0_62 = arith.constant 0 : index
    %c0_63 = arith.constant 0 : index
    %80 = vector.load %arg2[%c6, %c0_62, %c0_63] : memref<9x256x49xf32, #tpu.memory_space<vmem>>, vector<1x256x49xf32>
    %81 = vector.shape_cast %80 : vector<1x256x49xf32> to vector<256x49xf32>
    %cst_64 = arith.constant dense<0.000000e+00> : vector<32x49xf32>
    %82 = tpu.matmul %36, %81, %cst_64 {dimension_numbers = #tpu.dot_dimension_numbers<[1], [0], [0], [1], [0, 0, 1, 1], [], []>} : vector<32x256xf32>, vector<256x49xf32>, vector<32x49xf32> -> vector<32x49xf32>
    %c6_65 = arith.constant 6 : index
    %c0_66 = arith.constant 0 : index
    %c0_67 = arith.constant 0 : index
    %83 = vector.load %arg8[%c6_65, %c0_66, %c0_67] : memref<9x32x32xf32, #tpu.memory_space<vmem>>, vector<1x32x32xf32>
    %84 = vector.shape_cast %83 : vector<1x32x32xf32> to vector<32x32xf32>
    %cst_68 = arith.constant dense<0.000000e+00> : vector<32x49xf32>
    %85 = tpu.matmul %84, %82, %cst_68 {dimension_numbers = #tpu.dot_dimension_numbers<[1], [0], [0], [1], [0, 0, 1, 1], [], []>} : vector<32x32xf32>, vector<32x49xf32>, vector<32x49xf32> -> vector<32x49xf32>
    %86 = arith.addf %79, %85 : vector<32x49xf32>
    %c7 = arith.constant 7 : index
    %c0_69 = arith.constant 0 : index
    %c0_70 = arith.constant 0 : index
    %87 = vector.load %arg2[%c7, %c0_69, %c0_70] : memref<9x256x49xf32, #tpu.memory_space<vmem>>, vector<1x256x49xf32>
    %88 = vector.shape_cast %87 : vector<1x256x49xf32> to vector<256x49xf32>
    %cst_71 = arith.constant dense<0.000000e+00> : vector<32x49xf32>
    %89 = tpu.matmul %36, %88, %cst_71 {dimension_numbers = #tpu.dot_dimension_numbers<[1], [0], [0], [1], [0, 0, 1, 1], [], []>} : vector<32x256xf32>, vector<256x49xf32>, vector<32x49xf32> -> vector<32x49xf32>
    %c7_72 = arith.constant 7 : index
    %c0_73 = arith.constant 0 : index
    %c0_74 = arith.constant 0 : index
    %90 = vector.load %arg8[%c7_72, %c0_73, %c0_74] : memref<9x32x32xf32, #tpu.memory_space<vmem>>, vector<1x32x32xf32>
    %91 = vector.shape_cast %90 : vector<1x32x32xf32> to vector<32x32xf32>
    %cst_75 = arith.constant dense<0.000000e+00> : vector<32x49xf32>
    %92 = tpu.matmul %91, %89, %cst_75 {dimension_numbers = #tpu.dot_dimension_numbers<[1], [0], [0], [1], [0, 0, 1, 1], [], []>} : vector<32x32xf32>, vector<32x49xf32>, vector<32x49xf32> -> vector<32x49xf32>
    %93 = arith.addf %86, %92 : vector<32x49xf32>
    %c8 = arith.constant 8 : index
    %c0_76 = arith.constant 0 : index
    %c0_77 = arith.constant 0 : index
    %94 = vector.load %arg2[%c8, %c0_76, %c0_77] : memref<9x256x49xf32, #tpu.memory_space<vmem>>, vector<1x256x49xf32>
    %95 = vector.shape_cast %94 : vector<1x256x49xf32> to vector<256x49xf32>
    %cst_78 = arith.constant dense<0.000000e+00> : vector<32x49xf32>
    %96 = tpu.matmul %36, %95, %cst_78 {dimension_numbers = #tpu.dot_dimension_numbers<[1], [0], [0], [1], [0, 0, 1, 1], [], []>} : vector<32x256xf32>, vector<256x49xf32>, vector<32x49xf32> -> vector<32x49xf32>
    %c8_79 = arith.constant 8 : index
    %c0_80 = arith.constant 0 : index
    %c0_81 = arith.constant 0 : index
    %97 = vector.load %arg8[%c8_79, %c0_80, %c0_81] : memref<9x32x32xf32, #tpu.memory_space<vmem>>, vector<1x32x32xf32>
    %98 = vector.shape_cast %97 : vector<1x32x32xf32> to vector<32x32xf32>
    %cst_82 = arith.constant dense<0.000000e+00> : vector<32x49xf32>
    %99 = tpu.matmul %98, %96, %cst_82 {dimension_numbers = #tpu.dot_dimension_numbers<[1], [0], [0], [1], [0, 0, 1, 1], [], []>} : vector<32x32xf32>, vector<32x49xf32>, vector<32x49xf32> -> vector<32x49xf32>
    %100 = arith.addf %93, %99 : vector<32x49xf32>
    %c0_83 = arith.constant 0 : index
    %c0_84 = arith.constant 0 : index
    %101 = vector.load %arg9[%c0_83, %c0_84] : memref<32x1xf32, #tpu.memory_space<vmem>>, vector<32x1xf32>
    %102 = vector.broadcast %101 : vector<32x1xf32> to vector<32x49xf32>
    %103 = arith.addf %100, %102 : vector<32x49xf32>
    %cst_85 = arith.constant 0.000000e+00 : f32
    %104 = vector.broadcast %cst_85 : f32 to vector<32x49xf32>
    %105 = arith.maximumf %103, %104 : vector<32x49xf32>
    %cst_86 = arith.constant dense<0.000000e+00> : vector<32xf32>
    %106 = vector.multi_reduction <add>, %105, %cst_86 [1] : vector<32x49xf32> to vector<32xf32>
    %107 = vector.shape_cast %106 : vector<32xf32> to vector<32x1xf32>
    %cst_87 = arith.constant dense<0.000000e+00> : vector<1xf32>
    %108 = vector.multi_reduction <add>, %107, %cst_87 [0] : vector<32x1xf32> to vector<1xf32>
    %109 = vector.shape_cast %108 : vector<1xf32> to vector<1x1xf32>
    %110 = arith.mulf %105, %105 : vector<32x49xf32>
    %cst_88 = arith.constant dense<0.000000e+00> : vector<32xf32>
    %111 = vector.multi_reduction <add>, %110, %cst_88 [1] : vector<32x49xf32> to vector<32xf32>
    %112 = vector.shape_cast %111 : vector<32xf32> to vector<32x1xf32>
    %cst_89 = arith.constant dense<0.000000e+00> : vector<1xf32>
    %113 = vector.multi_reduction <add>, %112, %cst_89 [0] : vector<32x1xf32> to vector<1xf32>
    %114 = vector.shape_cast %113 : vector<1xf32> to vector<1x1xf32>
    %cst_90 = arith.constant 1.568000e+03 : f32
    %115 = vector.broadcast %cst_90 : f32 to vector<1x1xf32>
    %116 = arith.divf %109, %115 : vector<1x1xf32>
    %cst_91 = arith.constant 1.568000e+03 : f32
    %117 = vector.broadcast %cst_91 : f32 to vector<1x1xf32>
    %118 = arith.divf %114, %117 : vector<1x1xf32>
    %119 = arith.mulf %116, %116 : vector<1x1xf32>
    %120 = arith.subf %118, %119 : vector<1x1xf32>
    %cst_92 = arith.constant 9.99999974E-6 : f32
    %121 = vector.broadcast %cst_92 : f32 to vector<1x1xf32>
    %122 = arith.addf %120, %121 : vector<1x1xf32>
    %123 = math.rsqrt %122 : vector<1x1xf32>
    %124 = vector.broadcast %116 : vector<1x1xf32> to vector<32x49xf32>
    %125 = arith.subf %105, %124 : vector<32x49xf32>
    %126 = vector.broadcast %123 : vector<1x1xf32> to vector<32x49xf32>
    %127 = arith.mulf %125, %126 : vector<32x49xf32>
    %c0_93 = arith.constant 0 : index
    %c0_94 = arith.constant 0 : index
    %128 = vector.load %arg10[%c0_93, %c0_94] : memref<32x1xf32, #tpu.memory_space<vmem>>, vector<32x1xf32>
    %129 = vector.broadcast %128 : vector<32x1xf32> to vector<32x49xf32>
    %130 = arith.mulf %127, %129 : vector<32x49xf32>
    %c0_95 = arith.constant 0 : index
    %c0_96 = arith.constant 0 : index
    %131 = vector.load %arg11[%c0_95, %c0_96] : memref<32x1xf32, #tpu.memory_space<vmem>>, vector<32x1xf32>
    %132 = vector.broadcast %131 : vector<32x1xf32> to vector<32x49xf32>
    %133 = arith.addf %130, %132 : vector<32x49xf32>
    %cst_97 = arith.constant 0.000000e+00 : f32
    %134 = vector.broadcast %cst_97 : f32 to vector<16x49xf32>
    %c0_98 = arith.constant 0 : index
    %c0_99 = arith.constant 0 : index
    %c0_100 = arith.constant 0 : index
    %135 = vector.load %arg3[%c0_98, %c0_99, %c0_100] : memref<9x49x49xf32, #tpu.memory_space<vmem>>, vector<1x49x49xf32>
    %136 = vector.shape_cast %135 : vector<1x49x49xf32> to vector<49x49xf32>
    %cst_101 = arith.constant dense<0.000000e+00> : vector<32x49xf32>
    %137 = tpu.matmul %133, %136, %cst_101 {dimension_numbers = #tpu.dot_dimension_numbers<[1], [0], [0], [1], [0, 0, 1, 1], [], []>} : vector<32x49xf32>, vector<49x49xf32>, vector<32x49xf32> -> vector<32x49xf32>
    %c0_102 = arith.constant 0 : index
    %c0_103 = arith.constant 0 : index
    %c0_104 = arith.constant 0 : index
    %138 = vector.load %arg12[%c0_102, %c0_103, %c0_104] : memref<9x16x32xf32, #tpu.memory_space<vmem>>, vector<1x16x32xf32>
    %139 = vector.shape_cast %138 : vector<1x16x32xf32> to vector<16x32xf32>
    %cst_105 = arith.constant dense<0.000000e+00> : vector<16x49xf32>
    %140 = tpu.matmul %139, %137, %cst_105 {dimension_numbers = #tpu.dot_dimension_numbers<[1], [0], [0], [1], [0, 0, 1, 1], [], []>} : vector<16x32xf32>, vector<32x49xf32>, vector<16x49xf32> -> vector<16x49xf32>
    %141 = arith.addf %134, %140 : vector<16x49xf32>
    %c1_106 = arith.constant 1 : index
    %c0_107 = arith.constant 0 : index
    %c0_108 = arith.constant 0 : index
    %142 = vector.load %arg3[%c1_106, %c0_107, %c0_108] : memref<9x49x49xf32, #tpu.memory_space<vmem>>, vector<1x49x49xf32>
    %143 = vector.shape_cast %142 : vector<1x49x49xf32> to vector<49x49xf32>
    %cst_109 = arith.constant dense<0.000000e+00> : vector<32x49xf32>
    %144 = tpu.matmul %133, %143, %cst_109 {dimension_numbers = #tpu.dot_dimension_numbers<[1], [0], [0], [1], [0, 0, 1, 1], [], []>} : vector<32x49xf32>, vector<49x49xf32>, vector<32x49xf32> -> vector<32x49xf32>
    %c1_110 = arith.constant 1 : index
    %c0_111 = arith.constant 0 : index
    %c0_112 = arith.constant 0 : index
    %145 = vector.load %arg12[%c1_110, %c0_111, %c0_112] : memref<9x16x32xf32, #tpu.memory_space<vmem>>, vector<1x16x32xf32>
    %146 = vector.shape_cast %145 : vector<1x16x32xf32> to vector<16x32xf32>
    %cst_113 = arith.constant dense<0.000000e+00> : vector<16x49xf32>
    %147 = tpu.matmul %146, %144, %cst_113 {dimension_numbers = #tpu.dot_dimension_numbers<[1], [0], [0], [1], [0, 0, 1, 1], [], []>} : vector<16x32xf32>, vector<32x49xf32>, vector<16x49xf32> -> vector<16x49xf32>
    %148 = arith.addf %141, %147 : vector<16x49xf32>
    %c2_114 = arith.constant 2 : index
    %c0_115 = arith.constant 0 : index
    %c0_116 = arith.constant 0 : index
    %149 = vector.load %arg3[%c2_114, %c0_115, %c0_116] : memref<9x49x49xf32, #tpu.memory_space<vmem>>, vector<1x49x49xf32>
    %150 = vector.shape_cast %149 : vector<1x49x49xf32> to vector<49x49xf32>
    %cst_117 = arith.constant dense<0.000000e+00> : vector<32x49xf32>
    %151 = tpu.matmul %133, %150, %cst_117 {dimension_numbers = #tpu.dot_dimension_numbers<[1], [0], [0], [1], [0, 0, 1, 1], [], []>} : vector<32x49xf32>, vector<49x49xf32>, vector<32x49xf32> -> vector<32x49xf32>
    %c2_118 = arith.constant 2 : index
    %c0_119 = arith.constant 0 : index
    %c0_120 = arith.constant 0 : index
    %152 = vector.load %arg12[%c2_118, %c0_119, %c0_120] : memref<9x16x32xf32, #tpu.memory_space<vmem>>, vector<1x16x32xf32>
    %153 = vector.shape_cast %152 : vector<1x16x32xf32> to vector<16x32xf32>
    %cst_121 = arith.constant dense<0.000000e+00> : vector<16x49xf32>
    %154 = tpu.matmul %153, %151, %cst_121 {dimension_numbers = #tpu.dot_dimension_numbers<[1], [0], [0], [1], [0, 0, 1, 1], [], []>} : vector<16x32xf32>, vector<32x49xf32>, vector<16x49xf32> -> vector<16x49xf32>
    %155 = arith.addf %148, %154 : vector<16x49xf32>
    %c3_122 = arith.constant 3 : index
    %c0_123 = arith.constant 0 : index
    %c0_124 = arith.constant 0 : index
    %156 = vector.load %arg3[%c3_122, %c0_123, %c0_124] : memref<9x49x49xf32, #tpu.memory_space<vmem>>, vector<1x49x49xf32>
    %157 = vector.shape_cast %156 : vector<1x49x49xf32> to vector<49x49xf32>
    %cst_125 = arith.constant dense<0.000000e+00> : vector<32x49xf32>
    %158 = tpu.matmul %133, %157, %cst_125 {dimension_numbers = #tpu.dot_dimension_numbers<[1], [0], [0], [1], [0, 0, 1, 1], [], []>} : vector<32x49xf32>, vector<49x49xf32>, vector<32x49xf32> -> vector<32x49xf32>
    %c3_126 = arith.constant 3 : index
    %c0_127 = arith.constant 0 : index
    %c0_128 = arith.constant 0 : index
    %159 = vector.load %arg12[%c3_126, %c0_127, %c0_128] : memref<9x16x32xf32, #tpu.memory_space<vmem>>, vector<1x16x32xf32>
    %160 = vector.shape_cast %159 : vector<1x16x32xf32> to vector<16x32xf32>
    %cst_129 = arith.constant dense<0.000000e+00> : vector<16x49xf32>
    %161 = tpu.matmul %160, %158, %cst_129 {dimension_numbers = #tpu.dot_dimension_numbers<[1], [0], [0], [1], [0, 0, 1, 1], [], []>} : vector<16x32xf32>, vector<32x49xf32>, vector<16x49xf32> -> vector<16x49xf32>
    %162 = arith.addf %155, %161 : vector<16x49xf32>
    %c4_130 = arith.constant 4 : index
    %c0_131 = arith.constant 0 : index
    %c0_132 = arith.constant 0 : index
    %163 = vector.load %arg3[%c4_130, %c0_131, %c0_132] : memref<9x49x49xf32, #tpu.memory_space<vmem>>, vector<1x49x49xf32>
    %164 = vector.shape_cast %163 : vector<1x49x49xf32> to vector<49x49xf32>
    %cst_133 = arith.constant dense<0.000000e+00> : vector<32x49xf32>
    %165 = tpu.matmul %133, %164, %cst_133 {dimension_numbers = #tpu.dot_dimension_numbers<[1], [0], [0], [1], [0, 0, 1, 1], [], []>} : vector<32x49xf32>, vector<49x49xf32>, vector<32x49xf32> -> vector<32x49xf32>
    %c4_134 = arith.constant 4 : index
    %c0_135 = arith.constant 0 : index
    %c0_136 = arith.constant 0 : index
    %166 = vector.load %arg12[%c4_134, %c0_135, %c0_136] : memref<9x16x32xf32, #tpu.memory_space<vmem>>, vector<1x16x32xf32>
    %167 = vector.shape_cast %166 : vector<1x16x32xf32> to vector<16x32xf32>
    %cst_137 = arith.constant dense<0.000000e+00> : vector<16x49xf32>
    %168 = tpu.matmul %167, %165, %cst_137 {dimension_numbers = #tpu.dot_dimension_numbers<[1], [0], [0], [1], [0, 0, 1, 1], [], []>} : vector<16x32xf32>, vector<32x49xf32>, vector<16x49xf32> -> vector<16x49xf32>
    %169 = arith.addf %162, %168 : vector<16x49xf32>
    %c5_138 = arith.constant 5 : index
    %c0_139 = arith.constant 0 : index
    %c0_140 = arith.constant 0 : index
    %170 = vector.load %arg3[%c5_138, %c0_139, %c0_140] : memref<9x49x49xf32, #tpu.memory_space<vmem>>, vector<1x49x49xf32>
    %171 = vector.shape_cast %170 : vector<1x49x49xf32> to vector<49x49xf32>
    %cst_141 = arith.constant dense<0.000000e+00> : vector<32x49xf32>
    %172 = tpu.matmul %133, %171, %cst_141 {dimension_numbers = #tpu.dot_dimension_numbers<[1], [0], [0], [1], [0, 0, 1, 1], [], []>} : vector<32x49xf32>, vector<49x49xf32>, vector<32x49xf32> -> vector<32x49xf32>
    %c5_142 = arith.constant 5 : index
    %c0_143 = arith.constant 0 : index
    %c0_144 = arith.constant 0 : index
    %173 = vector.load %arg12[%c5_142, %c0_143, %c0_144] : memref<9x16x32xf32, #tpu.memory_space<vmem>>, vector<1x16x32xf32>
    %174 = vector.shape_cast %173 : vector<1x16x32xf32> to vector<16x32xf32>
    %cst_145 = arith.constant dense<0.000000e+00> : vector<16x49xf32>
    %175 = tpu.matmul %174, %172, %cst_145 {dimension_numbers = #tpu.dot_dimension_numbers<[1], [0], [0], [1], [0, 0, 1, 1], [], []>} : vector<16x32xf32>, vector<32x49xf32>, vector<16x49xf32> -> vector<16x49xf32>
    %176 = arith.addf %169, %175 : vector<16x49xf32>
    %c6_146 = arith.constant 6 : index
    %c0_147 = arith.constant 0 : index
    %c0_148 = arith.constant 0 : index
    %177 = vector.load %arg3[%c6_146, %c0_147, %c0_148] : memref<9x49x49xf32, #tpu.memory_space<vmem>>, vector<1x49x49xf32>
    %178 = vector.shape_cast %177 : vector<1x49x49xf32> to vector<49x49xf32>
    %cst_149 = arith.constant dense<0.000000e+00> : vector<32x49xf32>
    %179 = tpu.matmul %133, %178, %cst_149 {dimension_numbers = #tpu.dot_dimension_numbers<[1], [0], [0], [1], [0, 0, 1, 1], [], []>} : vector<32x49xf32>, vector<49x49xf32>, vector<32x49xf32> -> vector<32x49xf32>
    %c6_150 = arith.constant 6 : index
    %c0_151 = arith.constant 0 : index
    %c0_152 = arith.constant 0 : index
    %180 = vector.load %arg12[%c6_150, %c0_151, %c0_152] : memref<9x16x32xf32, #tpu.memory_space<vmem>>, vector<1x16x32xf32>
    %181 = vector.shape_cast %180 : vector<1x16x32xf32> to vector<16x32xf32>
    %cst_153 = arith.constant dense<0.000000e+00> : vector<16x49xf32>
    %182 = tpu.matmul %181, %179, %cst_153 {dimension_numbers = #tpu.dot_dimension_numbers<[1], [0], [0], [1], [0, 0, 1, 1], [], []>} : vector<16x32xf32>, vector<32x49xf32>, vector<16x49xf32> -> vector<16x49xf32>
    %183 = arith.addf %176, %182 : vector<16x49xf32>
    %c7_154 = arith.constant 7 : index
    %c0_155 = arith.constant 0 : index
    %c0_156 = arith.constant 0 : index
    %184 = vector.load %arg3[%c7_154, %c0_155, %c0_156] : memref<9x49x49xf32, #tpu.memory_space<vmem>>, vector<1x49x49xf32>
    %185 = vector.shape_cast %184 : vector<1x49x49xf32> to vector<49x49xf32>
    %cst_157 = arith.constant dense<0.000000e+00> : vector<32x49xf32>
    %186 = tpu.matmul %133, %185, %cst_157 {dimension_numbers = #tpu.dot_dimension_numbers<[1], [0], [0], [1], [0, 0, 1, 1], [], []>} : vector<32x49xf32>, vector<49x49xf32>, vector<32x49xf32> -> vector<32x49xf32>
    %c7_158 = arith.constant 7 : index
    %c0_159 = arith.constant 0 : index
    %c0_160 = arith.constant 0 : index
    %187 = vector.load %arg12[%c7_158, %c0_159, %c0_160] : memref<9x16x32xf32, #tpu.memory_space<vmem>>, vector<1x16x32xf32>
    %188 = vector.shape_cast %187 : vector<1x16x32xf32> to vector<16x32xf32>
    %cst_161 = arith.constant dense<0.000000e+00> : vector<16x49xf32>
    %189 = tpu.matmul %188, %186, %cst_161 {dimension_numbers = #tpu.dot_dimension_numbers<[1], [0], [0], [1], [0, 0, 1, 1], [], []>} : vector<16x32xf32>, vector<32x49xf32>, vector<16x49xf32> -> vector<16x49xf32>
    %190 = arith.addf %183, %189 : vector<16x49xf32>
    %c8_162 = arith.constant 8 : index
    %c0_163 = arith.constant 0 : index
    %c0_164 = arith.constant 0 : index
    %191 = vector.load %arg3[%c8_162, %c0_163, %c0_164] : memref<9x49x49xf32, #tpu.memory_space<vmem>>, vector<1x49x49xf32>
    %192 = vector.shape_cast %191 : vector<1x49x49xf32> to vector<49x49xf32>
    %cst_165 = arith.constant dense<0.000000e+00> : vector<32x49xf32>
    %193 = tpu.matmul %133, %192, %cst_165 {dimension_numbers = #tpu.dot_dimension_numbers<[1], [0], [0], [1], [0, 0, 1, 1], [], []>} : vector<32x49xf32>, vector<49x49xf32>, vector<32x49xf32> -> vector<32x49xf32>
    %c8_166 = arith.constant 8 : index
    %c0_167 = arith.constant 0 : index
    %c0_168 = arith.constant 0 : index
    %194 = vector.load %arg12[%c8_166, %c0_167, %c0_168] : memref<9x16x32xf32, #tpu.memory_space<vmem>>, vector<1x16x32xf32>
    %195 = vector.shape_cast %194 : vector<1x16x32xf32> to vector<16x32xf32>
    %cst_169 = arith.constant dense<0.000000e+00> : vector<16x49xf32>
    %196 = tpu.matmul %195, %193, %cst_169 {dimension_numbers = #tpu.dot_dimension_numbers<[1], [0], [0], [1], [0, 0, 1, 1], [], []>} : vector<16x32xf32>, vector<32x49xf32>, vector<16x49xf32> -> vector<16x49xf32>
    %197 = arith.addf %190, %196 : vector<16x49xf32>
    %c0_170 = arith.constant 0 : index
    %c0_171 = arith.constant 0 : index
    %198 = vector.load %arg13[%c0_170, %c0_171] : memref<16x1xf32, #tpu.memory_space<vmem>>, vector<16x1xf32>
    %199 = vector.broadcast %198 : vector<16x1xf32> to vector<16x49xf32>
    %200 = arith.addf %197, %199 : vector<16x49xf32>
    %cst_172 = arith.constant 0.000000e+00 : f32
    %201 = vector.broadcast %cst_172 : f32 to vector<16x49xf32>
    %202 = arith.maximumf %200, %201 : vector<16x49xf32>
    %cst_173 = arith.constant dense<0.000000e+00> : vector<16xf32>
    %203 = vector.multi_reduction <add>, %202, %cst_173 [1] : vector<16x49xf32> to vector<16xf32>
    %204 = vector.shape_cast %203 : vector<16xf32> to vector<16x1xf32>
    %cst_174 = arith.constant dense<0.000000e+00> : vector<1xf32>
    %205 = vector.multi_reduction <add>, %204, %cst_174 [0] : vector<16x1xf32> to vector<1xf32>
    %206 = vector.shape_cast %205 : vector<1xf32> to vector<1x1xf32>
    %207 = arith.mulf %202, %202 : vector<16x49xf32>
    %cst_175 = arith.constant dense<0.000000e+00> : vector<16xf32>
    %208 = vector.multi_reduction <add>, %207, %cst_175 [1] : vector<16x49xf32> to vector<16xf32>
    %209 = vector.shape_cast %208 : vector<16xf32> to vector<16x1xf32>
    %cst_176 = arith.constant dense<0.000000e+00> : vector<1xf32>
    %210 = vector.multi_reduction <add>, %209, %cst_176 [0] : vector<16x1xf32> to vector<1xf32>
    %211 = vector.shape_cast %210 : vector<1xf32> to vector<1x1xf32>
    %cst_177 = arith.constant 7.840000e+02 : f32
    %212 = vector.broadcast %cst_177 : f32 to vector<1x1xf32>
    %213 = arith.divf %206, %212 : vector<1x1xf32>
    %cst_178 = arith.constant 7.840000e+02 : f32
    %214 = vector.broadcast %cst_178 : f32 to vector<1x1xf32>
    %215 = arith.divf %211, %214 : vector<1x1xf32>
    %216 = arith.mulf %213, %213 : vector<1x1xf32>
    %217 = arith.subf %215, %216 : vector<1x1xf32>
    %cst_179 = arith.constant 9.99999974E-6 : f32
    %218 = vector.broadcast %cst_179 : f32 to vector<1x1xf32>
    %219 = arith.addf %217, %218 : vector<1x1xf32>
    %220 = math.rsqrt %219 : vector<1x1xf32>
    %221 = vector.broadcast %213 : vector<1x1xf32> to vector<16x49xf32>
    %222 = arith.subf %202, %221 : vector<16x49xf32>
    %223 = vector.broadcast %220 : vector<1x1xf32> to vector<16x49xf32>
    %224 = arith.mulf %222, %223 : vector<16x49xf32>
    %c0_180 = arith.constant 0 : index
    %c0_181 = arith.constant 0 : index
    %225 = vector.load %arg14[%c0_180, %c0_181] : memref<16x1xf32, #tpu.memory_space<vmem>>, vector<16x1xf32>
    %226 = vector.broadcast %225 : vector<16x1xf32> to vector<16x49xf32>
    %227 = arith.mulf %224, %226 : vector<16x49xf32>
    %c0_182 = arith.constant 0 : index
    %c0_183 = arith.constant 0 : index
    %228 = vector.load %arg15[%c0_182, %c0_183] : memref<16x1xf32, #tpu.memory_space<vmem>>, vector<16x1xf32>
    %229 = vector.broadcast %228 : vector<16x1xf32> to vector<16x49xf32>
    %230 = arith.addf %227, %229 : vector<16x49xf32>
    %cst_184 = arith.constant 0.000000e+00 : f32
    %231 = vector.broadcast %cst_184 : f32 to vector<32x49xf32>
    %c0_185 = arith.constant 0 : index
    %c0_186 = arith.constant 0 : index
    %c0_187 = arith.constant 0 : index
    %232 = vector.load %arg3[%c0_185, %c0_186, %c0_187] : memref<9x49x49xf32, #tpu.memory_space<vmem>>, vector<1x49x49xf32>
    %233 = vector.shape_cast %232 : vector<1x49x49xf32> to vector<49x49xf32>
    %cst_188 = arith.constant dense<0.000000e+00> : vector<16x49xf32>
    %234 = tpu.matmul %230, %233, %cst_188 {dimension_numbers = #tpu.dot_dimension_numbers<[1], [0], [0], [1], [0, 0, 1, 1], [], []>} : vector<16x49xf32>, vector<49x49xf32>, vector<16x49xf32> -> vector<16x49xf32>
    %c0_189 = arith.constant 0 : index
    %c0_190 = arith.constant 0 : index
    %c0_191 = arith.constant 0 : index
    %235 = vector.load %arg16[%c0_189, %c0_190, %c0_191] : memref<9x32x16xf32, #tpu.memory_space<vmem>>, vector<1x32x16xf32>
    %236 = vector.shape_cast %235 : vector<1x32x16xf32> to vector<32x16xf32>
    %cst_192 = arith.constant dense<0.000000e+00> : vector<32x49xf32>
    %237 = tpu.matmul %236, %234, %cst_192 {dimension_numbers = #tpu.dot_dimension_numbers<[1], [0], [0], [1], [0, 0, 1, 1], [], []>} : vector<32x16xf32>, vector<16x49xf32>, vector<32x49xf32> -> vector<32x49xf32>
    %238 = arith.addf %231, %237 : vector<32x49xf32>
    %c1_193 = arith.constant 1 : index
    %c0_194 = arith.constant 0 : index
    %c0_195 = arith.constant 0 : index
    %239 = vector.load %arg3[%c1_193, %c0_194, %c0_195] : memref<9x49x49xf32, #tpu.memory_space<vmem>>, vector<1x49x49xf32>
    %240 = vector.shape_cast %239 : vector<1x49x49xf32> to vector<49x49xf32>
    %cst_196 = arith.constant dense<0.000000e+00> : vector<16x49xf32>
    %241 = tpu.matmul %230, %240, %cst_196 {dimension_numbers = #tpu.dot_dimension_numbers<[1], [0], [0], [1], [0, 0, 1, 1], [], []>} : vector<16x49xf32>, vector<49x49xf32>, vector<16x49xf32> -> vector<16x49xf32>
    %c1_197 = arith.constant 1 : index
    %c0_198 = arith.constant 0 : index
    %c0_199 = arith.constant 0 : index
    %242 = vector.load %arg16[%c1_197, %c0_198, %c0_199] : memref<9x32x16xf32, #tpu.memory_space<vmem>>, vector<1x32x16xf32>
    %243 = vector.shape_cast %242 : vector<1x32x16xf32> to vector<32x16xf32>
    %cst_200 = arith.constant dense<0.000000e+00> : vector<32x49xf32>
    %244 = tpu.matmul %243, %241, %cst_200 {dimension_numbers = #tpu.dot_dimension_numbers<[1], [0], [0], [1], [0, 0, 1, 1], [], []>} : vector<32x16xf32>, vector<16x49xf32>, vector<32x49xf32> -> vector<32x49xf32>
    %245 = arith.addf %238, %244 : vector<32x49xf32>
    %c2_201 = arith.constant 2 : index
    %c0_202 = arith.constant 0 : index
    %c0_203 = arith.constant 0 : index
    %246 = vector.load %arg3[%c2_201, %c0_202, %c0_203] : memref<9x49x49xf32, #tpu.memory_space<vmem>>, vector<1x49x49xf32>
    %247 = vector.shape_cast %246 : vector<1x49x49xf32> to vector<49x49xf32>
    %cst_204 = arith.constant dense<0.000000e+00> : vector<16x49xf32>
    %248 = tpu.matmul %230, %247, %cst_204 {dimension_numbers = #tpu.dot_dimension_numbers<[1], [0], [0], [1], [0, 0, 1, 1], [], []>} : vector<16x49xf32>, vector<49x49xf32>, vector<16x49xf32> -> vector<16x49xf32>
    %c2_205 = arith.constant 2 : index
    %c0_206 = arith.constant 0 : index
    %c0_207 = arith.constant 0 : index
    %249 = vector.load %arg16[%c2_205, %c0_206, %c0_207] : memref<9x32x16xf32, #tpu.memory_space<vmem>>, vector<1x32x16xf32>
    %250 = vector.shape_cast %249 : vector<1x32x16xf32> to vector<32x16xf32>
    %cst_208 = arith.constant dense<0.000000e+00> : vector<32x49xf32>
    %251 = tpu.matmul %250, %248, %cst_208 {dimension_numbers = #tpu.dot_dimension_numbers<[1], [0], [0], [1], [0, 0, 1, 1], [], []>} : vector<32x16xf32>, vector<16x49xf32>, vector<32x49xf32> -> vector<32x49xf32>
    %252 = arith.addf %245, %251 : vector<32x49xf32>
    %c3_209 = arith.constant 3 : index
    %c0_210 = arith.constant 0 : index
    %c0_211 = arith.constant 0 : index
    %253 = vector.load %arg3[%c3_209, %c0_210, %c0_211] : memref<9x49x49xf32, #tpu.memory_space<vmem>>, vector<1x49x49xf32>
    %254 = vector.shape_cast %253 : vector<1x49x49xf32> to vector<49x49xf32>
    %cst_212 = arith.constant dense<0.000000e+00> : vector<16x49xf32>
    %255 = tpu.matmul %230, %254, %cst_212 {dimension_numbers = #tpu.dot_dimension_numbers<[1], [0], [0], [1], [0, 0, 1, 1], [], []>} : vector<16x49xf32>, vector<49x49xf32>, vector<16x49xf32> -> vector<16x49xf32>
    %c3_213 = arith.constant 3 : index
    %c0_214 = arith.constant 0 : index
    %c0_215 = arith.constant 0 : index
    %256 = vector.load %arg16[%c3_213, %c0_214, %c0_215] : memref<9x32x16xf32, #tpu.memory_space<vmem>>, vector<1x32x16xf32>
    %257 = vector.shape_cast %256 : vector<1x32x16xf32> to vector<32x16xf32>
    %cst_216 = arith.constant dense<0.000000e+00> : vector<32x49xf32>
    %258 = tpu.matmul %257, %255, %cst_216 {dimension_numbers = #tpu.dot_dimension_numbers<[1], [0], [0], [1], [0, 0, 1, 1], [], []>} : vector<32x16xf32>, vector<16x49xf32>, vector<32x49xf32> -> vector<32x49xf32>
    %259 = arith.addf %252, %258 : vector<32x49xf32>
    %c4_217 = arith.constant 4 : index
    %c0_218 = arith.constant 0 : index
    %c0_219 = arith.constant 0 : index
    %260 = vector.load %arg3[%c4_217, %c0_218, %c0_219] : memref<9x49x49xf32, #tpu.memory_space<vmem>>, vector<1x49x49xf32>
    %261 = vector.shape_cast %260 : vector<1x49x49xf32> to vector<49x49xf32>
    %cst_220 = arith.constant dense<0.000000e+00> : vector<16x49xf32>
    %262 = tpu.matmul %230, %261, %cst_220 {dimension_numbers = #tpu.dot_dimension_numbers<[1], [0], [0], [1], [0, 0, 1, 1], [], []>} : vector<16x49xf32>, vector<49x49xf32>, vector<16x49xf32> -> vector<16x49xf32>
    %c4_221 = arith.constant 4 : index
    %c0_222 = arith.constant 0 : index
    %c0_223 = arith.constant 0 : index
    %263 = vector.load %arg16[%c4_221, %c0_222, %c0_223] : memref<9x32x16xf32, #tpu.memory_space<vmem>>, vector<1x32x16xf32>
    %264 = vector.shape_cast %263 : vector<1x32x16xf32> to vector<32x16xf32>
    %cst_224 = arith.constant dense<0.000000e+00> : vector<32x49xf32>
    %265 = tpu.matmul %264, %262, %cst_224 {dimension_numbers = #tpu.dot_dimension_numbers<[1], [0], [0], [1], [0, 0, 1, 1], [], []>} : vector<32x16xf32>, vector<16x49xf32>, vector<32x49xf32> -> vector<32x49xf32>
    %266 = arith.addf %259, %265 : vector<32x49xf32>
    %c5_225 = arith.constant 5 : index
    %c0_226 = arith.constant 0 : index
    %c0_227 = arith.constant 0 : index
    %267 = vector.load %arg3[%c5_225, %c0_226, %c0_227] : memref<9x49x49xf32, #tpu.memory_space<vmem>>, vector<1x49x49xf32>
    %268 = vector.shape_cast %267 : vector<1x49x49xf32> to vector<49x49xf32>
    %cst_228 = arith.constant dense<0.000000e+00> : vector<16x49xf32>
    %269 = tpu.matmul %230, %268, %cst_228 {dimension_numbers = #tpu.dot_dimension_numbers<[1], [0], [0], [1], [0, 0, 1, 1], [], []>} : vector<16x49xf32>, vector<49x49xf32>, vector<16x49xf32> -> vector<16x49xf32>
    %c5_229 = arith.constant 5 : index
    %c0_230 = arith.constant 0 : index
    %c0_231 = arith.constant 0 : index
    %270 = vector.load %arg16[%c5_229, %c0_230, %c0_231] : memref<9x32x16xf32, #tpu.memory_space<vmem>>, vector<1x32x16xf32>
    %271 = vector.shape_cast %270 : vector<1x32x16xf32> to vector<32x16xf32>
    %cst_232 = arith.constant dense<0.000000e+00> : vector<32x49xf32>
    %272 = tpu.matmul %271, %269, %cst_232 {dimension_numbers = #tpu.dot_dimension_numbers<[1], [0], [0], [1], [0, 0, 1, 1], [], []>} : vector<32x16xf32>, vector<16x49xf32>, vector<32x49xf32> -> vector<32x49xf32>
    %273 = arith.addf %266, %272 : vector<32x49xf32>
    %c6_233 = arith.constant 6 : index
    %c0_234 = arith.constant 0 : index
    %c0_235 = arith.constant 0 : index
    %274 = vector.load %arg3[%c6_233, %c0_234, %c0_235] : memref<9x49x49xf32, #tpu.memory_space<vmem>>, vector<1x49x49xf32>
    %275 = vector.shape_cast %274 : vector<1x49x49xf32> to vector<49x49xf32>
    %cst_236 = arith.constant dense<0.000000e+00> : vector<16x49xf32>
    %276 = tpu.matmul %230, %275, %cst_236 {dimension_numbers = #tpu.dot_dimension_numbers<[1], [0], [0], [1], [0, 0, 1, 1], [], []>} : vector<16x49xf32>, vector<49x49xf32>, vector<16x49xf32> -> vector<16x49xf32>
    %c6_237 = arith.constant 6 : index
    %c0_238 = arith.constant 0 : index
    %c0_239 = arith.constant 0 : index
    %277 = vector.load %arg16[%c6_237, %c0_238, %c0_239] : memref<9x32x16xf32, #tpu.memory_space<vmem>>, vector<1x32x16xf32>
    %278 = vector.shape_cast %277 : vector<1x32x16xf32> to vector<32x16xf32>
    %cst_240 = arith.constant dense<0.000000e+00> : vector<32x49xf32>
    %279 = tpu.matmul %278, %276, %cst_240 {dimension_numbers = #tpu.dot_dimension_numbers<[1], [0], [0], [1], [0, 0, 1, 1], [], []>} : vector<32x16xf32>, vector<16x49xf32>, vector<32x49xf32> -> vector<32x49xf32>
    %280 = arith.addf %273, %279 : vector<32x49xf32>
    %c7_241 = arith.constant 7 : index
    %c0_242 = arith.constant 0 : index
    %c0_243 = arith.constant 0 : index
    %281 = vector.load %arg3[%c7_241, %c0_242, %c0_243] : memref<9x49x49xf32, #tpu.memory_space<vmem>>, vector<1x49x49xf32>
    %282 = vector.shape_cast %281 : vector<1x49x49xf32> to vector<49x49xf32>
    %cst_244 = arith.constant dense<0.000000e+00> : vector<16x49xf32>
    %283 = tpu.matmul %230, %282, %cst_244 {dimension_numbers = #tpu.dot_dimension_numbers<[1], [0], [0], [1], [0, 0, 1, 1], [], []>} : vector<16x49xf32>, vector<49x49xf32>, vector<16x49xf32> -> vector<16x49xf32>
    %c7_245 = arith.constant 7 : index
    %c0_246 = arith.constant 0 : index
    %c0_247 = arith.constant 0 : index
    %284 = vector.load %arg16[%c7_245, %c0_246, %c0_247] : memref<9x32x16xf32, #tpu.memory_space<vmem>>, vector<1x32x16xf32>
    %285 = vector.shape_cast %284 : vector<1x32x16xf32> to vector<32x16xf32>
    %cst_248 = arith.constant dense<0.000000e+00> : vector<32x49xf32>
    %286 = tpu.matmul %285, %283, %cst_248 {dimension_numbers = #tpu.dot_dimension_numbers<[1], [0], [0], [1], [0, 0, 1, 1], [], []>} : vector<32x16xf32>, vector<16x49xf32>, vector<32x49xf32> -> vector<32x49xf32>
    %287 = arith.addf %280, %286 : vector<32x49xf32>
    %c8_249 = arith.constant 8 : index
    %c0_250 = arith.constant 0 : index
    %c0_251 = arith.constant 0 : index
    %288 = vector.load %arg3[%c8_249, %c0_250, %c0_251] : memref<9x49x49xf32, #tpu.memory_space<vmem>>, vector<1x49x49xf32>
    %289 = vector.shape_cast %288 : vector<1x49x49xf32> to vector<49x49xf32>
    %cst_252 = arith.constant dense<0.000000e+00> : vector<16x49xf32>
    %290 = tpu.matmul %230, %289, %cst_252 {dimension_numbers = #tpu.dot_dimension_numbers<[1], [0], [0], [1], [0, 0, 1, 1], [], []>} : vector<16x49xf32>, vector<49x49xf32>, vector<16x49xf32> -> vector<16x49xf32>
    %c8_253 = arith.constant 8 : index
    %c0_254 = arith.constant 0 : index
    %c0_255 = arith.constant 0 : index
    %291 = vector.load %arg16[%c8_253, %c0_254, %c0_255] : memref<9x32x16xf32, #tpu.memory_space<vmem>>, vector<1x32x16xf32>
    %292 = vector.shape_cast %291 : vector<1x32x16xf32> to vector<32x16xf32>
    %cst_256 = arith.constant dense<0.000000e+00> : vector<32x49xf32>
    %293 = tpu.matmul %292, %290, %cst_256 {dimension_numbers = #tpu.dot_dimension_numbers<[1], [0], [0], [1], [0, 0, 1, 1], [], []>} : vector<32x16xf32>, vector<16x49xf32>, vector<32x49xf32> -> vector<32x49xf32>
    %294 = arith.addf %287, %293 : vector<32x49xf32>
    %c0_257 = arith.constant 0 : index
    %c0_258 = arith.constant 0 : index
    %295 = vector.load %arg17[%c0_257, %c0_258] : memref<32x1xf32, #tpu.memory_space<vmem>>, vector<32x1xf32>
    %296 = vector.broadcast %295 : vector<32x1xf32> to vector<32x49xf32>
    %297 = arith.addf %294, %296 : vector<32x49xf32>
    %cst_259 = arith.constant 0.000000e+00 : f32
    %298 = vector.broadcast %cst_259 : f32 to vector<32x49xf32>
    %299 = arith.maximumf %297, %298 : vector<32x49xf32>
    %cst_260 = arith.constant dense<0.000000e+00> : vector<32xf32>
    %300 = vector.multi_reduction <add>, %299, %cst_260 [1] : vector<32x49xf32> to vector<32xf32>
    %301 = vector.shape_cast %300 : vector<32xf32> to vector<32x1xf32>
    %cst_261 = arith.constant dense<0.000000e+00> : vector<1xf32>
    %302 = vector.multi_reduction <add>, %301, %cst_261 [0] : vector<32x1xf32> to vector<1xf32>
    %303 = vector.shape_cast %302 : vector<1xf32> to vector<1x1xf32>
    %304 = arith.mulf %299, %299 : vector<32x49xf32>
    %cst_262 = arith.constant dense<0.000000e+00> : vector<32xf32>
    %305 = vector.multi_reduction <add>, %304, %cst_262 [1] : vector<32x49xf32> to vector<32xf32>
    %306 = vector.shape_cast %305 : vector<32xf32> to vector<32x1xf32>
    %cst_263 = arith.constant dense<0.000000e+00> : vector<1xf32>
    %307 = vector.multi_reduction <add>, %306, %cst_263 [0] : vector<32x1xf32> to vector<1xf32>
    %308 = vector.shape_cast %307 : vector<1xf32> to vector<1x1xf32>
    %cst_264 = arith.constant 1.568000e+03 : f32
    %309 = vector.broadcast %cst_264 : f32 to vector<1x1xf32>
    %310 = arith.divf %303, %309 : vector<1x1xf32>
    %cst_265 = arith.constant 1.568000e+03 : f32
    %311 = vector.broadcast %cst_265 : f32 to vector<1x1xf32>
    %312 = arith.divf %308, %311 : vector<1x1xf32>
    %313 = arith.mulf %310, %310 : vector<1x1xf32>
    %314 = arith.subf %312, %313 : vector<1x1xf32>
    %cst_266 = arith.constant 9.99999974E-6 : f32
    %315 = vector.broadcast %cst_266 : f32 to vector<1x1xf32>
    %316 = arith.addf %314, %315 : vector<1x1xf32>
    %317 = math.rsqrt %316 : vector<1x1xf32>
    %318 = vector.broadcast %310 : vector<1x1xf32> to vector<32x49xf32>
    %319 = arith.subf %299, %318 : vector<32x49xf32>
    %320 = vector.broadcast %317 : vector<1x1xf32> to vector<32x49xf32>
    %321 = arith.mulf %319, %320 : vector<32x49xf32>
    %c0_267 = arith.constant 0 : index
    %c0_268 = arith.constant 0 : index
    %322 = vector.load %arg18[%c0_267, %c0_268] : memref<32x1xf32, #tpu.memory_space<vmem>>, vector<32x1xf32>
    %323 = vector.broadcast %322 : vector<32x1xf32> to vector<32x49xf32>
    %324 = arith.mulf %321, %323 : vector<32x49xf32>
    %c0_269 = arith.constant 0 : index
    %c0_270 = arith.constant 0 : index
    %325 = vector.load %arg19[%c0_269, %c0_270] : memref<32x1xf32, #tpu.memory_space<vmem>>, vector<32x1xf32>
    %326 = vector.broadcast %325 : vector<32x1xf32> to vector<32x49xf32>
    %327 = arith.addf %324, %326 : vector<32x49xf32>
    %328 = arith.addf %327, %133 : vector<32x49xf32>
    %cst_271 = arith.constant 0.000000e+00 : f32
    %329 = vector.broadcast %cst_271 : f32 to vector<16x49xf32>
    %c0_272 = arith.constant 0 : index
    %c0_273 = arith.constant 0 : index
    %c0_274 = arith.constant 0 : index
    %330 = vector.load %arg3[%c0_272, %c0_273, %c0_274] : memref<9x49x49xf32, #tpu.memory_space<vmem>>, vector<1x49x49xf32>
    %331 = vector.shape_cast %330 : vector<1x49x49xf32> to vector<49x49xf32>
    %cst_275 = arith.constant dense<0.000000e+00> : vector<32x49xf32>
    %332 = tpu.matmul %328, %331, %cst_275 {dimension_numbers = #tpu.dot_dimension_numbers<[1], [0], [0], [1], [0, 0, 1, 1], [], []>} : vector<32x49xf32>, vector<49x49xf32>, vector<32x49xf32> -> vector<32x49xf32>
    %c0_276 = arith.constant 0 : index
    %c0_277 = arith.constant 0 : index
    %c0_278 = arith.constant 0 : index
    %333 = vector.load %arg20[%c0_276, %c0_277, %c0_278] : memref<9x16x32xf32, #tpu.memory_space<vmem>>, vector<1x16x32xf32>
    %334 = vector.shape_cast %333 : vector<1x16x32xf32> to vector<16x32xf32>
    %cst_279 = arith.constant dense<0.000000e+00> : vector<16x49xf32>
    %335 = tpu.matmul %334, %332, %cst_279 {dimension_numbers = #tpu.dot_dimension_numbers<[1], [0], [0], [1], [0, 0, 1, 1], [], []>} : vector<16x32xf32>, vector<32x49xf32>, vector<16x49xf32> -> vector<16x49xf32>
    %336 = arith.addf %329, %335 : vector<16x49xf32>
    %c1_280 = arith.constant 1 : index
    %c0_281 = arith.constant 0 : index
    %c0_282 = arith.constant 0 : index
    %337 = vector.load %arg3[%c1_280, %c0_281, %c0_282] : memref<9x49x49xf32, #tpu.memory_space<vmem>>, vector<1x49x49xf32>
    %338 = vector.shape_cast %337 : vector<1x49x49xf32> to vector<49x49xf32>
    %cst_283 = arith.constant dense<0.000000e+00> : vector<32x49xf32>
    %339 = tpu.matmul %328, %338, %cst_283 {dimension_numbers = #tpu.dot_dimension_numbers<[1], [0], [0], [1], [0, 0, 1, 1], [], []>} : vector<32x49xf32>, vector<49x49xf32>, vector<32x49xf32> -> vector<32x49xf32>
    %c1_284 = arith.constant 1 : index
    %c0_285 = arith.constant 0 : index
    %c0_286 = arith.constant 0 : index
    %340 = vector.load %arg20[%c1_284, %c0_285, %c0_286] : memref<9x16x32xf32, #tpu.memory_space<vmem>>, vector<1x16x32xf32>
    %341 = vector.shape_cast %340 : vector<1x16x32xf32> to vector<16x32xf32>
    %cst_287 = arith.constant dense<0.000000e+00> : vector<16x49xf32>
    %342 = tpu.matmul %341, %339, %cst_287 {dimension_numbers = #tpu.dot_dimension_numbers<[1], [0], [0], [1], [0, 0, 1, 1], [], []>} : vector<16x32xf32>, vector<32x49xf32>, vector<16x49xf32> -> vector<16x49xf32>
    %343 = arith.addf %336, %342 : vector<16x49xf32>
    %c2_288 = arith.constant 2 : index
    %c0_289 = arith.constant 0 : index
    %c0_290 = arith.constant 0 : index
    %344 = vector.load %arg3[%c2_288, %c0_289, %c0_290] : memref<9x49x49xf32, #tpu.memory_space<vmem>>, vector<1x49x49xf32>
    %345 = vector.shape_cast %344 : vector<1x49x49xf32> to vector<49x49xf32>
    %cst_291 = arith.constant dense<0.000000e+00> : vector<32x49xf32>
    %346 = tpu.matmul %328, %345, %cst_291 {dimension_numbers = #tpu.dot_dimension_numbers<[1], [0], [0], [1], [0, 0, 1, 1], [], []>} : vector<32x49xf32>, vector<49x49xf32>, vector<32x49xf32> -> vector<32x49xf32>
    %c2_292 = arith.constant 2 : index
    %c0_293 = arith.constant 0 : index
    %c0_294 = arith.constant 0 : index
    %347 = vector.load %arg20[%c2_292, %c0_293, %c0_294] : memref<9x16x32xf32, #tpu.memory_space<vmem>>, vector<1x16x32xf32>
    %348 = vector.shape_cast %347 : vector<1x16x32xf32> to vector<16x32xf32>
    %cst_295 = arith.constant dense<0.000000e+00> : vector<16x49xf32>
    %349 = tpu.matmul %348, %346, %cst_295 {dimension_numbers = #tpu.dot_dimension_numbers<[1], [0], [0], [1], [0, 0, 1, 1], [], []>} : vector<16x32xf32>, vector<32x49xf32>, vector<16x49xf32> -> vector<16x49xf32>
    %350 = arith.addf %343, %349 : vector<16x49xf32>
    %c3_296 = arith.constant 3 : index
    %c0_297 = arith.constant 0 : index
    %c0_298 = arith.constant 0 : index
    %351 = vector.load %arg3[%c3_296, %c0_297, %c0_298] : memref<9x49x49xf32, #tpu.memory_space<vmem>>, vector<1x49x49xf32>
    %352 = vector.shape_cast %351 : vector<1x49x49xf32> to vector<49x49xf32>
    %cst_299 = arith.constant dense<0.000000e+00> : vector<32x49xf32>
    %353 = tpu.matmul %328, %352, %cst_299 {dimension_numbers = #tpu.dot_dimension_numbers<[1], [0], [0], [1], [0, 0, 1, 1], [], []>} : vector<32x49xf32>, vector<49x49xf32>, vector<32x49xf32> -> vector<32x49xf32>
    %c3_300 = arith.constant 3 : index
    %c0_301 = arith.constant 0 : index
    %c0_302 = arith.constant 0 : index
    %354 = vector.load %arg20[%c3_300, %c0_301, %c0_302] : memref<9x16x32xf32, #tpu.memory_space<vmem>>, vector<1x16x32xf32>
    %355 = vector.shape_cast %354 : vector<1x16x32xf32> to vector<16x32xf32>
    %cst_303 = arith.constant dense<0.000000e+00> : vector<16x49xf32>
    %356 = tpu.matmul %355, %353, %cst_303 {dimension_numbers = #tpu.dot_dimension_numbers<[1], [0], [0], [1], [0, 0, 1, 1], [], []>} : vector<16x32xf32>, vector<32x49xf32>, vector<16x49xf32> -> vector<16x49xf32>
    %357 = arith.addf %350, %356 : vector<16x49xf32>
    %c4_304 = arith.constant 4 : index
    %c0_305 = arith.constant 0 : index
    %c0_306 = arith.constant 0 : index
    %358 = vector.load %arg3[%c4_304, %c0_305, %c0_306] : memref<9x49x49xf32, #tpu.memory_space<vmem>>, vector<1x49x49xf32>
    %359 = vector.shape_cast %358 : vector<1x49x49xf32> to vector<49x49xf32>
    %cst_307 = arith.constant dense<0.000000e+00> : vector<32x49xf32>
    %360 = tpu.matmul %328, %359, %cst_307 {dimension_numbers = #tpu.dot_dimension_numbers<[1], [0], [0], [1], [0, 0, 1, 1], [], []>} : vector<32x49xf32>, vector<49x49xf32>, vector<32x49xf32> -> vector<32x49xf32>
    %c4_308 = arith.constant 4 : index
    %c0_309 = arith.constant 0 : index
    %c0_310 = arith.constant 0 : index
    %361 = vector.load %arg20[%c4_308, %c0_309, %c0_310] : memref<9x16x32xf32, #tpu.memory_space<vmem>>, vector<1x16x32xf32>
    %362 = vector.shape_cast %361 : vector<1x16x32xf32> to vector<16x32xf32>
    %cst_311 = arith.constant dense<0.000000e+00> : vector<16x49xf32>
    %363 = tpu.matmul %362, %360, %cst_311 {dimension_numbers = #tpu.dot_dimension_numbers<[1], [0], [0], [1], [0, 0, 1, 1], [], []>} : vector<16x32xf32>, vector<32x49xf32>, vector<16x49xf32> -> vector<16x49xf32>
    %364 = arith.addf %357, %363 : vector<16x49xf32>
    %c5_312 = arith.constant 5 : index
    %c0_313 = arith.constant 0 : index
    %c0_314 = arith.constant 0 : index
    %365 = vector.load %arg3[%c5_312, %c0_313, %c0_314] : memref<9x49x49xf32, #tpu.memory_space<vmem>>, vector<1x49x49xf32>
    %366 = vector.shape_cast %365 : vector<1x49x49xf32> to vector<49x49xf32>
    %cst_315 = arith.constant dense<0.000000e+00> : vector<32x49xf32>
    %367 = tpu.matmul %328, %366, %cst_315 {dimension_numbers = #tpu.dot_dimension_numbers<[1], [0], [0], [1], [0, 0, 1, 1], [], []>} : vector<32x49xf32>, vector<49x49xf32>, vector<32x49xf32> -> vector<32x49xf32>
    %c5_316 = arith.constant 5 : index
    %c0_317 = arith.constant 0 : index
    %c0_318 = arith.constant 0 : index
    %368 = vector.load %arg20[%c5_316, %c0_317, %c0_318] : memref<9x16x32xf32, #tpu.memory_space<vmem>>, vector<1x16x32xf32>
    %369 = vector.shape_cast %368 : vector<1x16x32xf32> to vector<16x32xf32>
    %cst_319 = arith.constant dense<0.000000e+00> : vector<16x49xf32>
    %370 = tpu.matmul %369, %367, %cst_319 {dimension_numbers = #tpu.dot_dimension_numbers<[1], [0], [0], [1], [0, 0, 1, 1], [], []>} : vector<16x32xf32>, vector<32x49xf32>, vector<16x49xf32> -> vector<16x49xf32>
    %371 = arith.addf %364, %370 : vector<16x49xf32>
    %c6_320 = arith.constant 6 : index
    %c0_321 = arith.constant 0 : index
    %c0_322 = arith.constant 0 : index
    %372 = vector.load %arg3[%c6_320, %c0_321, %c0_322] : memref<9x49x49xf32, #tpu.memory_space<vmem>>, vector<1x49x49xf32>
    %373 = vector.shape_cast %372 : vector<1x49x49xf32> to vector<49x49xf32>
    %cst_323 = arith.constant dense<0.000000e+00> : vector<32x49xf32>
    %374 = tpu.matmul %328, %373, %cst_323 {dimension_numbers = #tpu.dot_dimension_numbers<[1], [0], [0], [1], [0, 0, 1, 1], [], []>} : vector<32x49xf32>, vector<49x49xf32>, vector<32x49xf32> -> vector<32x49xf32>
    %c6_324 = arith.constant 6 : index
    %c0_325 = arith.constant 0 : index
    %c0_326 = arith.constant 0 : index
    %375 = vector.load %arg20[%c6_324, %c0_325, %c0_326] : memref<9x16x32xf32, #tpu.memory_space<vmem>>, vector<1x16x32xf32>
    %376 = vector.shape_cast %375 : vector<1x16x32xf32> to vector<16x32xf32>
    %cst_327 = arith.constant dense<0.000000e+00> : vector<16x49xf32>
    %377 = tpu.matmul %376, %374, %cst_327 {dimension_numbers = #tpu.dot_dimension_numbers<[1], [0], [0], [1], [0, 0, 1, 1], [], []>} : vector<16x32xf32>, vector<32x49xf32>, vector<16x49xf32> -> vector<16x49xf32>
    %378 = arith.addf %371, %377 : vector<16x49xf32>
    %c7_328 = arith.constant 7 : index
    %c0_329 = arith.constant 0 : index
    %c0_330 = arith.constant 0 : index
    %379 = vector.load %arg3[%c7_328, %c0_329, %c0_330] : memref<9x49x49xf32, #tpu.memory_space<vmem>>, vector<1x49x49xf32>
    %380 = vector.shape_cast %379 : vector<1x49x49xf32> to vector<49x49xf32>
    %cst_331 = arith.constant dense<0.000000e+00> : vector<32x49xf32>
    %381 = tpu.matmul %328, %380, %cst_331 {dimension_numbers = #tpu.dot_dimension_numbers<[1], [0], [0], [1], [0, 0, 1, 1], [], []>} : vector<32x49xf32>, vector<49x49xf32>, vector<32x49xf32> -> vector<32x49xf32>
    %c7_332 = arith.constant 7 : index
    %c0_333 = arith.constant 0 : index
    %c0_334 = arith.constant 0 : index
    %382 = vector.load %arg20[%c7_332, %c0_333, %c0_334] : memref<9x16x32xf32, #tpu.memory_space<vmem>>, vector<1x16x32xf32>
    %383 = vector.shape_cast %382 : vector<1x16x32xf32> to vector<16x32xf32>
    %cst_335 = arith.constant dense<0.000000e+00> : vector<16x49xf32>
    %384 = tpu.matmul %383, %381, %cst_335 {dimension_numbers = #tpu.dot_dimension_numbers<[1], [0], [0], [1], [0, 0, 1, 1], [], []>} : vector<16x32xf32>, vector<32x49xf32>, vector<16x49xf32> -> vector<16x49xf32>
    %385 = arith.addf %378, %384 : vector<16x49xf32>
    %c8_336 = arith.constant 8 : index
    %c0_337 = arith.constant 0 : index
    %c0_338 = arith.constant 0 : index
    %386 = vector.load %arg3[%c8_336, %c0_337, %c0_338] : memref<9x49x49xf32, #tpu.memory_space<vmem>>, vector<1x49x49xf32>
    %387 = vector.shape_cast %386 : vector<1x49x49xf32> to vector<49x49xf32>
    %cst_339 = arith.constant dense<0.000000e+00> : vector<32x49xf32>
    %388 = tpu.matmul %328, %387, %cst_339 {dimension_numbers = #tpu.dot_dimension_numbers<[1], [0], [0], [1], [0, 0, 1, 1], [], []>} : vector<32x49xf32>, vector<49x49xf32>, vector<32x49xf32> -> vector<32x49xf32>
    %c8_340 = arith.constant 8 : index
    %c0_341 = arith.constant 0 : index
    %c0_342 = arith.constant 0 : index
    %389 = vector.load %arg20[%c8_340, %c0_341, %c0_342] : memref<9x16x32xf32, #tpu.memory_space<vmem>>, vector<1x16x32xf32>
    %390 = vector.shape_cast %389 : vector<1x16x32xf32> to vector<16x32xf32>
    %cst_343 = arith.constant dense<0.000000e+00> : vector<16x49xf32>
    %391 = tpu.matmul %390, %388, %cst_343 {dimension_numbers = #tpu.dot_dimension_numbers<[1], [0], [0], [1], [0, 0, 1, 1], [], []>} : vector<16x32xf32>, vector<32x49xf32>, vector<16x49xf32> -> vector<16x49xf32>
    %392 = arith.addf %385, %391 : vector<16x49xf32>
    %c0_344 = arith.constant 0 : index
    %c0_345 = arith.constant 0 : index
    %393 = vector.load %arg21[%c0_344, %c0_345] : memref<16x1xf32, #tpu.memory_space<vmem>>, vector<16x1xf32>
    %394 = vector.broadcast %393 : vector<16x1xf32> to vector<16x49xf32>
    %395 = arith.addf %392, %394 : vector<16x49xf32>
    %cst_346 = arith.constant 0.000000e+00 : f32
    %396 = vector.broadcast %cst_346 : f32 to vector<16x49xf32>
    %397 = arith.maximumf %395, %396 : vector<16x49xf32>
    %cst_347 = arith.constant dense<0.000000e+00> : vector<16xf32>
    %398 = vector.multi_reduction <add>, %397, %cst_347 [1] : vector<16x49xf32> to vector<16xf32>
    %399 = vector.shape_cast %398 : vector<16xf32> to vector<16x1xf32>
    %cst_348 = arith.constant dense<0.000000e+00> : vector<1xf32>
    %400 = vector.multi_reduction <add>, %399, %cst_348 [0] : vector<16x1xf32> to vector<1xf32>
    %401 = vector.shape_cast %400 : vector<1xf32> to vector<1x1xf32>
    %402 = arith.mulf %397, %397 : vector<16x49xf32>
    %cst_349 = arith.constant dense<0.000000e+00> : vector<16xf32>
    %403 = vector.multi_reduction <add>, %402, %cst_349 [1] : vector<16x49xf32> to vector<16xf32>
    %404 = vector.shape_cast %403 : vector<16xf32> to vector<16x1xf32>
    %cst_350 = arith.constant dense<0.000000e+00> : vector<1xf32>
    %405 = vector.multi_reduction <add>, %404, %cst_350 [0] : vector<16x1xf32> to vector<1xf32>
    %406 = vector.shape_cast %405 : vector<1xf32> to vector<1x1xf32>
    %cst_351 = arith.constant 7.840000e+02 : f32
    %407 = vector.broadcast %cst_351 : f32 to vector<1x1xf32>
    %408 = arith.divf %401, %407 : vector<1x1xf32>
    %cst_352 = arith.constant 7.840000e+02 : f32
    %409 = vector.broadcast %cst_352 : f32 to vector<1x1xf32>
    %410 = arith.divf %406, %409 : vector<1x1xf32>
    %411 = arith.mulf %408, %408 : vector<1x1xf32>
    %412 = arith.subf %410, %411 : vector<1x1xf32>
    %cst_353 = arith.constant 9.99999974E-6 : f32
    %413 = vector.broadcast %cst_353 : f32 to vector<1x1xf32>
    %414 = arith.addf %412, %413 : vector<1x1xf32>
    %415 = math.rsqrt %414 : vector<1x1xf32>
    %416 = vector.broadcast %408 : vector<1x1xf32> to vector<16x49xf32>
    %417 = arith.subf %397, %416 : vector<16x49xf32>
    %418 = vector.broadcast %415 : vector<1x1xf32> to vector<16x49xf32>
    %419 = arith.mulf %417, %418 : vector<16x49xf32>
    %c0_354 = arith.constant 0 : index
    %c0_355 = arith.constant 0 : index
    %420 = vector.load %arg22[%c0_354, %c0_355] : memref<16x1xf32, #tpu.memory_space<vmem>>, vector<16x1xf32>
    %421 = vector.broadcast %420 : vector<16x1xf32> to vector<16x49xf32>
    %422 = arith.mulf %419, %421 : vector<16x49xf32>
    %c0_356 = arith.constant 0 : index
    %c0_357 = arith.constant 0 : index
    %423 = vector.load %arg23[%c0_356, %c0_357] : memref<16x1xf32, #tpu.memory_space<vmem>>, vector<16x1xf32>
    %424 = vector.broadcast %423 : vector<16x1xf32> to vector<16x49xf32>
    %425 = arith.addf %422, %424 : vector<16x49xf32>
    %c0_358 = arith.constant 0 : index
    %c0_359 = arith.constant 0 : index
    %c0_360 = arith.constant 0 : index
    %426 = vector.load %arg24[%c0_358, %c0_359, %c0_360] : memref<1x16x49xf32, #tpu.memory_space<vmem>>, vector<1x16x49xf32>
    %427 = vector.shape_cast %426 : vector<1x16x49xf32> to vector<16x49xf32>
    %428 = vector.shape_cast %425 : vector<16x49xf32> to vector<1x16x49xf32>
    tpu.vector_store %arg24[%c0_358, %c0_359, %c0_360], %428 {strides = array<i32>} : memref<1x16x49xf32, #tpu.memory_space<vmem>>, vector<1x16x49xf32>,
    return
  }
  func.func @transform_0(%arg0: i32) -> (i32, i32, i32) {
    %c0_i32 = arith.constant 0 : i32
    %c0_i32_0 = arith.constant 0 : i32
    %c0_i32_1 = arith.constant 0 : i32
    return %arg0, %c0_i32, %c0_i32_0 : i32, i32, i32
  }
  func.func @transform_1(%arg0: i32) -> (i32, i32, i32) {
    %c0_i32 = arith.constant 0 : i32
    %c0_i32_0 = arith.constant 0 : i32
    %c0_i32_1 = arith.constant 0 : i32
    %c0_i32_2 = arith.constant 0 : i32
    return %c0_i32, %c0_i32_0, %c0_i32_1 : i32, i32, i32
  }
  func.func @transform_2(%arg0: i32) -> (i32, i32, i32) {
    %c0_i32 = arith.constant 0 : i32
    %c0_i32_0 = arith.constant 0 : i32
    %c0_i32_1 = arith.constant 0 : i32
    %c0_i32_2 = arith.constant 0 : i32
    return %c0_i32, %c0_i32_0, %c0_i32_1 : i32, i32, i32
  }
  func.func @transform_3(%arg0: i32) -> (i32, i32) {
    %c0_i32 = arith.constant 0 : i32
    %c0_i32_0 = arith.constant 0 : i32
    %c0_i32_1 = arith.constant 0 : i32
    return %c0_i32, %c0_i32_0 : i32, i32
  }
  func.func @transform_4(%arg0: i32) -> (i32, i32) {
    %c0_i32 = arith.constant 0 : i32
    %c0_i32_0 = arith.constant 0 : i32
    %c0_i32_1 = arith.constant 0 : i32
    return %c0_i32, %c0_i32_0 : i32, i32
  }
  func.func @transform_5(%arg0: i32) -> (i32, i32) {
    %c0_i32 = arith.constant 0 : i32
    %c0_i32_0 = arith.constant 0 : i32
    %c0_i32_1 = arith.constant 0 : i32
    return %c0_i32, %c0_i32_0 : i32, i32
  }
  func.func @transform_6(%arg0: i32) -> (i32, i32) {
    %c0_i32 = arith.constant 0 : i32
    %c0_i32_0 = arith.constant 0 : i32
    %c0_i32_1 = arith.constant 0 : i32
    return %c0_i32, %c0_i32_0 : i32, i32
  }
  func.func @transform_7(%arg0: i32) -> (i32, i32, i32) {
    %c0_i32 = arith.constant 0 : i32
    %c0_i32_0 = arith.constant 0 : i32
    %c0_i32_1 = arith.constant 0 : i32
    %c0_i32_2 = arith.constant 0 : i32
    return %c0_i32, %c0_i32_0, %c0_i32_1 : i32, i32, i32
  }
  func.func @transform_8(%arg0: i32) -> (i32, i32) {
    %c0_i32 = arith.constant 0 : i32
    %c0_i32_0 = arith.constant 0 : i32
    %c0_i32_1 = arith.constant 0 : i32
    return %c0_i32, %c0_i32_0 : i32, i32
  }
  func.func @transform_9(%arg0: i32) -> (i32, i32) {
    %c0_i32 = arith.constant 0 : i32
    %c0_i32_0 = arith.constant 0 : i32
    %c0_i32_1 = arith.constant 0 : i32
    return %c0_i32, %c0_i32_0 : i32, i32
  }
  func.func @transform_10(%arg0: i32) -> (i32, i32) {
    %c0_i32 = arith.constant 0 : i32
    %c0_i32_0 = arith.constant 0 : i32
    %c0_i32_1 = arith.constant 0 : i32
    return %c0_i32, %c0_i32_0 : i32, i32
  }
  func.func @transform_11(%arg0: i32) -> (i32, i32, i32) {
    %c0_i32 = arith.constant 0 : i32
    %c0_i32_0 = arith.constant 0 : i32
    %c0_i32_1 = arith.constant 0 : i32
    %c0_i32_2 = arith.constant 0 : i32
    return %c0_i32, %c0_i32_0, %c0_i32_1 : i32, i32, i32
  }
  func.func @transform_12(%arg0: i32) -> (i32, i32) {
    %c0_i32 = arith.constant 0 : i32
    %c0_i32_0 = arith.constant 0 : i32
    %c0_i32_1 = arith.constant 0 : i32
    return %c0_i32, %c0_i32_0 : i32, i32
  }
  func.func @transform_13(%arg0: i32) -> (i32, i32) {
    %c0_i32 = arith.constant 0 : i32
    %c0_i32_0 = arith.constant 0 : i32
    %c0_i32_1 = arith.constant 0 : i32
    return %c0_i32, %c0_i32_0 : i32, i32
  }
  func.func @transform_14(%arg0: i32) -> (i32, i32) {
    %c0_i32 = arith.constant 0 : i32
    %c0_i32_0 = arith.constant 0 : i32
    %c0_i32_1 = arith.constant 0 : i32
    return %c0_i32, %c0_i32_0 : i32, i32
  }
  func.func @transform_15(%arg0: i32) -> (i32, i32, i32) {
    %c0_i32 = arith.constant 0 : i32
    %c0_i32_0 = arith.constant 0 : i32
    %c0_i32_1 = arith.constant 0 : i32
    %c0_i32_2 = arith.constant 0 : i32
    return %c0_i32, %c0_i32_0, %c0_i32_1 : i32, i32, i32
  }
  func.func @transform_16(%arg0: i32) -> (i32, i32) {
    %c0_i32 = arith.constant 0 : i32
    %c0_i32_0 = arith.constant 0 : i32
    %c0_i32_1 = arith.constant 0 : i32
    return %c0_i32, %c0_i32_0 : i32, i32
  }
  func.func @transform_17(%arg0: i32) -> (i32, i32) {
    %c0_i32 = arith.constant 0 : i32
    %c0_i32_0 = arith.constant 0 : i32
    %c0_i32_1 = arith.constant 0 : i32
    return %c0_i32, %c0_i32_0 : i32, i32
  }
  func.func @transform_18(%arg0: i32) -> (i32, i32) {
    %c0_i32 = arith.constant 0 : i32
    %c0_i32_0 = arith.constant 0 : i32
    %c0_i32_1 = arith.constant 0 : i32
    return %c0_i32, %c0_i32_0 : i32, i32
  }
  func.func @transform_19(%arg0: i32) -> (i32, i32, i32) {
    %c0_i32 = arith.constant 0 : i32
    %c0_i32_0 = arith.constant 0 : i32
    %c0_i32_1 = arith.constant 0 : i32
    %c0_i32_2 = arith.constant 0 : i32
    return %c0_i32, %c0_i32_0, %c0_i32_1 : i32, i32, i32
  }
  func.func @transform_20(%arg0: i32) -> (i32, i32) {
    %c0_i32 = arith.constant 0 : i32
    %c0_i32_0 = arith.constant 0 : i32
    %c0_i32_1 = arith.constant 0 : i32
    return %c0_i32, %c0_i32_0 : i32, i32
  }
  func.func @transform_21(%arg0: i32) -> (i32, i32) {
    %c0_i32 = arith.constant 0 : i32
    %c0_i32_0 = arith.constant 0 : i32
    %c0_i32_1 = arith.constant 0 : i32
    return %c0_i32, %c0_i32_0 : i32, i32
  }
  func.func @transform_22(%arg0: i32) -> (i32, i32) {
    %c0_i32 = arith.constant 0 : i32
    %c0_i32_0 = arith.constant 0 : i32
    %c0_i32_1 = arith.constant 0 : i32
    return %c0_i32, %c0_i32_0 : i32, i32
  }
  func.func @transform_23(%arg0: i32) -> (i32, i32, i32) {
    %c0_i32 = arith.constant 0 : i32
    %c0_i32_0 = arith.constant 0 : i32
    %c0_i32_1 = arith.constant 0 : i32
    return %arg0, %c0_i32, %c0_i32_0 : i32, i32, i32
  }
}

</mosaic_0001>

<bundles_post_ra>
// kernel: fishnet_forward.1
= control target key start
LH: loop header
LB: loop body
LE: loop exit
PB: predicated region body
PF: predicated region fallthrough
CT: control target
= control target key end

     0   :  { %s12413_s0 = inlined_call_operand.vmem [shape: f32[2,4,256], index: 0, kind: input, shape index: {}]   ;;  %s12414_s1 = inlined_call_operand.hbm [shape: f32[9,256,49], index: 1, kind: input, shape index: {}]   ;;  %s12415_s2 = inlined_call_operand.hbm [shape: f32[9,49,49], index: 2, kind: input, shape index: {}]   ;;  %s12416_s3 = inlined_call_operand.vmem [shape: f32[32,4], index: 3, kind: input, shape index: {}]   ;;  %s12417_s4 = inlined_call_operand.vmem [shape: f32[32,1], index: 4, kind: input, shape index: {}]   ;;  %s12418_s5 = inlined_call_operand.vmem [shape: f32[32,1], index: 5, kind: input, shape index: {}]   ;;  %s12419_s6 = inlined_call_operand.vmem [shape: f32[32,1], index: 6, kind: input, shape index: {}]   ;;  %s12420_s7 = inlined_call_operand.hbm [shape: f32[9,32,32], index: 7, kind: input, shape index: {}]   ;;  %s12421_s8 = inlined_call_operand.vmem [shape: f32[32,1], index: 8, kind: input, shape index: {}]   ;;  %s12422_s9 = inlined_call_operand.vmem [shape: f32[32,1], index: 9, kind: input, shape index: {}]   ;;  %s12423_s10 = inlined_call_operand.vmem [shape: f32[32,1], index: 10, kind: input, shape index: {}]   ;;  %s12424_s11 = inlined_call_operand.hbm [shape: f32[9,16,32], index: 11, kind: input, shape index: {}]   ;;  %s12425_s12 = inlined_call_operand.vmem [shape: f32[16,1], index: 12, kind: input, shape index: {}]   ;;  %s12426_s13 = inlined_call_operand.vmem [shape: f32[16,1], index: 13, kind: input, shape index: {}]   ;;  %s12427_s14 = inlined_call_operand.vmem [shape: f32[16,1], index: 14, kind: input, shape index: {}]   ;;  %s12428_s15 = inlined_call_operand.vmem [shape: f32[9,32,16], index: 15, kind: input, shape index: {}]   ;;  %s12429_s16 = inlined_call_operand.vmem [shape: f32[32,1], index: 16, kind: input, shape index: {}]   ;;  %s12430_s17 = inlined_call_operand.vmem [shape: f32[32,1], index: 17, kind: input, shape index: {}]   ;;  %s12431_s18 = inlined_call_operand.vmem [shape: f32[32,1], index: 18, kind: input, shape index: {}]   ;;  %s12432_s19 = inlined_call_operand.hbm [shape: f32[9,16,32], index: 19, kind: input, shape index: {}]   ;;  %s12433_s20 = inlined_call_operand.vmem [shape: f32[16,1], index: 20, kind: input, shape index: {}]   ;;  %s12434_s21 = inlined_call_operand.vmem [shape: f32[16,1], index: 21, kind: input, shape index: {}]   ;;  %s12435_s22 = inlined_call_operand.vmem [shape: f32[16,1], index: 22, kind: input, shape index: {}]   ;;  %s12436_s23 = inlined_call_operand.vmem [shape: f32[2,16,49], index: 23, kind: output, shape index: {}]  }
   0x1   :  { %12466 = sst [smem:[#allocation28_spill]] %s12413_s0 }
   0x2   :  { %12467 = sst [smem:[#allocation29_spill]] %s12414_s1 }
   0x3   :  { %12468 = sst [smem:[#allocation30_spill]] %s12415_s2 }
   0x4   :  { %12469 = sst [smem:[#allocation31_spill]] %s12416_s3 }
   0x5   :  { %12470 = sst [smem:[#allocation32_spill]] %s12417_s4 }
   0x6   :  { %12471 = sst [smem:[#allocation33_spill]] %s12418_s5 }
   0x7   :  { %12472 = sst [smem:[#allocation34_spill]] %s12419_s6 }
   0x8   :  { %12473 = sst [smem:[#allocation35_spill]] %s12420_s7 }
   0x9   :  { %28 = vsyncpa [#allocation3], 0 }
   0xa   :  { %29 = vsyncpa [#allocation5], 0 }
   0xb   :  { %30 = vsyncpa [#allocation8], 0  ;;  %s11006_s4 = smov 0  }
   0xc LB: > { %12474 = sst [smem:[#allocation13_spill]] %s10875_s4  ;;  %s11012_s30 = sadd.s32 4294967295, %s10875_s4   ;;  %s10875_s4 = sphi %s11006_s4, %s36_s4  }
   0xd   : > { %p8468_p0 = scmp.ge.s32.totalorder %s10875_s4, 1  ;;  %p555_p1 = scmp.lt.s32.totalorder %s10875_s4, 3 }
   0xe   : > { %p10624_p2 = scmp.eq.s32.totalorder %s11012_s30, 0  ;;  %s10877_s25 = smov [#allocation4]  }
   0xf   : > { %p11017_p3 = pnand %p8468_p0, %p555_p1  ;;  %s580_s5 = sshll.u32 %s10877_s25, 4  ;;  %s581_s5 = int_to_ptr.vmem [resolvable:$true] %s580_s5 }
  0x10   : > { %s10878_s1 = smov [#allocation7]   ;;  %s10879_s6 = smov [#allocation2]  }
  0x11   : > { %p10608_p4 = pneg %p11017_p3  ;;  %s627_s26 = sshll.u32 %s10878_s1, 4  ;;  %s11023_s26 = int_to_ptr.vmem [resolvable:$true] %s627_s26 }
  0x12   : > { %s567_s27 = sshll.u32 %s10879_s6, 4  ;;  %s10880_s7 = smov [#allocation6]   ;;  %s11031_s27 = int_to_ptr.vmem [resolvable:$true] %s567_s27 }
  0x13   : > { %p11027_p5 = pnand %p10624_p2, %p10608_p4  ;;  %s11033_s28 = sshll.u32 %s10880_s7, 4  ;;  %s606_s28 = int_to_ptr.vmem [resolvable:$true] %s11033_s28 }
  0x14   : > { %s10738_s3 = scalar_lea.vmem %s581_s5, 8064  ;;  %p10746_p10 = scmp.lt.s32.totalorder %s581_s5, %s581_s5 }
  0x15   : > { %p11037_p6 = pneg %p11027_p5  ;;  %p10739_p7 = scmp.ne.s32.totalorder %s581_s5, %s10738_s3 }
  0x16   : > { %p10747_p11 = scmp.lt.s32.totalorder %s10738_s3, %s10738_s3 }
  0x17   : > { %p10741_p8 = pnand %p10739_p7, %p11037_p6 }
  0x18   : > { %p10748_p12 = por %p10747_p11, %p10746_p10 }
  0x19   : > { %p10742_p9 = pneg %p10741_p8 }
  0x1b   : > { %p10749_p13 = pnand %p10748_p12, %p10742_p9 }
  0x1d   : > { %10752 = shalt.err (!%p10749_p13)
}
  0x1e   : > { %s10881_s0 = smov 128   ;;  %s10882_s25 = smov 8  }
  0x1f   : > { %s12478_s7 = sld [smem:[#allocation30_spill]]  ;;  %s10764_s4 = scalar_lea.vmem %s11023_s26, 2304 }
  0x20   : > { %p10765_p0 = scmp.ne.s32.totalorder %s11023_s26, %s10764_s4  ;;  %p10772_p7 = scmp.lt.s32.totalorder %s11023_s26, %s11023_s26 }
  0x21   : > { %p10773_p8 = scmp.lt.s32.totalorder %s10764_s4, %s10764_s4 }
  0x22   : > { %p10767_p1 = pnand %p10765_p0, %p11037_p6 }
  0x23   : > { %p10774_p9 = por %p10773_p8, %p10772_p7 }
  0x24   : > { %p10768_p4 = pneg %p10767_p1 }
  0x25   : > { %10614 = dma.hbm_to_vmem [thread:$0]  (!%p11027_p5), %s12478_s7, 8064, %s581_s5, [#allocation5], %s10881_s0, %s10881_s0, %s10882_s25  }
  0x26   : > { %p10775_p10 = pnand %p10774_p9, %p10768_p4 }
  0x28   : > { %10778 = shalt.err (!%p10775_p10)
}
  0x29   : > { %10620 = dma.hbm_to_vmem [thread:$0]  (!%p11027_p5), %s12424_s11, 2304, %s11023_s26, [#allocation8], %s10881_s0, %s10881_s0, %s10882_s25  }
  0x2a   : > { %s10790_s5 = scalar_lea.vmem %s11031_s27, 36864  ;;  %p10798_p0 = scmp.lt.s32.totalorder %s11031_s27, %s11031_s27 }
  0x2b   : > { %p10791_p11 = scmp.ne.s32.totalorder %s11031_s27, %s10790_s5  ;;  %p10799_p1 = scmp.lt.s32.totalorder %s10790_s5, %s10790_s5 }
  0x2d   : > { %p10793_p12 = pnand %p10791_p11, %p11037_p6  ;;  %p10800_p4 = por %p10799_p1, %p10798_p0 }
  0x2f   : > { %p10794_p13 = pneg %p10793_p12 }
  0x31   : > { %p10801_p7 = pnand %p10800_p4, %p10794_p13 }
  0x33   : > { %10804 = shalt.err (!%p10801_p7)
}
  0x34   : > { %s12479_s26 = sld [smem:[#allocation29_spill]]  ;;  %s10816_s7 = scalar_lea.vmem %s606_s28, 4608 }
  0x35   : > { %p10817_p8 = scmp.ne.s32.totalorder %s606_s28, %s10816_s7  ;;  %p10824_p11 = scmp.lt.s32.totalorder %s606_s28, %s606_s28 }
  0x36   : > { %p10825_p12 = scmp.lt.s32.totalorder %s10816_s7, %s10816_s7 }
  0x37   : > { %p10819_p9 = pnand %p10817_p8, %p11037_p6 }
  0x38   : > { %p10826_p13 = por %p10825_p12, %p10824_p11 }
  0x39   : > { %p10820_p10 = pneg %p10819_p9 }
  0x3a   : > { %10611 = dma.hbm_to_vmem [thread:$0]  (!%p11027_p5), %s12479_s26, 36864, %s11031_s27, [#allocation3], %s10881_s0, %s10881_s0, %s10882_s25  }
  0x3b   : > { %p10827_p0 = pnand %p10826_p13, %p10820_p10 }
  0x3d   : > { %10830 = shalt.err (!%p10827_p0)
}
  0x3e   : > { %s12480_s5 = sld [smem:[#allocation35_spill]]  ;;  %s10883_s27 = smov [#allocation9]  }
  0x3f   : > { %s661_s4 = sshll.u32 %s10883_s27, 4  ;;  %s662_s4 = int_to_ptr.vmem [resolvable:$true] %s661_s4 }
  0x40   : > { %s10842_s6 = scalar_lea.vmem %s662_s4, 2304  ;;  %p10850_p8 = scmp.lt.s32.totalorder %s662_s4, %s662_s4 }
  0x41   : > { %p10843_p1 = scmp.ne.s32.totalorder %s662_s4, %s10842_s6  ;;  %p10851_p9 = scmp.lt.s32.totalorder %s10842_s6, %s10842_s6 }
  0x43   : > { %p10845_p4 = pnand %p10843_p1, %p11037_p6  ;;  %p10852_p10 = por %p10851_p9, %p10850_p8 }
  0x44   : > { %10617 = dma.hbm_to_vmem [thread:$0]  (!%p11027_p5), %s12480_s5, 4608, %s606_s28, [#allocation5], %s10881_s0, %s10881_s0, %s10882_s25  }
  0x45   : > { %p10846_p7 = pneg %p10845_p4 }
  0x47   : > { %p10853_p11 = pnand %p10852_p10, %p10846_p7 }
  0x49   : > { %10856 = shalt.err (!%p10853_p11)
}
  0x4a   : > { %10623 = dma.hbm_to_vmem [thread:$0]  (!%p11027_p5), %s12432_s19, 2304, %s662_s4, [#allocation8], %s10881_s0, %s10881_s0, %s10882_s25  }
  0x4b   : > { %694 = sbr.rel (%p11017_p3) target bundleno = 8541 (0x215d), region = 112 }
  0x50   : > { %10862 = dma.done.wait (%p10624_p2), [#allocation3], 36864  }
  0x51   : > { %10864 = vsyncadd (%p10624_p2), [#allocation3], 4294930432 }
  0x52   : > { %10866 = dma.done.wait (%p10624_p2), [#allocation5], 12672  }
  0x53   : > { %10868 = vsyncadd (%p10624_p2), [#allocation5], 4294954624 }
  0x54   : > { %10870 = dma.done.wait (%p10624_p2), [#allocation8], 4608  }
  0x55   : > { %10872 = vsyncadd (%p10624_p2), [#allocation8], 4294962688  ;;  %p774_p3 = scmp.lt.s32.totalorder %s11012_s30, 1  ;;  %v10884_v0 = vmov 0.0   ;;  %v10885_v1 = vmov 0   ;;  %s12481_s0 = sld [smem:[#allocation28_spill]] }
  0x56   : > { %897 = vmatprep.mubr.f32.mxu0 %v10884_v0  ;;  %10651 = vset.pattern.permute.xlu0 %v10885_v1  ;;  %vm828_vm0 = vcmask 1043456   ;;  %s12482_s1 = sld [smem:[#allocation32_spill]]  ;;  %vm815_vm1 = vcmask 31744   ;;  %v1098_v60 = vld [vmem:[#allocation2 + $0xf8] sm:$0xff]  ;;  %vm1311_vm2 = vcmask 261120   ;;  %vm3106_vm3 = vcmask 400384  }
  0x57   : > { %s12517_s30 = smov (!%p774_p3, %s11012_s30), 1  ;;  %10652 = vset.pattern.permute.xlu1 %v10885_v1  ;;  %s12483_s4 = sld [smem:[#allocation31_spill]]  ;;  %v1220_v61 = vld [vmem:[#allocation2 + $0x1f8] sm:$0xff]  ;;  %8752 = vmatprep.subr.mxu1 %v1098_v60  ;;  %v1219_v1 = vld [vmem:[#allocation2 + $0x1f0] sm:$0xff]  ;;  %vm3243_vm4 = vcmask 1040384   ;;  %vm5117_vm5 = vcmask 130048  }
  0x58   : > { %s8750_s24 = sshll.u32 %s12517_s30, 3  ;;  %s12485_s2 = sld [smem:[#allocation33_spill]]  ;;  %v1082_v62 = vld [vmem:[#allocation2 + $0x78] sm:$0xff] }
  0x59   : > { %s12486_s7 = sld [smem:[#allocation34_spill]]  ;;  %v1204_v63 = vld [vmem:[#allocation2 + $0x178] sm:$0xff]  ;;  %8753 = vmatpush3.msra.mxu1 %v1082_v62  ;;  %s8751_s26 = sshll.u32 %s12517_s30, 4 }
  0x5a   : > { %v1086_v60 = vld [vmem:[#allocation2 + $0x98] sm:$0xff]  ;;  %s783_s29 = scalar_lea.vmem %s12436_s23, %s8751_s26 }
  0x5b   : > { %s778_s25 = scalar_lea.vmem %s12481_s0, %s8750_s24  ;;  %v1070_v62 = vld [vmem:[#allocation2 + $0x18] sm:$0xff] }
  0x5c   : > { %v784_v2 = vld [vmem:[%s778_s25] sm:$0xff]  ;;  %v791_v6 = vld [vmem:[%s12482_s1 + $0x10] sm:$0xff]  ;;  %v790_v7 = vld [vmem:[%s12482_s1 + $0x8] sm:$0xff] }
  0x5d   : > { %v814_v3 = vcombine.high %v784_v2, %v784_v2  ;;  %v789_v4 = vld [vmem:[%s12482_s1] sm:$0xff]  ;;  %s12484_s6 = smov %s12483_s4  ;;  %805 = vperm.xlu1 %10652, %v791_v6   ;;  %v792_v8 = vld [vmem:[%s12482_s1 + $0x18] sm:$0xff]  ;;  %v1096_v6 = vld [vmem:[#allocation2 + $0xe8] sm:$0xff] }
  0x5e   : > { %v785_v5 = vld [vmem:[%s12483_s4] sm:$0xff]  ;;  %795 = vperm.xlu0 %10651, %v789_v4   ;;  %v786_v9 = vld [vmem:[%s12484_s6 + $0x8] sm:$0xff]  ;;  %v787_v10 = vld [vmem:[%s12484_s6 + $0x10] sm:$0xff] }
  0x5f   : > { %8485 = vmatprep.subr.msk.mxu0 %vm828_vm0, %v814_v3  ;;  %v788_v11 = vld [vmem:[%s12484_s6 + $0x18] sm:$0xff]  ;;  %v1003_v56 = vld [vmem:[%s12485_s2] sm:$0xff]  ;;  %v1004_v57 = vld [vmem:[%s12485_s2 + $0x8] sm:$0xff] }
  0x60   : > { %8486 = vmatpush1.msk.msra.mxu0 %vm828_vm0, %v784_v2  ;;  %v1036_v58 = vld [vmem:[%s12486_s7 + $0x8] sm:$0xff]  ;;  %v1035_v59 = vld [vmem:[%s12486_s7] sm:$0xff]  ;;  %v1037_v2 = vld [vmem:[%s12486_s7 + $0x10] sm:$0xff] }
  0x61   : > { %8487 = vmatmul.mubr.msk.f32.vlgmr.msra.gmra.mxu0 %vm815_vm1, %v785_v5  ;;  %810 = vperm.xlu1 %10652, %v792_v8   ;;  %v1081_v3 = vld [vmem:[#allocation2 + $0x70] sm:$0xff]  ;;  %v1080_v8 = vld [vmem:[#allocation2 + $0x68] sm:$0xff] }
  0x62   : > { %903 = vmatprep.mubr.f32.mxu0 %v10884_v0  ;;  %800 = vperm.xlu0 %10651, %v790_v7   ;;  %v1203_v4 = vld [vmem:[#allocation2 + $0x170] sm:$0xff]  ;;  %v1218_v7 = vld [vmem:[#allocation2 + $0x1e8] sm:$0xff] }
  0x63   : > { %8796 = vmatprep.subr.mxu0 %v1220_v61  ;;  %v1005_v5 = vld [vmem:[%s12485_s2 + $0x10] sm:$0xff]  ;;  %v1208_v61 = vld [vmem:[#allocation2 + $0x198] sm:$0xff] }
  0x64   : > { %8797 = vmatpush3.msra.mxu0 %v1204_v63  ;;  %v1192_v63 = vld [vmem:[#allocation2 + $0x118] sm:$0xff] }
  0x65   : > { %8488 = vmatmul.mubr.msk.f32.gmra.mxu0 %vm815_vm1, %v786_v9  ;;  %8798 = vmatprep.subr.mxu0 %v1219_v1  ;;  %v1202_v9 = vld [vmem:[#allocation2 + $0x168] sm:$0xff]  ;;  %v1207_v1 = vld [vmem:[#allocation2 + $0x190] sm:$0xff] }
  0x66   : > { %909 = vmatprep.mubr.f32.mxu0 %v10884_v0  ;;  %8799 = vmatpush3.msra.mxu0 %v1203_v4  ;;  %v1084_v4 = vld [vmem:[#allocation2 + $0x88] sm:$0xff] }
  0x67   : > { %8800 = vmatprep.subr.mxu0 %v1218_v7  ;;  %v1190_v7 = vld [vmem:[#allocation2 + $0x108] sm:$0xff] }
  0x68   : > { %8801 = vmatpush3.msra.mxu0 %v1202_v9  ;;  %v1205_v9 = vld [vmem:[#allocation2 + $0x180] sm:$0xff] }
  0x69   : > { %8489 = vmatmul.mubr.msk.f32.gmra.mxu0 %vm815_vm1, %v787_v10  ;;  %v1095_v10 = vld [vmem:[#allocation2 + $0xe0] sm:$0xff] }
  0x6a   : > { %915 = vmatprep.mubr.f32.mxu0 %v10884_v0  ;;  %v1097_v0 = vld [vmem:[#allocation2 + $0xf0] sm:$0xff] }
  0x6b   : > { %8754 = vmatprep.subr.mxu1 %v1097_v0  ;;  %v1085_v0 = vld [vmem:[#allocation2 + $0x90] sm:$0xff] }
  0x6c   : > { %8755 = vmatpush3.msra.mxu1 %v1081_v3  ;;  %v1191_v3 = vld [vmem:[#allocation2 + $0x110] sm:$0xff] }
  0x6d   : > { %8490 = vmatmul.mubr.msk.f32.gmra.mxu0 %vm815_vm1, %v788_v11  ;;  %8756 = vmatprep.subr.mxu1 %v1096_v6  ;;  %v1217_v11 = vld [vmem:[#allocation2 + $0x1e0] sm:$0xff]  ;;  %v1068_v6 = vld [vmem:[#allocation2 + $0x8] sm:$0xff] }
  0x6e   : > { %8757 = vmatpush3.msra.mxu1 %v1080_v8  ;;  %8802 = vmatprep.subr.mxu0 %v1217_v11  ;;  %v1083_v8 = vld [vmem:[#allocation2 + $0x80] sm:$0xff] }
  0x6f   : > { %8758 = vmatprep.subr.mxu1 %v1095_v10  ;;  %v1067_v10 = vld [vmem:[#allocation2] sm:$0xff] }
  0x70   : > { %v1189_v11 = vld [vmem:[#allocation2 + $0x100] sm:$0xff] }
  0xd8   : > { %v806_v22 = vpop.permute.xlu1 %805 }
  0xd9   : > { %v796_v12 = vpop.permute.xlu0 %795 }
  0xdc   : > { %v811_v37 = vpop.permute.xlu1 %810 }
  0xdd   : > { %v801_v17 = vpop.permute.xlu0 %800 }
 0x121   : > { %v899_v13 = vpop.f32.mrf.mxu0 }
 0x122   : > { %v900_v14 = vadd.f32 %v899_v13, %v796_v12  ;;  %v1006_v13 = vld [vmem:[%s12485_s2 + $0x18] sm:$0xff] }
 0x123   : > { %v901_v15 = vpop.f32.mrf.mxu0 }
 0x124   : > { %v902_v16 = vadd.f32 %v901_v15, %v796_v12  ;;  %v11152_v19 = vmax.f32 %v900_v14, 0.0  ;;  %v1038_v12 = vld [vmem:[%s12486_s7 + $0x18] sm:$0xff]  ;;  %v1079_v14 = vld [vmem:[#allocation2 + $0x60] sm:$0xff] }
 0x125   : > { %v905_v18 = vpop.f32.mrf.mxu0  ;;  %v1201_v15 = vld [vmem:[#allocation2 + $0x160] sm:$0xff]  ;;  %8759 = vmatpush3.msra.mxu1 %v1079_v14 }
 0x126   : > { %v11154_v20 = vmax.f32 %v902_v16, 0.0  ;;  %v906_v21 = vadd.f32 %v905_v18, %v801_v17  ;;  %v951_v31 = vmul.f32 %v11152_v19, %v11152_v19  ;;  %v1094_v16 = vld [vmem:[#allocation2 + $0xd8] sm:$0xff]  ;;  %8803 = vmatpush3.msra.mxu0 %v1201_v15 }
 0x127   : > { %v907_v23 = vpop.f32.mrf.mxu0  ;;  %v1078_v18 = vld [vmem:[#allocation2 + $0x58] sm:$0xff]  ;;  %8760 = vmatprep.subr.mxu1 %v1094_v16 }
 0x128   : > { %v908_v24 = vadd.f32 %v907_v23, %v801_v17  ;;  %v930_v25 = vadd.f32 %v11154_v20, %v11152_v19  ;;  %v952_v26 = vmul.f32 %v11154_v20, %v11154_v20  ;;  %v11160_v28 = vmax.f32 %v906_v21, 0.0  ;;  %v1216_v17 = vld [vmem:[#allocation2 + $0x1d8] sm:$0xff]  ;;  %v1093_v23 = vld [vmem:[#allocation2 + $0xd0] sm:$0xff]  ;;  %8761 = vmatpush3.msra.mxu1 %v1078_v18 }
 0x129   : > { %v911_v27 = vpop.f32.mrf.mxu0  ;;  %v1200_v21 = vld [vmem:[#allocation2 + $0x158] sm:$0xff]  ;;  %8804 = vmatprep.subr.mxu0 %v1216_v17  ;;  %8762 = vmatprep.subr.mxu1 %v1093_v23 }
 0x12a   : > { %v11162_v29 = vmax.f32 %v908_v24, 0.0  ;;  %v912_v30 = vadd.f32 %v911_v27, %v806_v22  ;;  %931 = vadd.xlane.f32.xlu0 %v930_v25  ;;  %v959_v35 = vadd.f32 %v952_v26, %v951_v31  ;;  %v953_v42 = vmul.f32 %v11160_v28, %v11160_v28  ;;  %v3074_v24 = vld [vmem:[%s12421_s8] sm:$0xff]  ;;  %v1215_v25 = vld [vmem:[#allocation2 + $0x1d0] sm:$0xff]  ;;  %8805 = vmatpush3.msra.mxu0 %v1200_v21  ;;  %v1214_v31 = vld [vmem:[#allocation2 + $0x1c8] sm:$0xff] }
 0x12b   : > { %v913_v32 = vpop.f32.mrf.mxu0  ;;  %v1077_v26 = vld [vmem:[#allocation2 + $0x50] sm:$0xff]  ;;  %8806 = vmatprep.subr.mxu0 %v1215_v25 }
 0x12c   : > { %v914_v33 = vadd.f32 %v913_v32, %v806_v22  ;;  %v933_v34 = vadd.f32 %v11162_v29, %v11160_v28  ;;  %v954_v36 = vmul.f32 %v11162_v29, %v11162_v29  ;;  %v11170_v39 = vmax.f32 %v912_v30, 0.0  ;;  %v3075_v22 = vld [vmem:[%s12421_s8 + $0x8] sm:$0xff]  ;;  %v1199_v27 = vld [vmem:[#allocation2 + $0x150] sm:$0xff]  ;;  %v3077_v32 = vld [vmem:[%s12421_s8 + $0x18] sm:$0xff]  ;;  %8763 = vmatpush3.msra.mxu1 %v1077_v26 }
 0x12d   : > { %v917_v38 = vpop.f32.mrf.mxu0  ;;  %v1092_v30 = vld [vmem:[#allocation2 + $0xc8] sm:$0xff]  ;;  %8807 = vmatpush3.msra.mxu0 %v1199_v27 }
 0x12e   : > { %v11172_v40 = vmax.f32 %v914_v33, 0.0  ;;  %v918_v41 = vadd.f32 %v917_v38, %v811_v37  ;;  %934 = vadd.xlane.f32.xlu1 %v933_v34  ;;  %960 = vadd.xlane.f32.xlu0 %v959_v35  ;;  %v962_v45 = vadd.f32 %v954_v36, %v953_v42  ;;  %v955_v50 = vmul.f32 %v11170_v39, %v11170_v39  ;;  %v1076_v33 = vld [vmem:[#allocation2 + $0x48] sm:$0xff]  ;;  %v3076_v34 = vld [vmem:[%s12421_s8 + $0x10] sm:$0xff]  ;;  %v1091_v36 = vld [vmem:[#allocation2 + $0xc0] sm:$0xff] }
 0x12f   : > { %v919_v43 = vpop.f32.mrf.mxu0  ;;  %v1198_v35 = vld [vmem:[#allocation2 + $0x148] sm:$0xff]  ;;  %8764 = vmatprep.subr.mxu1 %v1092_v30  ;;  %8808 = vmatprep.subr.mxu0 %v1214_v31  ;;  %v1075_v38 = vld [vmem:[#allocation2 + $0x40] sm:$0xff]  ;;  %v1090_v42 = vld [vmem:[#allocation2 + $0xb8] sm:$0xff] }
 0x130   : > { %v920_v44 = vadd.f32 %v919_v43, %v811_v37  ;;  %v936_v46 = vadd.f32 %v11172_v40, %v11170_v39  ;;  %v956_v47 = vmul.f32 %v11172_v40, %v11172_v40  ;;  %v11180_v48 = vmax.f32 %v918_v41, 0.0  ;;  %v1213_v37 = vld [vmem:[#allocation2 + $0x1c0] sm:$0xff]  ;;  %8765 = vmatpush3.msra.mxu1 %v1076_v33  ;;  %8809 = vmatpush3.msra.mxu0 %v1198_v35  ;;  %v1212_v43 = vld [vmem:[#allocation2 + $0x1b8] sm:$0xff] }
 0x131   : > { %v1197_v41 = vld [vmem:[#allocation2 + $0x140] sm:$0xff]  ;;  %8766 = vmatprep.subr.mxu1 %v1091_v36  ;;  %8810 = vmatprep.subr.mxu0 %v1213_v37 }
 0x132   : > { %v11182_v49 = vmax.f32 %v920_v44, 0.0  ;;  %963 = vadd.xlane.f32.xlu1 %v962_v45  ;;  %937 = vadd.xlane.f32.xlu0 %v936_v46  ;;  %v965_v51 = vadd.f32 %v956_v47, %v955_v50  ;;  %v957_v54 = vmul.f32 %v11180_v48, %v11180_v48  ;;  %v1074_v44 = vld [vmem:[#allocation2 + $0x38] sm:$0xff]  ;;  %v1089_v46 = vld [vmem:[#allocation2 + $0xb0] sm:$0xff] }
 0x133   : > { %v1196_v45 = vld [vmem:[#allocation2 + $0x138] sm:$0xff]  ;;  %8767 = vmatpush3.msra.mxu1 %v1075_v38  ;;  %8811 = vmatpush3.msra.mxu0 %v1197_v41  ;;  %v1211_v47 = vld [vmem:[#allocation2 + $0x1b0] sm:$0xff] }
 0x134   : > { %v939_v52 = vadd.f32 %v11182_v49, %v11180_v48  ;;  %v958_v53 = vmul.f32 %v11182_v49, %v11182_v49  ;;  %8768 = vmatprep.subr.mxu1 %v1090_v42  ;;  %8812 = vmatprep.subr.mxu0 %v1212_v43  ;;  %v1073_v50 = vld [vmem:[#allocation2 + $0x30] sm:$0xff] }
 0x135   : > { %8769 = vmatpush3.msra.mxu1 %v1074_v44  ;;  %8813 = vmatpush3.msra.mxu0 %v1196_v45 }
 0x136   : > { %966 = vadd.xlane.f32.xlu1 %v965_v51  ;;  %940 = vadd.xlane.f32.xlu0 %v939_v52  ;;  %v968_v55 = vadd.f32 %v958_v53, %v957_v54  ;;  %v1195_v51 = vld [vmem:[#allocation2 + $0x130] sm:$0xff]  ;;  %v1088_v52 = vld [vmem:[#allocation2 + $0xa8] sm:$0xff] }
 0x137   : > { %v1210_v53 = vld [vmem:[#allocation2 + $0x1a8] sm:$0xff]  ;;  %8770 = vmatprep.subr.mxu1 %v1089_v46  ;;  %8814 = vmatprep.subr.mxu0 %v1211_v47 }
 0x138   : > { %v1072_v54 = vld [vmem:[#allocation2 + $0x28] sm:$0xff]  ;;  %8771 = vmatpush3.msra.mxu1 %v1073_v50  ;;  %8815 = vmatpush3.msra.mxu0 %v1195_v51 }
 0x139   : > { %8772 = vmatprep.subr.mxu1 %v1088_v52  ;;  %8816 = vmatprep.subr.mxu0 %v1210_v53 }
 0x13a   : > { %969 = vadd.xlane.f32.xlu0 %v968_v55  ;;  %v1194_v55 = vld [vmem:[#allocation2 + $0x128] sm:$0xff]  ;;  %8773 = vmatpush3.msra.mxu1 %v1072_v54 }
 0x13b   : > { %8817 = vmatpush3.msra.mxu0 %v1194_v55 }
 0x147   : > { %1009 = vperm.xlu1 %10652, %v1003_v56   ;;  %v1087_v56 = vld [vmem:[#allocation2 + $0xa0] sm:$0xff] }
 0x148   : > { %8774 = vmatprep.subr.mxu1 %v1087_v56 }
 0x14b   : > { %1014 = vperm.xlu1 %10652, %v1004_v57   ;;  %v1209_v57 = vld [vmem:[#allocation2 + $0x1a0] sm:$0xff] }
 0x14c   : > { %8818 = vmatprep.subr.mxu0 %v1209_v57 }
 0x14f   : > { %1046 = vperm.xlu1 %10652, %v1036_v58   ;;  %v1071_v58 = vld [vmem:[#allocation2 + $0x20] sm:$0xff] }
 0x150   : > { %1041 = vperm.xlu0 %10651, %v1035_v59   ;;  %v1193_v59 = vld [vmem:[#allocation2 + $0x120] sm:$0xff]  ;;  %8775 = vmatpush3.msra.mxu1 %v1071_v58 }
 0x151   : > { %8819 = vmatpush3.msra.mxu0 %v1193_v59  ;;  %8776 = vmatprep.subr.mxu1 %v1086_v60 }
 0x152   : > { %8820 = vmatprep.subr.mxu0 %v1208_v61  ;;  %8777 = vmatpush3.msra.mxu1 %v1070_v62 }
 0x153   : > { %1051 = vperm.xlu1 %10652, %v1037_v2   ;;  %v1069_v2 = vld [vmem:[#allocation2 + $0x10] sm:$0xff]  ;;  %8821 = vmatpush3.msra.mxu0 %v1192_v63 }
 0x154   : > { %1019 = vperm.xlu0 %10651, %v1005_v5   ;;  %v1206_v5 = vld [vmem:[#allocation2 + $0x188] sm:$0xff]  ;;  %8778 = vmatprep.subr.mxu1 %v1085_v0 }
 0x155   : > { %8822 = vmatprep.subr.mxu0 %v1207_v1  ;;  %8779 = vmatpush3.msra.mxu1 %v1069_v2 }
 0x156   : > { %8823 = vmatpush3.msra.mxu0 %v1191_v3  ;;  %8780 = vmatprep.subr.mxu1 %v1084_v4 }
 0x157   : > { %1056 = vperm.xlu1 %10652, %v1038_v12   ;;  %8824 = vmatprep.subr.mxu0 %v1206_v5 }
 0x158   : > { %1024 = vperm.xlu0 %10651, %v1006_v13   ;;  %8781 = vmatpush3.msra.mxu1 %v1068_v6 }
 0x159   : > { %8825 = vmatpush3.msra.mxu0 %v1190_v7  ;;  %8782 = vmatprep.subr.mxu1 %v1083_v8 }
 0x15a   : > { %8826 = vmatprep.subr.mxu0 %v1205_v9  ;;  %8783 = vmatpush3.msra.mxu1 %v1067_v10 }
 0x15b   : > { %3085 = vperm.xlu1 %10652, %v3075_v22   ;;  %8827 = vmatpush3.msra.mxu0 %v1189_v11 }
 0x15c   : > { %3080 = vperm.xlu0 %10651, %v3074_v24  }
 0x15f   : > { %3095 = vperm.xlu1 %10652, %v3077_v32  }
 0x160   : > { %3090 = vperm.xlu0 %10651, %v3076_v34  }
 0x1b3   : > { %v932_v12 = vpop.xlane.xlu0 %931 }
 0x1b7   : > { %v935_v13 = vpop.xlane.xlu1 %934  ;;  %v961_v14 = vpop.xlane.xlu0 %960 }
 0x1b8   : > { %v942_v17 = vadd.f32 %v935_v13, %v932_v12 }
 0x1bb   : > { %v964_v15 = vpop.xlane.xlu1 %963  ;;  %v938_v16 = vpop.xlane.xlu0 %937 }
 0x1bc   : > { %v943_v18 = vadd.f32 %v942_v17, %v938_v16  ;;  %v971_v23 = vadd.f32 %v964_v15, %v961_v14 }
 0x1bf   : > { %v967_v21 = vpop.xlane.xlu1 %966  ;;  %v941_v22 = vpop.xlane.xlu0 %940 }
 0x1c0   : > { %v944_v24 = vadd.f32 %v943_v18, %v941_v22  ;;  %v972_v25 = vadd.f32 %v971_v23, %v967_v21  ;;  %v1307_v22 = vld [vmem:[#allocation6 + $0x20] sm:$0xff] }
 0x1c1   : > { %v1184_v23 = vld [vmem:[#allocation6] sm:$0xff] }
 0x1c2   : > { %v945_v26 = vrot.slane %v944_v24, 4 }
 0x1c3   : > { %v970_v27 = vpop.xlane.xlu0 %969  ;;  %v1010_v51 = vpop.permute.xlu1 %1009 }
 0x1c4   : > { %v946_v30 = vadd.f32 %v945_v26, %v944_v24  ;;  %v973_v31 = vadd.f32 %v972_v25, %v970_v27 }
 0x1c6   : > { %v947_v32 = vrot.slane %v946_v30, 2  ;;  %v974_v33 = vrot.slane %v973_v31, 4 }
 0x1c7   : > { %v1015_v52 = vpop.permute.xlu1 %1014 }
 0x1c8   : > { %v948_v34 = vadd.f32 %v947_v32, %v946_v30  ;;  %v975_v35 = vadd.f32 %v974_v33, %v973_v31 }
 0x1ca   : > { %v949_v36 = vrot.slane %v948_v34, 1  ;;  %v976_v37 = vrot.slane %v975_v35, 2 }
 0x1cb   : > { %v1042_v53 = vpop.permute.xlu0 %1041  ;;  %v1047_v0 = vpop.permute.xlu1 %1046 }
 0x1cc   : > { %v950_v38 = vadd.f32 %v949_v36, %v948_v34  ;;  %v977_v41 = vadd.f32 %v976_v37, %v975_v35 }
 0x1ce   : > { %v981_v42 = vmul.f32 0.00012207031, %v950_v38  ;;  %v978_v43 = vrot.slane %v977_v41, 1 }
 0x1cf   : > { %v1020_v5 = vpop.permute.xlu0 %1019  ;;  %v1052_v10 = vpop.permute.xlu1 %1051 }
 0x1d0   : > { %v979_v44 = vadd.f32 %v978_v43, %v977_v41  ;;  %v983_v45 = vmul.f32 %v981_v42, %v981_v42  ;;  %v990_v54 = vsub.f32 %v11162_v29, %v981_v42  ;;  %v987_v55 = vsub.f32 %v11152_v19, %v981_v42 }
 0x1d1   : > { %v988_v56 = vsub.f32 %v11154_v20, %v981_v42  ;;  %v989_v58 = vsub.f32 %v11160_v28, %v981_v42  ;;  %v992_v62 = vsub.f32 %v11172_v40, %v981_v42  ;;  %v991_v29 = vsub.f32 %v11170_v39, %v981_v42 }
 0x1d2   : > { %v982_v46 = vmul.f32 0.00012207031, %v979_v44  ;;  %v994_v28 = vsub.f32 %v11182_v49, %v981_v42  ;;  %v993_v39 = vsub.f32 %v11180_v48, %v981_v42 }
 0x1d3   : > { %v1025_v13 = vpop.permute.xlu0 %1024  ;;  %v1057_v16 = vpop.permute.xlu1 %1056 }
 0x1d4   : > { %v984_v47 = vsub.f32 %v982_v46, %v983_v45 }
 0x1d6   : > { %v985_v50 = vadd.f32 1e-05, %v984_v47 }
 0x1d8   : > { %10654 = vrsqrt.f32 %v985_v50 }
 0x1e5   : > { %v10655_v57 = vpop.eup %10654 }
 0x1e6   : > { %v998_v59 = vmul.f32 %v10655_v57, %v990_v54  ;;  %v995_v60 = vmul.f32 %v10655_v57, %v987_v55  ;;  %v996_v61 = vmul.f32 %v10655_v57, %v988_v56  ;;  %v997_v63 = vmul.f32 %v10655_v57, %v989_v58  ;;  %v1308_v54 = vld [vmem:[#allocation6 + $0x28] sm:$0xff]  ;;  %v1538_v56 = vld [vmem:[#allocation2 + $0x2f8] sm:$0xff] }
 0x1e7   : > { %v1000_v4 = vmul.f32 %v10655_v57, %v992_v62  ;;  %v999_v7 = vmul.f32 %v10655_v57, %v991_v29  ;;  %v1002_v9 = vmul.f32 %v10655_v57, %v994_v28  ;;  %v1001_v12 = vmul.f32 %v10655_v57, %v993_v39  ;;  %v1185_v55 = vld [vmem:[#allocation6 + $0x8] sm:$0xff]  ;;  %v1309_v57 = vld [vmem:[#allocation6 + $0x30] sm:$0xff]  ;;  %v1522_v58 = vld [vmem:[#allocation2 + $0x278] sm:$0xff] }
 0x1e8   : > { %v1030_v1 = vmul.f32 %v1015_v52, %v998_v59  ;;  %v1027_v2 = vmul.f32 %v1010_v51, %v995_v60  ;;  %v1028_v3 = vmul.f32 %v1010_v51, %v996_v61  ;;  %v1029_v6 = vmul.f32 %v1015_v52, %v997_v63  ;;  %v1186_v59 = vld [vmem:[#allocation6 + $0x10] sm:$0xff]  ;;  %v1537_v60 = vld [vmem:[#allocation2 + $0x2f0] sm:$0xff]  ;;  %v1518_v29 = vld [vmem:[#allocation2 + $0x258] sm:$0xff] }
 0x1e9   : > { %v1032_v40 = vmul.f32 %v1020_v5, %v1000_v4  ;;  %v1031_v11 = vmul.f32 %v1020_v5, %v999_v7  ;;  %v1034_v15 = vmul.f32 %v1025_v13, %v1002_v9  ;;  %v1033_v17 = vmul.f32 %v1025_v13, %v1001_v12  ;;  %v1521_v61 = vld [vmem:[#allocation2 + $0x270] sm:$0xff]  ;;  %v1534_v4 = vld [vmem:[#allocation2 + $0x2d8] sm:$0xff]  ;;  %v1516_v7 = vld [vmem:[#allocation2 + $0x248] sm:$0xff] }
 0x1ea   : > { %v11234_v19 = vadd.f32 %v1042_v53, %v1027_v2  ;;  %v11236_v20 = vadd.f32 %v1042_v53, %v1028_v3  ;;  %v11239_v8 = vadd.f32 %v1047_v0, %v1030_v1  ;;  %v11248_v49 = vadd.f32 %v1047_v0, %v1029_v6  ;;  %v1187_v62 = vld [vmem:[#allocation6 + $0x18] sm:$0xff]  ;;  %v1536_v0 = vld [vmem:[#allocation2 + $0x2e8] sm:$0xff]  ;;  %v1535_v2 = vld [vmem:[#allocation2 + $0x2e0] sm:$0xff] }
 0x1eb   : > { %v11250_v14 = vadd.f32 %v1052_v10, %v1032_v40  ;;  %v11256_v48 = vadd.f32 %v1052_v10, %v1031_v11  ;;  %v11258_v18 = vadd.f32 %v1057_v16, %v1034_v15  ;;  %v11264_v21 = vadd.f32 %v1057_v16, %v1033_v17  ;;  %v1310_v63 = vld [vmem:[#allocation6 + $0x38] sm:$0xff]  ;;  %v1520_v1 = vld [vmem:[#allocation2 + $0x268] sm:$0xff]  ;;  %v1519_v3 = vld [vmem:[#allocation2 + $0x260] sm:$0xff] }
 0x1ec   : > { %1163 = vmatprep.mubr.f32.mxu1 %v11236_v20  ;;  %1285 = vmatprep.mubr.f32.mxu0 %v11236_v20  ;;  %v1533_v5 = vld [vmem:[#allocation2 + $0x2d0] sm:$0xff]  ;;  %v1532_v6 = vld [vmem:[#allocation2 + $0x2c8] sm:$0xff]  ;;  %v1531_v40 = vld [vmem:[#allocation2 + $0x2c0] sm:$0xff] }
 0x1ed   : > { %1164 = vmatmul.mubr.f32.vlgmr.msra.gmra.mxu1 %v11234_v19  ;;  %1286 = vmatmul.mubr.f32.vlgmr.msra.gmra.mxu0 %v11234_v19  ;;  %v1517_v28 = vld [vmem:[#allocation2 + $0x250] sm:$0xff]  ;;  %v1515_v9 = vld [vmem:[#allocation2 + $0x240] sm:$0xff]  ;;  %v1530_v10 = vld [vmem:[#allocation2 + $0x2b8] sm:$0xff] }
 0x1ee   : > { %1168 = vmatprep.mubr.f32.mxu1 %v11239_v8  ;;  %1290 = vmatprep.mubr.f32.mxu0 %v11239_v8  ;;  %v1514_v39 = vld [vmem:[#allocation2 + $0x238] sm:$0xff]  ;;  %v1529_v11 = vld [vmem:[#allocation2 + $0x2b0] sm:$0xff]  ;;  %v1528_v13 = vld [vmem:[#allocation2 + $0x2a8] sm:$0xff] }
 0x1ef   : > { %v1513_v12 = vld [vmem:[#allocation2 + $0x230] sm:$0xff]  ;;  %v1512_v15 = vld [vmem:[#allocation2 + $0x228] sm:$0xff]  ;;  %v1527_v16 = vld [vmem:[#allocation2 + $0x2a0] sm:$0xff] }
 0x1f0   : > { %v1511_v17 = vld [vmem:[#allocation2 + $0x220] sm:$0xff] }
 0x1f1   : > { %1169 = vmatmul.mubr.f32.gmra.mxu1 %v11248_v49  ;;  %1291 = vmatmul.mubr.f32.gmra.mxu0 %v11248_v49 }
 0x1f2   : > { %1173 = vmatprep.mubr.f32.mxu1 %v11250_v14  ;;  %1295 = vmatprep.mubr.f32.mxu0 %v11250_v14 }
 0x1f5   : > { %1174 = vmatmul.mubr.f32.gmra.mxu1 %v11256_v48  ;;  %1296 = vmatmul.mubr.f32.gmra.mxu0 %v11256_v48 }
 0x1f6   : > { %1178 = vmatprep.mubr.f32.mxu1 %v11258_v18  ;;  %1300 = vmatprep.mubr.f32.mxu0 %v11258_v18 }
 0x1f9   : > { %1179 = vmatmul.mubr.f32.gmra.mxu1 %v11264_v21  ;;  %1301 = vmatmul.mubr.f32.gmra.mxu0 %v11264_v21 }
 0x1fa   : > { %9669 = vmatprep.mubr.msk.f32.mxu1 %vm1311_vm2, %v1307_v22  ;;  %9683 = vmatprep.mubr.msk.f32.mxu0 %vm1311_vm2, %v1184_v23  ;;  %v1526_v22 = vld [vmem:[#allocation2 + $0x298] sm:$0xff] }
 0x1fb   : > { %v1510_v23 = vld [vmem:[#allocation2 + $0x218] sm:$0xff] }
 0x2ad   : > { %v8784_v24 = vpop.f32.mrf.mxu1  ;;  %v8828_v25 = vpop.f32.mrf.mxu0 }
 0x2af   : > { %v8785_v26 = vpop.f32.mrf.mxu1  ;;  %v8829_v27 = vpop.f32.mrf.mxu0 }
 0x2b0   : > { %v8786_v52 = vadd.f32 %v8785_v26, %v8784_v24  ;;  %v8830_v53 = vadd.f32 %v8829_v27, %v8828_v25  ;;  %v1525_v24 = vld [vmem:[#allocation2 + $0x290] sm:$0xff]  ;;  %v1524_v26 = vld [vmem:[#allocation2 + $0x288] sm:$0xff] }
 0x2b1   : > { %v8787_v30 = vpop.f32.mrf.mxu1  ;;  %v8831_v31 = vpop.f32.mrf.mxu0  ;;  %v1509_v25 = vld [vmem:[#allocation2 + $0x210] sm:$0xff]  ;;  %v1508_v27 = vld [vmem:[#allocation2 + $0x208] sm:$0xff] }
 0x2b3   : > { %v8788_v32 = vpop.f32.mrf.mxu1  ;;  %v8832_v33 = vpop.f32.mrf.mxu0 }
 0x2b4   : > { %v8789_v50 = vadd.f32 %v8788_v32, %v8787_v30  ;;  %v8833_v51 = vadd.f32 %v8832_v33, %v8831_v31  ;;  %v1523_v30 = vld [vmem:[#allocation2 + $0x280] sm:$0xff]  ;;  %v1625_v32 = vld [vmem:[#allocation6 + $0x40] sm:$0xff] }
 0x2b5   : > { %v8790_v34 = vpop.f32.mrf.mxu1  ;;  %v8834_v35 = vpop.f32.mrf.mxu0  ;;  %v1507_v31 = vld [vmem:[#allocation2 + $0x200] sm:$0xff] }
 0x2b7   : > { %v8791_v36 = vpop.f32.mrf.mxu1  ;;  %v8835_v37 = vpop.f32.mrf.mxu0 }
 0x2b8   : > { %v8792_v46 = vadd.f32 %v8791_v36, %v8790_v34  ;;  %v8836_v47 = vadd.f32 %v8835_v37, %v8834_v35 }
 0x2b9   : > { %v8793_v38 = vpop.f32.mrf.mxu1  ;;  %v8837_v41 = vpop.f32.mrf.mxu0 }
 0x2bb   : > { %v8794_v42 = vpop.f32.mrf.mxu1  ;;  %v8838_v43 = vpop.f32.mrf.mxu0 }
 0x2bc   : > { %v8795_v44 = vadd.f32 %v8794_v42, %v8793_v38  ;;  %v8839_v45 = vadd.f32 %v8838_v43, %v8837_v41 }
 0x2be   : > { %9661 = vmatprep.subr.mxu1 %v8839_v45  ;;  %9675 = vmatprep.subr.mxu0 %v8795_v44 }
 0x2bf   : > { %9662 = vmatpush3.msra.mxu1 %v8839_v45  ;;  %9676 = vmatpush3.msra.mxu0 %v8795_v44 }
 0x2c0   : > { %9663 = vmatprep.subr.mxu1 %v8836_v47  ;;  %9677 = vmatprep.subr.mxu0 %v8792_v46 }
 0x2c1   : > { %9664 = vmatpush3.msra.mxu1 %v8836_v47  ;;  %9678 = vmatpush3.msra.mxu0 %v8792_v46 }
 0x2c2   : > { %9665 = vmatprep.subr.mxu1 %v8833_v51  ;;  %9679 = vmatprep.subr.mxu0 %v8789_v50 }
 0x2c3   : > { %9666 = vmatpush3.msra.mxu1 %v8833_v51  ;;  %9680 = vmatpush3.msra.mxu0 %v8789_v50 }
 0x2c4   : > { %9667 = vmatprep.subr.mxu1 %v8830_v53  ;;  %9681 = vmatprep.subr.mxu0 %v8786_v52 }
 0x2c5   : > { %9668 = vmatpush3.msra.mxu1 %v8830_v53  ;;  %9682 = vmatpush3.msra.mxu0 %v8786_v52 }
 0x2c6   : > { %9670 = vmatmul.mubr.msk.f32.vlgmr.msra.gmra.mxu1 %vm1311_vm2, %v1308_v54  ;;  %9684 = vmatmul.mubr.msk.f32.vlgmr.msra.gmra.mxu0 %vm1311_vm2, %v1185_v55 }
 0x2c7   : > { %8856 = vmatprep.subr.mxu1 %v1538_v56  ;;  %9672 = vmatprep.mubr.msk.f32.mxu1 %vm1311_vm2, %v1309_v57 }
 0x2c8   : > { %8857 = vmatpush3.msra.mxu1 %v1522_v58  ;;  %9686 = vmatprep.mubr.msk.f32.mxu0 %vm1311_vm2, %v1186_v59  ;;  %v1626_v58 = vld [vmem:[#allocation6 + $0x48] sm:$0xff]  ;;  %v1762_v59 = vld [vmem:[#allocation2 + $0x3f8] sm:$0xff] }
 0x2c9   : > { %8858 = vmatprep.subr.mxu1 %v1537_v60  ;;  %v1746_v60 = vld [vmem:[#allocation2 + $0x378] sm:$0xff] }
 0x2ca   : > { %8859 = vmatpush3.msra.mxu1 %v1521_v61  ;;  %9687 = vmatmul.mubr.msk.f32.gmra.mxu0 %vm1311_vm2, %v1187_v62  ;;  %v1627_v61 = vld [vmem:[#allocation6 + $0x50] sm:$0xff]  ;;  %v1761_v62 = vld [vmem:[#allocation2 + $0x3f0] sm:$0xff] }
 0x2cb   : > { %9673 = vmatmul.mubr.msk.f32.gmra.mxu1 %vm1311_vm2, %v1310_v63  ;;  %8860 = vmatprep.subr.mxu1 %v1536_v0  ;;  %v1745_v63 = vld [vmem:[#allocation2 + $0x370] sm:$0xff] }
 0x2cc   : > { %8861 = vmatpush3.msra.mxu1 %v1520_v1  ;;  %1603 = vmatprep.mubr.f32.mxu1 %v11236_v20  ;;  %v1628_v0 = vld [vmem:[#allocation6 + $0x58] sm:$0xff]  ;;  %v1760_v1 = vld [vmem:[#allocation2 + $0x3e8] sm:$0xff] }
 0x2cd   : > { %8862 = vmatprep.subr.mxu1 %v1535_v2  ;;  %9697 = vmatprep.mubr.msk.f32.mxu0 %vm1311_vm2, %v1625_v32  ;;  %v1744_v2 = vld [vmem:[#allocation2 + $0x368] sm:$0xff]  ;;  %v1731_v32 = vld [vmem:[#allocation2 + $0x300] sm:$0xff] }
 0x2ce   : > { %8863 = vmatpush3.msra.mxu1 %v1519_v3  ;;  %v1759_v3 = vld [vmem:[#allocation2 + $0x3e0] sm:$0xff] }
 0x2cf   : > { %8864 = vmatprep.subr.mxu1 %v1534_v4  ;;  %v1743_v4 = vld [vmem:[#allocation2 + $0x360] sm:$0xff] }
 0x2d0   : > { %8865 = vmatpush3.msra.mxu1 %v1518_v29  ;;  %v1758_v29 = vld [vmem:[#allocation2 + $0x3d8] sm:$0xff] }
 0x2d1   : > { %8866 = vmatprep.subr.mxu1 %v1533_v5  ;;  %v1742_v5 = vld [vmem:[#allocation2 + $0x358] sm:$0xff] }
 0x2d2   : > { %8867 = vmatpush3.msra.mxu1 %v1517_v28  ;;  %v1757_v28 = vld [vmem:[#allocation2 + $0x3d0] sm:$0xff] }
 0x2d3   : > { %8868 = vmatprep.subr.mxu1 %v1532_v6  ;;  %v1741_v6 = vld [vmem:[#allocation2 + $0x350] sm:$0xff] }
 0x2d4   : > { %8869 = vmatpush3.msra.mxu1 %v1516_v7  ;;  %v1756_v7 = vld [vmem:[#allocation2 + $0x3c8] sm:$0xff] }
 0x2d5   : > { %8870 = vmatprep.subr.mxu1 %v1531_v40  ;;  %v1740_v40 = vld [vmem:[#allocation2 + $0x348] sm:$0xff] }
 0x2d6   : > { %8871 = vmatpush3.msra.mxu1 %v1515_v9  ;;  %v1755_v9 = vld [vmem:[#allocation2 + $0x3c0] sm:$0xff] }
 0x2d7   : > { %8872 = vmatprep.subr.mxu1 %v1530_v10  ;;  %v1739_v10 = vld [vmem:[#allocation2 + $0x340] sm:$0xff] }
 0x2d8   : > { %8873 = vmatpush3.msra.mxu1 %v1514_v39  ;;  %v1754_v39 = vld [vmem:[#allocation2 + $0x3b8] sm:$0xff] }
 0x2d9   : > { %8874 = vmatprep.subr.mxu1 %v1529_v11  ;;  %v1738_v11 = vld [vmem:[#allocation2 + $0x338] sm:$0xff] }
 0x2da   : > { %8875 = vmatpush3.msra.mxu1 %v1513_v12  ;;  %v1753_v12 = vld [vmem:[#allocation2 + $0x3b0] sm:$0xff] }
 0x2db   : > { %8876 = vmatprep.subr.mxu1 %v1528_v13  ;;  %v1737_v13 = vld [vmem:[#allocation2 + $0x330] sm:$0xff] }
 0x2dc   : > { %8877 = vmatpush3.msra.mxu1 %v1512_v15  ;;  %v1752_v15 = vld [vmem:[#allocation2 + $0x3a8] sm:$0xff] }
 0x2dd   : > { %8878 = vmatprep.subr.mxu1 %v1527_v16  ;;  %v1736_v16 = vld [vmem:[#allocation2 + $0x328] sm:$0xff] }
 0x2de   : > { %8879 = vmatpush3.msra.mxu1 %v1511_v17  ;;  %v1751_v17 = vld [vmem:[#allocation2 + $0x3a0] sm:$0xff] }
 0x2df   : > { %8880 = vmatprep.subr.mxu1 %v1526_v22  ;;  %v1735_v22 = vld [vmem:[#allocation2 + $0x320] sm:$0xff] }
 0x2e0   : > { %8881 = vmatpush3.msra.mxu1 %v1510_v23  ;;  %v1750_v23 = vld [vmem:[#allocation2 + $0x398] sm:$0xff] }
 0x2e1   : > { %8882 = vmatprep.subr.mxu1 %v1525_v24  ;;  %v1734_v24 = vld [vmem:[#allocation2 + $0x318] sm:$0xff] }
 0x2e2   : > { %8883 = vmatpush3.msra.mxu1 %v1509_v25  ;;  %v1749_v25 = vld [vmem:[#allocation2 + $0x390] sm:$0xff] }
 0x2e3   : > { %8884 = vmatprep.subr.mxu1 %v1524_v26  ;;  %v1733_v26 = vld [vmem:[#allocation2 + $0x310] sm:$0xff] }
 0x2e4   : > { %8885 = vmatpush3.msra.mxu1 %v1508_v27  ;;  %v1748_v27 = vld [vmem:[#allocation2 + $0x388] sm:$0xff] }
 0x2e5   : > { %8886 = vmatprep.subr.mxu1 %v1523_v30  ;;  %v1732_v30 = vld [vmem:[#allocation2 + $0x308] sm:$0xff] }
 0x2e6   : > { %8887 = vmatpush3.msra.mxu1 %v1507_v31  ;;  %v1747_v31 = vld [vmem:[#allocation2 + $0x380] sm:$0xff] }
 0x2e7   : > { %1604 = vmatmul.mubr.f32.vlgmr.msra.gmra.mxu1 %v11234_v19 }
 0x2e8   : > { %1608 = vmatprep.mubr.f32.mxu1 %v11239_v8 }
 0x2eb   : > { %1609 = vmatmul.mubr.f32.gmra.mxu1 %v11248_v49 }
 0x2ec   : > { %1613 = vmatprep.mubr.f32.mxu1 %v11250_v14 }
 0x2ef   : > { %1614 = vmatmul.mubr.f32.gmra.mxu1 %v11256_v48 }
 0x2f0   : > { %1618 = vmatprep.mubr.f32.mxu1 %v11258_v18 }
 0x2f3   : > { %1619 = vmatmul.mubr.f32.gmra.mxu1 %v11264_v21 }
 0x386   : > { %v9671_v33 = vpop.f32.mrf.mxu1  ;;  %v9685_v34 = vpop.f32.mrf.mxu0 }
 0x387   : > { %v11285_v35 = vadd.f32 %v9685_v34, %v9671_v33  ;;  %v1986_v33 = vld [vmem:[#allocation2 + $0x4f8] sm:$0xff] }
 0x388   : > { %v11287_v36 = vpop.f32.mrf.mxu1  ;;  %v11289_v37 = vpop.f32.mrf.mxu0  ;;  %v1970_v34 = vld [vmem:[#allocation2 + $0x478] sm:$0xff] }
 0x38a   : > { %v9688_v41 = vpop.f32.mrf.mxu0 }
 0x38b   : > { %v9674_v38 = vpop.f32.mrf.mxu1 }
 0x38c   : > { %v11291_v42 = vadd.f32 %v9688_v41, %v9674_v38  ;;  %v1985_v38 = vld [vmem:[#allocation2 + $0x4f0] sm:$0xff] }
 0x38d   : > { %v11293_v43 = vpop.f32.mrf.mxu1  ;;  %v1969_v41 = vld [vmem:[#allocation2 + $0x470] sm:$0xff] }
 0x3a7   : > { %v8888_v44 = vpop.f32.mrf.mxu1 }
 0x3a9   : > { %v8889_v45 = vpop.f32.mrf.mxu1 }
 0x3aa   : > { %v8890_v57 = vadd.f32 %v8889_v45, %v8888_v44  ;;  %v1984_v44 = vld [vmem:[#allocation2 + $0x4e8] sm:$0xff] }
 0x3ab   : > { %v8891_v46 = vpop.f32.mrf.mxu1  ;;  %v1968_v45 = vld [vmem:[#allocation2 + $0x468] sm:$0xff] }
 0x3ad   : > { %v8892_v47 = vpop.f32.mrf.mxu1 }
 0x3ae   : > { %v8893_v56 = vadd.f32 %v8892_v47, %v8891_v46  ;;  %v1983_v46 = vld [vmem:[#allocation2 + $0x4e0] sm:$0xff] }
 0x3af   : > { %v8894_v50 = vpop.f32.mrf.mxu1  ;;  %v1967_v47 = vld [vmem:[#allocation2 + $0x460] sm:$0xff] }
 0x3b1   : > { %v8895_v51 = vpop.f32.mrf.mxu1 }
 0x3b2   : > { %v8896_v55 = vadd.f32 %v8895_v51, %v8894_v50  ;;  %v1982_v50 = vld [vmem:[#allocation2 + $0x4d8] sm:$0xff] }
 0x3b3   : > { %v8897_v52 = vpop.f32.mrf.mxu1  ;;  %v1966_v51 = vld [vmem:[#allocation2 + $0x458] sm:$0xff] }
 0x3b5   : > { %v8898_v53 = vpop.f32.mrf.mxu1 }
 0x3b6   : > { %v8899_v54 = vadd.f32 %v8898_v53, %v8897_v52  ;;  %v1981_v52 = vld [vmem:[#allocation2 + $0x4d0] sm:$0xff] }
 0x3b7   : > { %v1965_v53 = vld [vmem:[#allocation2 + $0x450] sm:$0xff] }
 0x3b8   : > { %9689 = vmatprep.subr.mxu0 %v8899_v54 }
 0x3b9   : > { %9690 = vmatpush3.msra.mxu0 %v8899_v54  ;;  %v1980_v54 = vld [vmem:[#allocation2 + $0x4c8] sm:$0xff] }
 0x3ba   : > { %9691 = vmatprep.subr.mxu0 %v8896_v55 }
 0x3bb   : > { %9692 = vmatpush3.msra.mxu0 %v8896_v55  ;;  %v1964_v55 = vld [vmem:[#allocation2 + $0x448] sm:$0xff] }
 0x3bc   : > { %9693 = vmatprep.subr.mxu0 %v8893_v56 }
 0x3bd   : > { %9694 = vmatpush3.msra.mxu0 %v8893_v56  ;;  %v1979_v56 = vld [vmem:[#allocation2 + $0x4c0] sm:$0xff] }
 0x3be   : > { %9695 = vmatprep.subr.mxu0 %v8890_v57 }
 0x3bf   : > { %9696 = vmatpush3.msra.mxu0 %v8890_v57  ;;  %v1963_v57 = vld [vmem:[#allocation2 + $0x440] sm:$0xff] }
 0x3c0   : > { %9698 = vmatmul.mubr.msk.f32.vlgmr.msra.gmra.mxu0 %vm1311_vm2, %v1626_v58  ;;  %8908 = vmatprep.subr.mxu0 %v1762_v59  ;;  %v1978_v58 = vld [vmem:[#allocation2 + $0x4b8] sm:$0xff] }
 0x3c1   : > { %8909 = vmatpush3.msra.mxu0 %v1746_v60  ;;  %9700 = vmatprep.mubr.msk.f32.mxu0 %vm1311_vm2, %v1627_v61  ;;  %v1962_v59 = vld [vmem:[#allocation2 + $0x438] sm:$0xff]  ;;  %v1977_v60 = vld [vmem:[#allocation2 + $0x4b0] sm:$0xff] }
 0x3c2   : > { %8910 = vmatprep.subr.mxu0 %v1761_v62  ;;  %v1961_v61 = vld [vmem:[#allocation2 + $0x430] sm:$0xff]  ;;  %v1976_v62 = vld [vmem:[#allocation2 + $0x4a8] sm:$0xff] }
 0x3c3   : > { %8911 = vmatpush3.msra.mxu0 %v1745_v63  ;;  %v1960_v63 = vld [vmem:[#allocation2 + $0x428] sm:$0xff] }
 0x3c4   : > { %9701 = vmatmul.mubr.msk.f32.gmra.mxu0 %vm1311_vm2, %v1628_v0  ;;  %8912 = vmatprep.subr.mxu0 %v1760_v1  ;;  %v1975_v0 = vld [vmem:[#allocation2 + $0x4a0] sm:$0xff] }
 0x3c5   : > { %8913 = vmatpush3.msra.mxu0 %v1744_v2  ;;  %1827 = vmatprep.mubr.f32.mxu0 %v11236_v20  ;;  %v1959_v1 = vld [vmem:[#allocation2 + $0x420] sm:$0xff]  ;;  %v1974_v2 = vld [vmem:[#allocation2 + $0x498] sm:$0xff] }
 0x3c6   : > { %8914 = vmatprep.subr.mxu0 %v1759_v3  ;;  %v1958_v3 = vld [vmem:[#allocation2 + $0x418] sm:$0xff] }
 0x3c7   : > { %8915 = vmatpush3.msra.mxu0 %v1743_v4  ;;  %v1973_v4 = vld [vmem:[#allocation2 + $0x490] sm:$0xff] }
 0x3c8   : > { %8916 = vmatprep.subr.mxu0 %v1758_v29  ;;  %v1957_v29 = vld [vmem:[#allocation2 + $0x410] sm:$0xff] }
 0x3c9   : > { %8917 = vmatpush3.msra.mxu0 %v1742_v5  ;;  %v1972_v5 = vld [vmem:[#allocation2 + $0x488] sm:$0xff] }
 0x3ca   : > { %8918 = vmatprep.subr.mxu0 %v1757_v28  ;;  %v1956_v28 = vld [vmem:[#allocation2 + $0x408] sm:$0xff] }
 0x3cb   : > { %8919 = vmatpush3.msra.mxu0 %v1741_v6  ;;  %v1971_v6 = vld [vmem:[#allocation2 + $0x480] sm:$0xff] }
 0x3cc   : > { %8920 = vmatprep.subr.mxu0 %v1756_v7  ;;  %v1955_v7 = vld [vmem:[#allocation2 + $0x400] sm:$0xff] }
 0x3cd   : > { %8921 = vmatpush3.msra.mxu0 %v1740_v40  ;;  %v1849_v40 = vld [vmem:[#allocation6 + $0x60] sm:$0xff] }
 0x3ce   : > { %8922 = vmatprep.subr.mxu0 %v1755_v9  ;;  %9711 = vmatprep.mubr.msk.f32.mxu1 %vm1311_vm2, %v1849_v40  ;;  %v11315_v9 = vpop.f32.mrf.mxu0  ;;  %v2203_v40 = vld [vmem:[#allocation2 + $0x5c0] sm:$0xff] }
 0x3cf   : > { %8923 = vmatpush3.msra.mxu0 %v1739_v10 }
 0x3d0   : > { %8924 = vmatprep.subr.mxu0 %v1754_v39 }
 0x3d1   : > { %8925 = vmatpush3.msra.mxu0 %v1738_v11 }
 0x3d2   : > { %8926 = vmatprep.subr.mxu0 %v1753_v12 }
 0x3d3   : > { %8927 = vmatpush3.msra.mxu0 %v1737_v13 }
 0x3d4   : > { %8928 = vmatprep.subr.mxu0 %v1752_v15 }
 0x3d5   : > { %8929 = vmatpush3.msra.mxu0 %v1736_v16 }
 0x3d6   : > { %8930 = vmatprep.subr.mxu0 %v1751_v17 }
 0x3d7   : > { %8931 = vmatpush3.msra.mxu0 %v1735_v22 }
 0x3d8   : > { %8932 = vmatprep.subr.mxu0 %v1750_v23 }
 0x3d9   : > { %8933 = vmatpush3.msra.mxu0 %v1734_v24 }
 0x3da   : > { %8934 = vmatprep.subr.mxu0 %v1749_v25 }
 0x3db   : > { %8935 = vmatpush3.msra.mxu0 %v1733_v26 }
 0x3dc   : > { %8936 = vmatprep.subr.mxu0 %v1748_v27 }
 0x3dd   : > { %8937 = vmatpush3.msra.mxu0 %v1732_v30 }
 0x3de   : > { %8938 = vmatprep.subr.mxu0 %v1747_v31 }
 0x3df   : > { %8939 = vmatpush3.msra.mxu0 %v1731_v32 }
 0x3e0   : > { %1828 = vmatmul.mubr.f32.vlgmr.msra.gmra.mxu0 %v11234_v19  ;;  %8960 = vmatprep.subr.mxu0 %v1986_v33  ;;  %v1851_v33 = vld [vmem:[#allocation6 + $0x70] sm:$0xff] }
 0x3e1   : > { %1832 = vmatprep.mubr.f32.mxu0 %v11239_v8  ;;  %8961 = vmatpush3.msra.mxu0 %v1970_v34  ;;  %v1852_v34 = vld [vmem:[#allocation6 + $0x78] sm:$0xff] }
 0x3e2   : > { %8962 = vmatprep.subr.mxu0 %v1985_v38  ;;  %v2073_v38 = vld [vmem:[#allocation6 + $0x80] sm:$0xff] }
 0x3e3   : > { %8963 = vmatpush3.msra.mxu0 %v1969_v41 }
 0x3e4   : > { %1833 = vmatmul.mubr.f32.gmra.mxu0 %v11248_v49  ;;  %8964 = vmatprep.subr.mxu0 %v1984_v44 }
 0x3e5   : > { %1837 = vmatprep.mubr.f32.mxu0 %v11250_v14  ;;  %8965 = vmatpush3.msra.mxu0 %v1968_v45 }
 0x3e6   : > { %8966 = vmatprep.subr.mxu0 %v1983_v46 }
 0x3e7   : > { %8967 = vmatpush3.msra.mxu0 %v1967_v47 }
 0x3e8   : > { %1838 = vmatmul.mubr.f32.gmra.mxu0 %v11256_v48  ;;  %8968 = vmatprep.subr.mxu0 %v1982_v50 }
 0x3e9   : > { %1842 = vmatprep.mubr.f32.mxu0 %v11258_v18  ;;  %8969 = vmatpush3.msra.mxu0 %v1966_v51 }
 0x3ea   : > { %8970 = vmatprep.subr.mxu0 %v1981_v52 }
 0x3eb   : > { %8971 = vmatpush3.msra.mxu0 %v1965_v53 }
 0x3ec   : > { %1843 = vmatmul.mubr.f32.gmra.mxu0 %v11264_v21  ;;  %8972 = vmatprep.subr.mxu0 %v1980_v54 }
 0x3ed   : > { %8973 = vmatpush3.msra.mxu0 %v1964_v55  ;;  %2051 = vmatprep.mubr.f32.mxu0 %v11236_v20 }
 0x3ee   : > { %8974 = vmatprep.subr.mxu0 %v1979_v56 }
 0x3ef   : > { %8975 = vmatpush3.msra.mxu0 %v1963_v57  ;;  %v2074_v57 = vld [vmem:[#allocation6 + $0x88] sm:$0xff] }
 0x3f0   : > { %8976 = vmatprep.subr.mxu0 %v1978_v58  ;;  %v2210_v58 = vld [vmem:[#allocation2 + $0x5f8] sm:$0xff] }
 0x3f1   : > { %8977 = vmatpush3.msra.mxu0 %v1962_v59  ;;  %v2194_v59 = vld [vmem:[#allocation2 + $0x578] sm:$0xff] }
 0x3f2   : > { %8978 = vmatprep.subr.mxu0 %v1977_v60  ;;  %v2075_v60 = vld [vmem:[#allocation6 + $0x90] sm:$0xff] }
 0x3f3   : > { %8979 = vmatpush3.msra.mxu0 %v1961_v61  ;;  %v2209_v61 = vld [vmem:[#allocation2 + $0x5f0] sm:$0xff] }
 0x3f4   : > { %8980 = vmatprep.subr.mxu0 %v1976_v62  ;;  %v2193_v62 = vld [vmem:[#allocation2 + $0x570] sm:$0xff] }
 0x3f5   : > { %8981 = vmatpush3.msra.mxu0 %v1960_v63  ;;  %v2076_v63 = vld [vmem:[#allocation6 + $0x98] sm:$0xff] }
 0x3f6   : > { %8982 = vmatprep.subr.mxu0 %v1975_v0  ;;  %v2208_v0 = vld [vmem:[#allocation2 + $0x5e8] sm:$0xff] }
 0x3f7   : > { %8983 = vmatpush3.msra.mxu0 %v1959_v1  ;;  %v2192_v1 = vld [vmem:[#allocation2 + $0x568] sm:$0xff] }
 0x3f8   : > { %8984 = vmatprep.subr.mxu0 %v1974_v2  ;;  %v2207_v2 = vld [vmem:[#allocation2 + $0x5e0] sm:$0xff] }
 0x3f9   : > { %8985 = vmatpush3.msra.mxu0 %v1958_v3  ;;  %v2191_v3 = vld [vmem:[#allocation2 + $0x560] sm:$0xff] }
 0x3fa   : > { %8986 = vmatprep.subr.mxu0 %v1973_v4  ;;  %v2206_v4 = vld [vmem:[#allocation2 + $0x5d8] sm:$0xff] }
 0x3fb   : > { %8987 = vmatpush3.msra.mxu0 %v1957_v29  ;;  %v2190_v29 = vld [vmem:[#allocation2 + $0x558] sm:$0xff] }
 0x3fc   : > { %8988 = vmatprep.subr.mxu0 %v1972_v5  ;;  %v2205_v5 = vld [vmem:[#allocation2 + $0x5d0] sm:$0xff] }
 0x3fd   : > { %8989 = vmatpush3.msra.mxu0 %v1956_v28  ;;  %v2189_v28 = vld [vmem:[#allocation2 + $0x550] sm:$0xff] }
 0x3fe   : > { %8990 = vmatprep.subr.mxu0 %v1971_v6  ;;  %v2204_v6 = vld [vmem:[#allocation2 + $0x5c8] sm:$0xff] }
 0x3ff   : > { %8991 = vmatpush3.msra.mxu0 %v1955_v7  ;;  %v2188_v7 = vld [vmem:[#allocation2 + $0x548] sm:$0xff] }
 0x400   : > { %2052 = vmatmul.mubr.f32.vlgmr.msra.gmra.mxu0 %v11234_v19 }
 0x401   : > { %2056 = vmatprep.mubr.f32.mxu0 %v11239_v8 }
 0x404   : > { %2057 = vmatmul.mubr.f32.gmra.mxu0 %v11248_v49 }
 0x405   : > { %2061 = vmatprep.mubr.f32.mxu0 %v11250_v14 }
 0x408   : > { %2062 = vmatmul.mubr.f32.gmra.mxu0 %v11256_v48 }
 0x409   : > { %2066 = vmatprep.mubr.f32.mxu0 %v11258_v18 }
 0x40c   : > { %2067 = vmatmul.mubr.f32.gmra.mxu0 %v11264_v21 }
 0x480   : > { %v9699_v10 = vpop.f32.mrf.mxu0 }
 0x481   : > { %v11318_v39 = vadd.f32 %v9699_v10, %v11285_v35  ;;  %v2187_v10 = vld [vmem:[#allocation2 + $0x540] sm:$0xff] }
 0x482   : > { %v11320_v11 = vpop.f32.mrf.mxu0 }
 0x484   : > { %v9702_v12 = vpop.f32.mrf.mxu0 }
 0x485   : > { %v11323_v13 = vadd.f32 %v9702_v12, %v11291_v42  ;;  %v1850_v42 = vld [vmem:[#allocation6 + $0x68] sm:$0xff]  ;;  %v2202_v12 = vld [vmem:[#allocation2 + $0x5b8] sm:$0xff] }
 0x486   : > { %v11325_v15 = vpop.f32.mrf.mxu0 }
 0x4a0   : > { %v8940_v16 = vpop.f32.mrf.mxu0 }
 0x4a2   : > { %v8941_v17 = vpop.f32.mrf.mxu0 }
 0x4a3   : > { %v8942_v32 = vadd.f32 %v8941_v17, %v8940_v16  ;;  %v2186_v16 = vld [vmem:[#allocation2 + $0x538] sm:$0xff]  ;;  %v2201_v17 = vld [vmem:[#allocation2 + $0x5b0] sm:$0xff] }
 0x4a4   : > { %v8943_v22 = vpop.f32.mrf.mxu0 }
 0x4a6   : > { %v8944_v23 = vpop.f32.mrf.mxu0 }
 0x4a7   : > { %v8945_v35 = vadd.f32 %v8944_v23, %v8943_v22  ;;  %v2185_v22 = vld [vmem:[#allocation2 + $0x530] sm:$0xff]  ;;  %v2200_v23 = vld [vmem:[#allocation2 + $0x5a8] sm:$0xff] }
 0x4a8   : > { %v8946_v24 = vpop.f32.mrf.mxu0 }
 0x4aa   : > { %v8947_v25 = vpop.f32.mrf.mxu0 }
 0x4ab   : > { %v8948_v31 = vadd.f32 %v8947_v25, %v8946_v24  ;;  %v2184_v24 = vld [vmem:[#allocation2 + $0x528] sm:$0xff]  ;;  %v2199_v25 = vld [vmem:[#allocation2 + $0x5a0] sm:$0xff] }
 0x4ac   : > { %v8949_v26 = vpop.f32.mrf.mxu0 }
 0x4ae   : > { %v8950_v27 = vpop.f32.mrf.mxu0 }
 0x4af   : > { %v8951_v30 = vadd.f32 %v8950_v27, %v8949_v26  ;;  %v2183_v26 = vld [vmem:[#allocation2 + $0x520] sm:$0xff]  ;;  %v2198_v27 = vld [vmem:[#allocation2 + $0x598] sm:$0xff] }
 0x4b1   : > { %9703 = vmatprep.subr.mxu1 %v8951_v30 }
 0x4b2   : > { %9704 = vmatpush3.msra.mxu1 %v8951_v30  ;;  %v2182_v30 = vld [vmem:[#allocation2 + $0x518] sm:$0xff] }
 0x4b3   : > { %9705 = vmatprep.subr.mxu1 %v8948_v31 }
 0x4b4   : > { %9706 = vmatpush3.msra.mxu1 %v8948_v31  ;;  %v2197_v31 = vld [vmem:[#allocation2 + $0x590] sm:$0xff] }
 0x4b5   : > { %9707 = vmatprep.subr.mxu1 %v8945_v35 }
 0x4b6   : > { %9708 = vmatpush3.msra.mxu1 %v8945_v35  ;;  %v2181_v35 = vld [vmem:[#allocation2 + $0x510] sm:$0xff] }
 0x4b7   : > { %9709 = vmatprep.subr.mxu1 %v8942_v32 }
 0x4b8   : > { %9710 = vmatpush3.msra.mxu1 %v8942_v32  ;;  %v2196_v32 = vld [vmem:[#allocation2 + $0x588] sm:$0xff] }
 0x4b9   : > { %9712 = vmatmul.mubr.msk.f32.vlgmr.msra.gmra.mxu1 %vm1311_vm2, %v1850_v42  ;;  %v2180_v42 = vld [vmem:[#allocation2 + $0x508] sm:$0xff] }
 0x4ba   : > { %9714 = vmatprep.mubr.msk.f32.mxu1 %vm1311_vm2, %v1851_v33  ;;  %v2195_v33 = vld [vmem:[#allocation2 + $0x580] sm:$0xff] }
 0x4bd   : > { %9715 = vmatmul.mubr.msk.f32.gmra.mxu1 %vm1311_vm2, %v1852_v34  ;;  %v2179_v34 = vld [vmem:[#allocation2 + $0x500] sm:$0xff] }
 0x4be   : > { %9725 = vmatprep.mubr.msk.f32.mxu1 %vm1311_vm2, %v2073_v38  ;;  %v2434_v38 = vld [vmem:[#allocation2 + $0x6f8] sm:$0xff] }
 0x4c0   : > { %v8992_v41 = vpop.f32.mrf.mxu0 }
 0x4c2   : > { %v8993_v44 = vpop.f32.mrf.mxu0 }
 0x4c3   : > { %v8994_v56 = vadd.f32 %v8993_v44, %v8992_v41  ;;  %v2418_v41 = vld [vmem:[#allocation2 + $0x678] sm:$0xff]  ;;  %v2433_v44 = vld [vmem:[#allocation2 + $0x6f0] sm:$0xff] }
 0x4c4   : > { %v8995_v45 = vpop.f32.mrf.mxu0 }
 0x4c6   : > { %v8996_v46 = vpop.f32.mrf.mxu0 }
 0x4c7   : > { %v8997_v55 = vadd.f32 %v8996_v46, %v8995_v45  ;;  %v2417_v45 = vld [vmem:[#allocation2 + $0x670] sm:$0xff]  ;;  %v2432_v46 = vld [vmem:[#allocation2 + $0x6e8] sm:$0xff] }
 0x4c8   : > { %v8998_v47 = vpop.f32.mrf.mxu0 }
 0x4ca   : > { %v8999_v50 = vpop.f32.mrf.mxu0 }
 0x4cb   : > { %v9000_v54 = vadd.f32 %v8999_v50, %v8998_v47  ;;  %v2416_v47 = vld [vmem:[#allocation2 + $0x668] sm:$0xff]  ;;  %v2431_v50 = vld [vmem:[#allocation2 + $0x6e0] sm:$0xff] }
 0x4cc   : > { %v9001_v51 = vpop.f32.mrf.mxu0 }
 0x4ce   : > { %v9002_v52 = vpop.f32.mrf.mxu0 }
 0x4cf   : > { %v9003_v53 = vadd.f32 %v9002_v52, %v9001_v51  ;;  %v2415_v51 = vld [vmem:[#allocation2 + $0x660] sm:$0xff]  ;;  %v2430_v52 = vld [vmem:[#allocation2 + $0x6d8] sm:$0xff] }
 0x4d1   : > { %9717 = vmatprep.subr.mxu1 %v9003_v53 }
 0x4d2   : > { %9718 = vmatpush3.msra.mxu1 %v9003_v53  ;;  %v2414_v53 = vld [vmem:[#allocation2 + $0x658] sm:$0xff] }
 0x4d3   : > { %9719 = vmatprep.subr.mxu1 %v9000_v54 }
 0x4d4   : > { %9720 = vmatpush3.msra.mxu1 %v9000_v54  ;;  %v2429_v54 = vld [vmem:[#allocation2 + $0x6d0] sm:$0xff] }
 0x4d5   : > { %9721 = vmatprep.subr.mxu1 %v8997_v55 }
 0x4d6   : > { %9722 = vmatpush3.msra.mxu1 %v8997_v55  ;;  %v2413_v55 = vld [vmem:[#allocation2 + $0x650] sm:$0xff] }
 0x4d7   : > { %9723 = vmatprep.subr.mxu1 %v8994_v56 }
 0x4d8   : > { %9724 = vmatpush3.msra.mxu1 %v8994_v56  ;;  %v2428_v56 = vld [vmem:[#allocation2 + $0x6c8] sm:$0xff] }
 0x4d9   : > { %9726 = vmatmul.mubr.msk.f32.vlgmr.msra.gmra.mxu1 %vm1311_vm2, %v2074_v57  ;;  %9012 = vmatprep.subr.mxu1 %v2210_v58  ;;  %v2412_v57 = vld [vmem:[#allocation2 + $0x648] sm:$0xff]  ;;  %v2427_v58 = vld [vmem:[#allocation2 + $0x6c0] sm:$0xff] }
 0x4da   : > { %9013 = vmatpush3.msra.mxu1 %v2194_v59  ;;  %9728 = vmatprep.mubr.msk.f32.mxu1 %vm1311_vm2, %v2075_v60  ;;  %v2411_v59 = vld [vmem:[#allocation2 + $0x640] sm:$0xff]  ;;  %v2426_v60 = vld [vmem:[#allocation2 + $0x6b8] sm:$0xff] }
 0x4db   : > { %9014 = vmatprep.subr.mxu1 %v2209_v61  ;;  %v2410_v61 = vld [vmem:[#allocation2 + $0x638] sm:$0xff] }
 0x4dc   : > { %9015 = vmatpush3.msra.mxu1 %v2193_v62  ;;  %v2425_v62 = vld [vmem:[#allocation2 + $0x6b0] sm:$0xff] }
 0x4dd   : > { %9729 = vmatmul.mubr.msk.f32.gmra.mxu1 %vm1311_vm2, %v2076_v63  ;;  %9016 = vmatprep.subr.mxu1 %v2208_v0  ;;  %v2409_v63 = vld [vmem:[#allocation2 + $0x630] sm:$0xff]  ;;  %v2424_v0 = vld [vmem:[#allocation2 + $0x6a8] sm:$0xff] }
 0x4de   : > { %9017 = vmatpush3.msra.mxu1 %v2192_v1  ;;  %2275 = vmatprep.mubr.f32.mxu1 %v11236_v20  ;;  %v2408_v1 = vld [vmem:[#allocation2 + $0x628] sm:$0xff] }
 0x4df   : > { %9018 = vmatprep.subr.mxu1 %v2207_v2  ;;  %v2423_v2 = vld [vmem:[#allocation2 + $0x6a0] sm:$0xff] }
 0x4e0   : > { %9019 = vmatpush3.msra.mxu1 %v2191_v3  ;;  %v2407_v3 = vld [vmem:[#allocation2 + $0x620] sm:$0xff] }
 0x4e1   : > { %9020 = vmatprep.subr.mxu1 %v2206_v4  ;;  %v2422_v4 = vld [vmem:[#allocation2 + $0x698] sm:$0xff] }
 0x4e2   : > { %9021 = vmatpush3.msra.mxu1 %v2190_v29  ;;  %v2406_v29 = vld [vmem:[#allocation2 + $0x618] sm:$0xff] }
 0x4e3   : > { %9022 = vmatprep.subr.mxu1 %v2205_v5  ;;  %v2421_v5 = vld [vmem:[#allocation2 + $0x690] sm:$0xff] }
 0x4e4   : > { %9023 = vmatpush3.msra.mxu1 %v2189_v28  ;;  %v2405_v28 = vld [vmem:[#allocation2 + $0x610] sm:$0xff] }
 0x4e5   : > { %9024 = vmatprep.subr.mxu1 %v2204_v6  ;;  %v2420_v6 = vld [vmem:[#allocation2 + $0x688] sm:$0xff] }
 0x4e6   : > { %9025 = vmatpush3.msra.mxu1 %v2188_v7  ;;  %v2404_v7 = vld [vmem:[#allocation2 + $0x608] sm:$0xff] }
 0x4e7   : > { %9026 = vmatprep.subr.mxu1 %v2203_v40  ;;  %v2419_v40 = vld [vmem:[#allocation2 + $0x680] sm:$0xff] }
 0x4e8   : > { %9027 = vmatpush3.msra.mxu1 %v2187_v10  ;;  %v2403_v10 = vld [vmem:[#allocation2 + $0x600] sm:$0xff] }
 0x4e9   : > { %9028 = vmatprep.subr.mxu1 %v2202_v12  ;;  %v2297_v12 = vld [vmem:[#allocation6 + $0xa0] sm:$0xff] }
 0x4ea   : > { %9029 = vmatpush3.msra.mxu1 %v2186_v16  ;;  %9739 = vmatprep.mubr.msk.f32.mxu0 %vm1311_vm2, %v2297_v12  ;;  %v2655_v12 = vld [vmem:[#allocation2 + $0x7e0] sm:$0xff] }
 0x4eb   : > { %9030 = vmatprep.subr.mxu1 %v2201_v17 }
 0x4ec   : > { %9031 = vmatpush3.msra.mxu1 %v2185_v22 }
 0x4ed   : > { %9032 = vmatprep.subr.mxu1 %v2200_v23 }
 0x4ee   : > { %9033 = vmatpush3.msra.mxu1 %v2184_v24 }
 0x4ef   : > { %9034 = vmatprep.subr.mxu1 %v2199_v25 }
 0x4f0   : > { %9035 = vmatpush3.msra.mxu1 %v2183_v26 }
 0x4f1   : > { %9036 = vmatprep.subr.mxu1 %v2198_v27 }
 0x4f2   : > { %9037 = vmatpush3.msra.mxu1 %v2182_v30 }
 0x4f3   : > { %9038 = vmatprep.subr.mxu1 %v2197_v31 }
 0x4f4   : > { %9039 = vmatpush3.msra.mxu1 %v2181_v35 }
 0x4f5   : > { %9040 = vmatprep.subr.mxu1 %v2196_v32 }
 0x4f6   : > { %9041 = vmatpush3.msra.mxu1 %v2180_v42 }
 0x4f7   : > { %9042 = vmatprep.subr.mxu1 %v2195_v33 }
 0x4f8   : > { %9043 = vmatpush3.msra.mxu1 %v2179_v34 }
 0x4f9   : > { %2276 = vmatmul.mubr.f32.vlgmr.msra.gmra.mxu1 %v11234_v19  ;;  %9064 = vmatprep.subr.mxu1 %v2434_v38 }
 0x4fa   : > { %2280 = vmatprep.mubr.f32.mxu1 %v11239_v8  ;;  %9065 = vmatpush3.msra.mxu1 %v2418_v41 }
 0x4fb   : > { %9066 = vmatprep.subr.mxu1 %v2433_v44 }
 0x4fc   : > { %9067 = vmatpush3.msra.mxu1 %v2417_v45 }
 0x4fd   : > { %2281 = vmatmul.mubr.f32.gmra.mxu1 %v11248_v49  ;;  %9068 = vmatprep.subr.mxu1 %v2432_v46 }
 0x4fe   : > { %2285 = vmatprep.mubr.f32.mxu1 %v11250_v14  ;;  %9069 = vmatpush3.msra.mxu1 %v2416_v47 }
 0x4ff   : > { %9070 = vmatprep.subr.mxu1 %v2431_v50 }
 0x500   : > { %9071 = vmatpush3.msra.mxu1 %v2415_v51  ;;  %v2298_v51 = vld [vmem:[#allocation6 + $0xa8] sm:$0xff] }
 0x501   : > { %2286 = vmatmul.mubr.f32.gmra.mxu1 %v11256_v48  ;;  %9072 = vmatprep.subr.mxu1 %v2430_v52  ;;  %v2299_v52 = vld [vmem:[#allocation6 + $0xb0] sm:$0xff] }
 0x502   : > { %2290 = vmatprep.mubr.f32.mxu1 %v11258_v18  ;;  %9073 = vmatpush3.msra.mxu1 %v2414_v53  ;;  %v2300_v53 = vld [vmem:[#allocation6 + $0xb8] sm:$0xff] }
 0x503   : > { %9074 = vmatprep.subr.mxu1 %v2429_v54  ;;  %v2521_v54 = vld [vmem:[#allocation6 + $0xc0] sm:$0xff] }
 0x504   : > { %9075 = vmatpush3.msra.mxu1 %v2413_v55 }
 0x505   : > { %2291 = vmatmul.mubr.f32.gmra.mxu1 %v11264_v21  ;;  %9076 = vmatprep.subr.mxu1 %v2428_v56 }
 0x506   : > { %9077 = vmatpush3.msra.mxu1 %v2412_v57  ;;  %2499 = vmatprep.mubr.f32.mxu1 %v11236_v20 }
 0x507   : > { %9078 = vmatprep.subr.mxu1 %v2427_v58 }
 0x508   : > { %9079 = vmatpush3.msra.mxu1 %v2411_v59 }
 0x509   : > { %9080 = vmatprep.subr.mxu1 %v2426_v60 }
 0x50a   : > { %9081 = vmatpush3.msra.mxu1 %v2410_v61 }
 0x50b   : > { %9082 = vmatprep.subr.mxu1 %v2425_v62 }
 0x50c   : > { %9083 = vmatpush3.msra.mxu1 %v2409_v63 }
 0x50d   : > { %9084 = vmatprep.subr.mxu1 %v2424_v0 }
 0x50e   : > { %9085 = vmatpush3.msra.mxu1 %v2408_v1 }
 0x50f   : > { %9086 = vmatprep.subr.mxu1 %v2423_v2 }
 0x510   : > { %9087 = vmatpush3.msra.mxu1 %v2407_v3  ;;  %v2522_v3 = vld [vmem:[#allocation6 + $0xc8] sm:$0xff] }
 0x511   : > { %9088 = vmatprep.subr.mxu1 %v2422_v4  ;;  %v2658_v4 = vld [vmem:[#allocation2 + $0x7f8] sm:$0xff] }
 0x512   : > { %9089 = vmatpush3.msra.mxu1 %v2406_v29  ;;  %v2642_v29 = vld [vmem:[#allocation2 + $0x778] sm:$0xff] }
 0x513   : > { %9090 = vmatprep.subr.mxu1 %v2421_v5  ;;  %v2523_v5 = vld [vmem:[#allocation6 + $0xd0] sm:$0xff] }
 0x514   : > { %9091 = vmatpush3.msra.mxu1 %v2405_v28  ;;  %v2657_v28 = vld [vmem:[#allocation2 + $0x7f0] sm:$0xff] }
 0x515   : > { %9092 = vmatprep.subr.mxu1 %v2420_v6  ;;  %v2641_v6 = vld [vmem:[#allocation2 + $0x770] sm:$0xff] }
 0x516   : > { %9093 = vmatpush3.msra.mxu1 %v2404_v7  ;;  %v2524_v7 = vld [vmem:[#allocation6 + $0xd8] sm:$0xff] }
 0x517   : > { %9094 = vmatprep.subr.mxu1 %v2419_v40  ;;  %v2656_v40 = vld [vmem:[#allocation2 + $0x7e8] sm:$0xff] }
 0x518   : > { %9095 = vmatpush3.msra.mxu1 %v2403_v10  ;;  %v2640_v10 = vld [vmem:[#allocation2 + $0x768] sm:$0xff] }
 0x519   : > { %2500 = vmatmul.mubr.f32.vlgmr.msra.gmra.mxu1 %v11234_v19 }
 0x51a   : > { %2504 = vmatprep.mubr.f32.mxu1 %v11239_v8 }
 0x51d   : > { %2505 = vmatmul.mubr.f32.gmra.mxu1 %v11248_v49 }
 0x51e   : > { %2509 = vmatprep.mubr.f32.mxu1 %v11250_v14 }
 0x521   : > { %2510 = vmatmul.mubr.f32.gmra.mxu1 %v11256_v48 }
 0x522   : > { %2514 = vmatprep.mubr.f32.mxu1 %v11258_v18 }
 0x525   : > { %2515 = vmatmul.mubr.f32.gmra.mxu1 %v11264_v21 }
 0x579   : > { %v9713_v16 = vpop.f32.mrf.mxu1 }
 0x57a   : > { %v1951_v17 = vadd.f32 %v9713_v16, %v11318_v39  ;;  %v2639_v16 = vld [vmem:[#allocation2 + $0x760] sm:$0xff] }
 0x57b   : > { %v11352_v22 = vpop.f32.mrf.mxu1 }
 0x57d   : > { %v9716_v23 = vpop.f32.mrf.mxu1 }
 0x57e   : > { %v1953_v24 = vadd.f32 %v9716_v23, %v11323_v13  ;;  %v2638_v23 = vld [vmem:[#allocation2 + $0x758] sm:$0xff] }
 0x57f   : > { %v11355_v25 = vpop.f32.mrf.mxu1 }
 0x599   : > { %v9727_v26 = vpop.f32.mrf.mxu1 }
 0x59a   : > { %v11357_v27 = vadd.f32 %v9727_v26, %v1951_v17  ;;  %v2654_v17 = vld [vmem:[#allocation2 + $0x7d8] sm:$0xff]  ;;  %v2637_v26 = vld [vmem:[#allocation2 + $0x750] sm:$0xff] }
 0x59b   : > { %v11359_v30 = vpop.f32.mrf.mxu1 }
 0x59d   : > { %v9730_v31 = vpop.f32.mrf.mxu1 }
 0x59e   : > { %v11361_v35 = vadd.f32 %v9730_v31, %v1953_v24  ;;  %v2653_v24 = vld [vmem:[#allocation2 + $0x7d0] sm:$0xff]  ;;  %v2652_v31 = vld [vmem:[#allocation2 + $0x7c8] sm:$0xff] }
 0x59f   : > { %v11363_v32 = vpop.f32.mrf.mxu1 }
 0x5b9   : > { %v9044_v42 = vpop.f32.mrf.mxu1 }
 0x5bb   : > { %v9045_v33 = vpop.f32.mrf.mxu1 }
 0x5bc   : > { %v9046_v50 = vadd.f32 %v9045_v33, %v9044_v42  ;;  %v2636_v42 = vld [vmem:[#allocation2 + $0x748] sm:$0xff]  ;;  %v2651_v33 = vld [vmem:[#allocation2 + $0x7c0] sm:$0xff] }
 0x5bd   : > { %v9047_v39 = vpop.f32.mrf.mxu1 }
 0x5bf   : > { %v9048_v34 = vpop.f32.mrf.mxu1 }
 0x5c0   : > { %v9049_v47 = vadd.f32 %v9048_v34, %v9047_v39  ;;  %v2635_v39 = vld [vmem:[#allocation2 + $0x740] sm:$0xff]  ;;  %v2650_v34 = vld [vmem:[#allocation2 + $0x7b8] sm:$0xff] }
 0x5c1   : > { %v9050_v38 = vpop.f32.mrf.mxu1 }
 0x5c3   : > { %v9051_v41 = vpop.f32.mrf.mxu1 }
 0x5c4   : > { %v9052_v46 = vadd.f32 %v9051_v41, %v9050_v38  ;;  %v2634_v38 = vld [vmem:[#allocation2 + $0x738] sm:$0xff]  ;;  %v2649_v41 = vld [vmem:[#allocation2 + $0x7b0] sm:$0xff] }
 0x5c5   : > { %v9053_v44 = vpop.f32.mrf.mxu1 }
 0x5c7   : > { %v9054_v13 = vpop.f32.mrf.mxu1 }
 0x5c8   : > { %v9055_v45 = vadd.f32 %v9054_v13, %v9053_v44  ;;  %v2633_v44 = vld [vmem:[#allocation2 + $0x730] sm:$0xff]  ;;  %v2648_v13 = vld [vmem:[#allocation2 + $0x7a8] sm:$0xff] }
 0x5ca   : > { %9731 = vmatprep.subr.mxu0 %v9055_v45 }
 0x5cb   : > { %9732 = vmatpush3.msra.mxu0 %v9055_v45  ;;  %v2632_v45 = vld [vmem:[#allocation2 + $0x728] sm:$0xff] }
 0x5cc   : > { %9733 = vmatprep.subr.mxu0 %v9052_v46 }
 0x5cd   : > { %9734 = vmatpush3.msra.mxu0 %v9052_v46  ;;  %v2647_v46 = vld [vmem:[#allocation2 + $0x7a0] sm:$0xff] }
 0x5ce   : > { %9735 = vmatprep.subr.mxu0 %v9049_v47 }
 0x5cf   : > { %9736 = vmatpush3.msra.mxu0 %v9049_v47  ;;  %v2631_v47 = vld [vmem:[#allocation2 + $0x720] sm:$0xff] }
 0x5d0   : > { %9737 = vmatprep.subr.mxu0 %v9046_v50 }
 0x5d1   : > { %9738 = vmatpush3.msra.mxu0 %v9046_v50  ;;  %v2646_v50 = vld [vmem:[#allocation2 + $0x798] sm:$0xff] }
 0x5d2   : > { %9740 = vmatmul.mubr.msk.f32.vlgmr.msra.gmra.mxu0 %vm1311_vm2, %v2298_v51  ;;  %v2630_v51 = vld [vmem:[#allocation2 + $0x718] sm:$0xff] }
 0x5d3   : > { %9742 = vmatprep.mubr.msk.f32.mxu0 %vm1311_vm2, %v2299_v52  ;;  %v2645_v52 = vld [vmem:[#allocation2 + $0x790] sm:$0xff] }
 0x5d6   : > { %9743 = vmatmul.mubr.msk.f32.gmra.mxu0 %vm1311_vm2, %v2300_v53  ;;  %v2629_v53 = vld [vmem:[#allocation2 + $0x710] sm:$0xff] }
 0x5d7   : > { %9753 = vmatprep.mubr.msk.f32.mxu0 %vm1311_vm2, %v2521_v54  ;;  %v2644_v54 = vld [vmem:[#allocation2 + $0x788] sm:$0xff] }
 0x5d9   : > { %v9096_v55 = vpop.f32.mrf.mxu1 }
 0x5db   : > { %v9097_v56 = vpop.f32.mrf.mxu1 }
 0x5dc   : > { %v9098_v2 = vadd.f32 %v9097_v56, %v9096_v55  ;;  %v2628_v55 = vld [vmem:[#allocation2 + $0x708] sm:$0xff]  ;;  %v2643_v56 = vld [vmem:[#allocation2 + $0x780] sm:$0xff] }
 0x5dd   : > { %v9099_v57 = vpop.f32.mrf.mxu1 }
 0x5df   : > { %v9100_v58 = vpop.f32.mrf.mxu1 }
 0x5e0   : > { %v9101_v1 = vadd.f32 %v9100_v58, %v9099_v57  ;;  %v2627_v57 = vld [vmem:[#allocation2 + $0x700] sm:$0xff]  ;;  %v2882_v58 = vld [vmem:[#allocation2 + $0x8f8] sm:$0xff] }
 0x5e1   : > { %v9102_v59 = vpop.f32.mrf.mxu1 }
 0x5e3   : > { %v9103_v60 = vpop.f32.mrf.mxu1 }
 0x5e4   : > { %v9104_v0 = vadd.f32 %v9103_v60, %v9102_v59  ;;  %v2866_v59 = vld [vmem:[#allocation2 + $0x878] sm:$0xff]  ;;  %v2881_v60 = vld [vmem:[#allocation2 + $0x8f0] sm:$0xff] }
 0x5e5   : > { %v9105_v61 = vpop.f32.mrf.mxu1 }
 0x5e7   : > { %v9106_v62 = vpop.f32.mrf.mxu1 }
 0x5e8   : > { %v9107_v63 = vadd.f32 %v9106_v62, %v9105_v61  ;;  %v2865_v61 = vld [vmem:[#allocation2 + $0x870] sm:$0xff]  ;;  %v2880_v62 = vld [vmem:[#allocation2 + $0x8e8] sm:$0xff] }
 0x5ea   : > { %9745 = vmatprep.subr.mxu0 %v9107_v63 }
 0x5eb   : > { %9746 = vmatpush3.msra.mxu0 %v9107_v63  ;;  %v2864_v63 = vld [vmem:[#allocation2 + $0x868] sm:$0xff] }
 0x5ec   : > { %9747 = vmatprep.subr.mxu0 %v9104_v0 }
 0x5ed   : > { %9748 = vmatpush3.msra.mxu0 %v9104_v0  ;;  %v2879_v0 = vld [vmem:[#allocation2 + $0x8e0] sm:$0xff] }
 0x5ee   : > { %9749 = vmatprep.subr.mxu0 %v9101_v1 }
 0x5ef   : > { %9750 = vmatpush3.msra.mxu0 %v9101_v1  ;;  %v2863_v1 = vld [vmem:[#allocation2 + $0x860] sm:$0xff] }
 0x5f0   : > { %9751 = vmatprep.subr.mxu0 %v9098_v2 }
 0x5f1   : > { %9752 = vmatpush3.msra.mxu0 %v9098_v2  ;;  %v2878_v2 = vld [vmem:[#allocation2 + $0x8d8] sm:$0xff] }
 0x5f2   : > { %9754 = vmatmul.mubr.msk.f32.vlgmr.msra.gmra.mxu0 %vm1311_vm2, %v2522_v3  ;;  %9116 = vmatprep.subr.mxu0 %v2658_v4  ;;  %v2862_v3 = vld [vmem:[#allocation2 + $0x858] sm:$0xff]  ;;  %v2877_v4 = vld [vmem:[#allocation2 + $0x8d0] sm:$0xff] }
 0x5f3   : > { %9117 = vmatpush3.msra.mxu0 %v2642_v29  ;;  %9756 = vmatprep.mubr.msk.f32.mxu0 %vm1311_vm2, %v2523_v5  ;;  %v2861_v29 = vld [vmem:[#allocation2 + $0x850] sm:$0xff]  ;;  %v2876_v5 = vld [vmem:[#allocation2 + $0x8c8] sm:$0xff] }
 0x5f4   : > { %9118 = vmatprep.subr.mxu0 %v2657_v28  ;;  %v2860_v28 = vld [vmem:[#allocation2 + $0x848] sm:$0xff] }
 0x5f5   : > { %9119 = vmatpush3.msra.mxu0 %v2641_v6  ;;  %v2875_v6 = vld [vmem:[#allocation2 + $0x8c0] sm:$0xff] }
 0x5f6   : > { %9757 = vmatmul.mubr.msk.f32.gmra.mxu0 %vm1311_vm2, %v2524_v7  ;;  %9120 = vmatprep.subr.mxu0 %v2656_v40  ;;  %v2859_v7 = vld [vmem:[#allocation2 + $0x840] sm:$0xff]  ;;  %v2874_v40 = vld [vmem:[#allocation2 + $0x8b8] sm:$0xff] }
 0x5f7   : > { %9121 = vmatpush3.msra.mxu0 %v2640_v10  ;;  %2723 = vmatprep.mubr.f32.mxu0 %v11236_v20  ;;  %v2858_v10 = vld [vmem:[#allocation2 + $0x838] sm:$0xff] }
 0x5f8   : > { %9122 = vmatprep.subr.mxu0 %v2655_v12  ;;  %v2873_v12 = vld [vmem:[#allocation2 + $0x8b0] sm:$0xff] }
 0x5f9   : > { %9123 = vmatpush3.msra.mxu0 %v2639_v16  ;;  %v2857_v16 = vld [vmem:[#allocation2 + $0x830] sm:$0xff] }
 0x5fa   : > { %9124 = vmatprep.subr.mxu0 %v2654_v17  ;;  %v2872_v17 = vld [vmem:[#allocation2 + $0x8a8] sm:$0xff] }
 0x5fb   : > { %9125 = vmatpush3.msra.mxu0 %v2638_v23  ;;  %v2856_v23 = vld [vmem:[#allocation2 + $0x828] sm:$0xff] }
 0x5fc   : > { %9126 = vmatprep.subr.mxu0 %v2653_v24  ;;  %v2871_v24 = vld [vmem:[#allocation2 + $0x8a0] sm:$0xff] }
 0x5fd   : > { %9127 = vmatpush3.msra.mxu0 %v2637_v26  ;;  %v2855_v26 = vld [vmem:[#allocation2 + $0x820] sm:$0xff] }
 0x5fe   : > { %9128 = vmatprep.subr.mxu0 %v2652_v31  ;;  %v2870_v31 = vld [vmem:[#allocation2 + $0x898] sm:$0xff] }
 0x5ff   : > { %9129 = vmatpush3.msra.mxu0 %v2636_v42  ;;  %v2854_v42 = vld [vmem:[#allocation2 + $0x818] sm:$0xff] }
 0x600   : > { %9130 = vmatprep.subr.mxu0 %v2651_v33  ;;  %v2853_v33 = vld [vmem:[#allocation2 + $0x810] sm:$0xff] }
 0x601   : > { %9131 = vmatpush3.msra.mxu0 %v2635_v39  ;;  %v2868_v39 = vld [vmem:[#allocation2 + $0x888] sm:$0xff] }
 0x602   : > { %9132 = vmatprep.subr.mxu0 %v2650_v34  ;;  %v2852_v34 = vld [vmem:[#allocation2 + $0x808] sm:$0xff] }
 0x603   : > { %9133 = vmatpush3.msra.mxu0 %v2634_v38  ;;  %v2867_v38 = vld [vmem:[#allocation2 + $0x880] sm:$0xff] }
 0x604   : > { %9134 = vmatprep.subr.mxu0 %v2649_v41  ;;  %v2851_v41 = vld [vmem:[#allocation2 + $0x800] sm:$0xff] }
 0x605   : > { %9135 = vmatpush3.msra.mxu0 %v2633_v44  ;;  %v2745_v44 = vld [vmem:[#allocation6 + $0xe0] sm:$0xff] }
 0x606   : > { %9136 = vmatprep.subr.mxu0 %v2648_v13  ;;  %9767 = vmatprep.mubr.msk.f32.mxu1 %vm1311_vm2, %v2745_v44  ;;  %v1498_v13 = vadd.f32 %v11315_v9, %v11293_v43 }
 0x607   : > { %9137 = vmatpush3.msra.mxu0 %v2632_v45 }
 0x608   : > { %9138 = vmatprep.subr.mxu0 %v2647_v46 }
 0x609   : > { %9139 = vmatpush3.msra.mxu0 %v2631_v47 }
 0x60a   : > { %9140 = vmatprep.subr.mxu0 %v2646_v50  ;;  %v1488_v50 = vadd.f32 %v11289_v37, %v11287_v36 }
 0x60b   : > { %9141 = vmatpush3.msra.mxu0 %v2630_v51 }
 0x60c   : > { %9142 = vmatprep.subr.mxu0 %v2645_v52  ;;  %v1726_v43 = vadd.f32 %v11320_v11, %v1488_v50 }
 0x60d   : > { %9143 = vmatpush3.msra.mxu0 %v2629_v53 }
 0x60e   : > { %9144 = vmatprep.subr.mxu0 %v2644_v54  ;;  %v1950_v9 = vadd.f32 %v11352_v22, %v1726_v43 }
 0x60f   : > { %9145 = vmatpush3.msra.mxu0 %v2628_v55 }
 0x610   : > { %9146 = vmatprep.subr.mxu0 %v2643_v56 }
 0x611   : > { %9147 = vmatpush3.msra.mxu0 %v2627_v57 }
 0x612   : > { %2724 = vmatmul.mubr.f32.vlgmr.msra.gmra.mxu0 %v11234_v19  ;;  %9168 = vmatprep.subr.mxu0 %v2882_v58 }
 0x613   : > { %2728 = vmatprep.mubr.f32.mxu0 %v11239_v8  ;;  %9169 = vmatpush3.msra.mxu0 %v2866_v59 }
 0x614   : > { %9170 = vmatprep.subr.mxu0 %v2881_v60 }
 0x615   : > { %9171 = vmatpush3.msra.mxu0 %v2865_v61 }
 0x616   : > { %2729 = vmatmul.mubr.f32.gmra.mxu0 %v11248_v49  ;;  %9172 = vmatprep.subr.mxu0 %v2880_v62 }
 0x617   : > { %2733 = vmatprep.mubr.f32.mxu0 %v11250_v14  ;;  %9173 = vmatpush3.msra.mxu0 %v2864_v63  ;;  %v2746_v63 = vld [vmem:[#allocation6 + $0xe8] sm:$0xff] }
 0x618   : > { %9174 = vmatprep.subr.mxu0 %v2879_v0  ;;  %v2747_v0 = vld [vmem:[#allocation6 + $0xf0] sm:$0xff] }
 0x619   : > { %9175 = vmatpush3.msra.mxu0 %v2863_v1  ;;  %v2748_v1 = vld [vmem:[#allocation6 + $0xf8] sm:$0xff] }
 0x61a   : > { %2734 = vmatmul.mubr.f32.gmra.mxu0 %v11256_v48  ;;  %9176 = vmatprep.subr.mxu0 %v2878_v2  ;;  %v2969_v2 = vld [vmem:[#allocation6 + $0x100] sm:$0xff] }
 0x61b   : > { %2738 = vmatprep.mubr.f32.mxu0 %v11258_v18  ;;  %9177 = vmatpush3.msra.mxu0 %v2862_v3 }
 0x61c   : > { %9178 = vmatprep.subr.mxu0 %v2877_v4 }
 0x61d   : > { %9179 = vmatpush3.msra.mxu0 %v2861_v29 }
 0x61e   : > { %2739 = vmatmul.mubr.f32.gmra.mxu0 %v11264_v21  ;;  %9180 = vmatprep.subr.mxu0 %v2876_v5 }
 0x61f   : > { %9181 = vmatpush3.msra.mxu0 %v2860_v28  ;;  %2947 = vmatprep.mubr.f32.mxu0 %v11236_v20  ;;  %v2869_v20 = vld [vmem:[#allocation2 + $0x890] sm:$0xff] }
 0x620   : > { %9182 = vmatprep.subr.mxu0 %v2875_v6 }
 0x621   : > { %9183 = vmatpush3.msra.mxu0 %v2859_v7 }
 0x622   : > { %9184 = vmatprep.subr.mxu0 %v2874_v40 }
 0x623   : > { %9185 = vmatpush3.msra.mxu0 %v2858_v10 }
 0x624   : > { %9186 = vmatprep.subr.mxu0 %v2873_v12 }
 0x625   : > { %9187 = vmatpush3.msra.mxu0 %v2857_v16 }
 0x626   : > { %9188 = vmatprep.subr.mxu0 %v2872_v17 }
 0x627   : > { %9189 = vmatpush3.msra.mxu0 %v2856_v23  ;;  %v2970_v23 = vld [vmem:[#allocation6 + $0x108] sm:$0xff] }
 0x628   : > { %9190 = vmatprep.subr.mxu0 %v2871_v24  ;;  %v2971_v24 = vld [vmem:[#allocation6 + $0x110] sm:$0xff] }
 0x629   : > { %9191 = vmatpush3.msra.mxu0 %v2855_v26  ;;  %v2972_v26 = vld [vmem:[#allocation6 + $0x118] sm:$0xff] }
 0x62a   : > { %9192 = vmatprep.subr.mxu0 %v2870_v31 }
 0x62b   : > { %9193 = vmatpush3.msra.mxu0 %v2854_v42 }
 0x62c   : > { %9194 = vmatprep.subr.mxu0 %v2869_v20 }
 0x62d   : > { %9195 = vmatpush3.msra.mxu0 %v2853_v33 }
 0x62e   : > { %9196 = vmatprep.subr.mxu0 %v2868_v39 }
 0x62f   : > { %9197 = vmatpush3.msra.mxu0 %v2852_v34 }
 0x630   : > { %9198 = vmatprep.subr.mxu0 %v2867_v38  ;;  %v3086_v38 = vpop.permute.xlu1 %3085 }
 0x631   : > { %9199 = vmatpush3.msra.mxu0 %v2851_v41 }
 0x632   : > { %2948 = vmatmul.mubr.f32.vlgmr.msra.gmra.mxu0 %v11234_v19  ;;  %v1728_v19 = vadd.f32 %v11325_v15, %v1498_v13  ;;  %v2174_v15 = vadd.f32 %v11359_v30, %v1950_v9  ;;  %v3081_v13 = vpop.permute.xlu0 %3080 }
 0x633   : > { %2952 = vmatprep.mubr.f32.mxu0 %v11239_v8 }
 0x636   : > { %2953 = vmatmul.mubr.f32.gmra.mxu0 %v11248_v49 }
 0x637   : > { %2957 = vmatprep.mubr.f32.mxu0 %v11250_v14  ;;  %v1952_v14 = vadd.f32 %v11355_v25, %v1728_v19 }
 0x63a   : > { %2958 = vmatmul.mubr.f32.gmra.mxu0 %v11256_v48  ;;  %v2176_v48 = vadd.f32 %v11363_v32, %v1952_v14 }
 0x63b   : > { %2962 = vmatprep.mubr.f32.mxu0 %v11258_v18 }
 0x63e   : > { %2963 = vmatmul.mubr.f32.gmra.mxu0 %v11264_v21 }
 0x692   : > { %v9741_v45 = vpop.f32.mrf.mxu0 }
 0x693   : > { %v2399_v8 = vadd.f32 %v9741_v45, %v11357_v27 }
 0x694   : > { %v2379_v49 = vpop.f32.mrf.mxu0 }
 0x695   : > { %v2398_v51 = vadd.f32 %v2379_v49, %v2174_v15  ;;  %v3096_v15 = vpop.permute.xlu1 %3095 }
 0x696   : > { %v9744_v46 = vpop.f32.mrf.mxu0 }
 0x697   : > { %v2401_v18 = vadd.f32 %v9744_v46, %v11361_v35 }
 0x698   : > { %v2389_v21 = vpop.f32.mrf.mxu0 }
 0x699   : > { %v2400_v47 = vadd.f32 %v2389_v21, %v2176_v48 }
 0x6b2   : > { %v9755_v27 = vpop.f32.mrf.mxu0 }
 0x6b3   : > { %v11401_v52 = vadd.f32 %v9755_v27, %v2399_v8  ;;  %v3091_v27 = vpop.permute.xlu0 %3090 }
 0x6b4   : > { %v2603_v25 = vpop.f32.mrf.mxu0 }
 0x6b5   : > { %v11403_v53 = vadd.f32 %v2603_v25, %v2398_v51 }
 0x6b6   : > { %v9758_v32 = vpop.f32.mrf.mxu0 }
 0x6b7   : > { %v11405_v35 = vadd.f32 %v9758_v32, %v2401_v18 }
 0x6b8   : > { %v2613_v54 = vpop.f32.mrf.mxu0 }
 0x6b9   : > { %v11407_v55 = vadd.f32 %v2613_v54, %v2400_v47 }
 0x6d2   : > { %v9148_v36 = vpop.f32.mrf.mxu0 }
 0x6d4   : > { %v9149_v37 = vpop.f32.mrf.mxu0 }
 0x6d5   : > { %v9150_v62 = vadd.f32 %v9149_v37, %v9148_v36 }
 0x6d6   : > { %v9151_v11 = vpop.f32.mrf.mxu0 }
 0x6d8   : > { %v9152_v56 = vpop.f32.mrf.mxu0 }
 0x6d9   : > { %v9153_v61 = vadd.f32 %v9152_v56, %v9151_v11 }
 0x6da   : > { %v9154_v22 = vpop.f32.mrf.mxu0 }
 0x6dc   : > { %v9155_v57 = vpop.f32.mrf.mxu0 }
 0x6dd   : > { %v9156_v60 = vadd.f32 %v9155_v57, %v9154_v22 }
 0x6de   : > { %v9157_v30 = vpop.f32.mrf.mxu0 }
 0x6e0   : > { %v9158_v58 = vpop.f32.mrf.mxu0 }
 0x6e1   : > { %v9159_v59 = vadd.f32 %v9158_v58, %v9157_v30  ;;  %v3168_v58 = vld [vmem:[%s12422_s9] sm:$0xff] }
 0x6e3   : > { %9759 = vmatprep.subr.mxu1 %v9159_v59 }
 0x6e4   : > { %9760 = vmatpush3.msra.mxu1 %v9159_v59  ;;  %v3196_v59 = vld [vmem:[%s12423_s10] sm:$0xff] }
 0x6e5   : > { %9761 = vmatprep.subr.mxu1 %v9156_v60 }
 0x6e6   : > { %9762 = vmatpush3.msra.mxu1 %v9156_v60  ;;  %v3197_v60 = vld [vmem:[%s12423_s10 + $0x8] sm:$0xff] }
 0x6e7   : > { %9763 = vmatprep.subr.mxu1 %v9153_v61 }
 0x6e8   : > { %9764 = vmatpush3.msra.mxu1 %v9153_v61  ;;  %v3171_v61 = vld [vmem:[%s12422_s9 + $0x18] sm:$0xff] }
 0x6e9   : > { %9765 = vmatprep.subr.mxu1 %v9150_v62 }
 0x6ea   : > { %9766 = vmatpush3.msra.mxu1 %v9150_v62  ;;  %v3169_v62 = vld [vmem:[%s12422_s9 + $0x8] sm:$0xff] }
 0x6eb   : > { %9768 = vmatmul.mubr.msk.f32.vlgmr.msra.gmra.mxu1 %vm1311_vm2, %v2746_v63  ;;  %v3199_v63 = vld [vmem:[%s12423_s10 + $0x18] sm:$0xff] }
 0x6ec   : > { %9770 = vmatprep.mubr.msk.f32.mxu1 %vm1311_vm2, %v2747_v0  ;;  %v3170_v0 = vld [vmem:[%s12422_s9 + $0x10] sm:$0xff] }
 0x6ef   : > { %9771 = vmatmul.mubr.msk.f32.gmra.mxu1 %vm1311_vm2, %v2748_v1  ;;  %v4870_v1 = vld [vmem:[%s12425_s12 + $0x8] sm:$0xff] }
 0x6f0   : > { %9781 = vmatprep.mubr.msk.f32.mxu1 %vm1311_vm2, %v2969_v2  ;;  %v3198_v2 = vld [vmem:[%s12423_s10 + $0x10] sm:$0xff] }
 0x6f2   : > { %v9200_v3 = vpop.f32.mrf.mxu0 }
 0x6f4   : > { %v9201_v4 = vpop.f32.mrf.mxu0 }
 0x6f5   : > { %v9202_v17 = vadd.f32 %v9201_v4, %v9200_v3  ;;  %v4869_v3 = vld [vmem:[%s12425_s12] sm:$0xff]  ;;  %v11478_v4 = vld [vmem:[#allocation4 + $0x30] sm:$0x1] }
 0x6f6   : > { %v9203_v29 = vpop.f32.mrf.mxu0 }
 0x6f8   : > { %v9204_v5 = vpop.f32.mrf.mxu0 }
 0x6f9   : > { %v9205_v16 = vadd.f32 %v9204_v5, %v9203_v29  ;;  %v11484_v29 = vld [vmem:[#allocation4 + $0x28] sm:$0xff]  ;;  %v11488_v5 = vld [vmem:[#allocation4 + $0x20] sm:$0xff] }
 0x6fa   : > { %v9206_v28 = vpop.f32.mrf.mxu0 }
 0x6fc   : > { %v9207_v6 = vpop.f32.mrf.mxu0 }
 0x6fd   : > { %v9208_v12 = vadd.f32 %v9207_v6, %v9206_v28  ;;  %v11492_v28 = vld [vmem:[#allocation4 + $0x18] sm:$0xff]  ;;  %v11496_v6 = vld [vmem:[#allocation4 + $0x10] sm:$0xff] }
 0x6fe   : > { %v9209_v7 = vpop.f32.mrf.mxu0 }
 0x700   : > { %v9210_v40 = vpop.f32.mrf.mxu0 }
 0x701   : > { %v9211_v10 = vadd.f32 %v9210_v40, %v9209_v7  ;;  %v11500_v7 = vld [vmem:[#allocation4 + $0x8] sm:$0xff]  ;;  %v11504_v40 = vld [vmem:[#allocation4] sm:$0xff] }
 0x703   : > { %9773 = vmatprep.subr.mxu1 %v9211_v10 }
 0x704   : > { %9774 = vmatpush3.msra.mxu1 %v9211_v10  ;;  %v11508_v10 = vld [vmem:[#allocation4 + $0x68] sm:$0x1] }
 0x705   : > { %9775 = vmatprep.subr.mxu1 %v9208_v12 }
 0x706   : > { %9776 = vmatpush3.msra.mxu1 %v9208_v12 }
 0x707   : > { %9777 = vmatprep.subr.mxu1 %v9205_v16 }
 0x708   : > { %9778 = vmatpush3.msra.mxu1 %v9205_v16 }
 0x709   : > { %9779 = vmatprep.subr.mxu1 %v9202_v17 }
 0x70a   : > { %9780 = vmatpush3.msra.mxu1 %v9202_v17 }
 0x70b   : > { %9782 = vmatmul.mubr.msk.f32.vlgmr.msra.gmra.mxu1 %vm1311_vm2, %v2970_v23  ;;  %9787 = vmatprep.subr.msk.mxu1 %vm3243_vm4, %v11478_v4 }
 0x70c   : > { %9784 = vmatprep.mubr.msk.f32.mxu1 %vm1311_vm2, %v2971_v24  ;;  %9788 = vmatpush3.msk.msra.mxu1 %vm3243_vm4, %v11478_v4 }
 0x70d   : > { %9789 = vmatprep.subr.mxu1 %v11484_v29 }
 0x70e   : > { %9790 = vmatpush3.msra.mxu1 %v11484_v29 }
 0x70f   : > { %9785 = vmatmul.mubr.msk.f32.gmra.mxu1 %vm1311_vm2, %v2972_v26  ;;  %9791 = vmatprep.subr.mxu1 %v11488_v5 }
 0x710   : > { %9792 = vmatpush3.msra.mxu1 %v11488_v5 }
 0x711   : > { %9793 = vmatprep.subr.mxu1 %v11492_v28 }
 0x712   : > { %9794 = vmatpush3.msra.mxu1 %v11492_v28 }
 0x713   : > { %9795 = vmatprep.subr.mxu1 %v11496_v6 }
 0x714   : > { %9796 = vmatpush3.msra.mxu1 %v11496_v6 }
 0x715   : > { %9797 = vmatprep.subr.mxu1 %v11500_v7 }
 0x716   : > { %9798 = vmatpush3.msra.mxu1 %v11500_v7 }
 0x717   : > { %9799 = vmatprep.subr.mxu1 %v11504_v40 }
 0x718   : > { %9800 = vmatpush3.msra.mxu1 %v11504_v40 }
 0x719   : > { %9807 = vmatprep.subr.msk.mxu1 %vm3243_vm4, %v11508_v10 }
 0x7ab   : > { %v9769_v31 = vpop.f32.mrf.mxu1 }
 0x7ac   : > { %v2847_v39 = vadd.f32 %v9769_v31, %v11401_v52 }
 0x7ad   : > { %v2827_v42 = vpop.f32.mrf.mxu1 }
 0x7ae   : > { %v2846_v41 = vadd.f32 %v2827_v42, %v11403_v53 }
 0x7af   : > { %v9772_v20 = vpop.f32.mrf.mxu1 }
 0x7b0   : > { %v2849_v19 = vadd.f32 %v9772_v20, %v11405_v35 }
 0x7b1   : > { %v2837_v33 = vpop.f32.mrf.mxu1 }
 0x7b2   : > { %v2848_v46 = vadd.f32 %v2837_v33, %v11407_v55 }
 0x7cb   : > { %v9783_v34 = vpop.f32.mrf.mxu1 }
 0x7cc   : > { %v3071_v44 = vadd.f32 %v9783_v34, %v2847_v39 }
 0x7cd   : > { %v3051_v45 = vpop.f32.mrf.mxu1 }
 0x7ce   : > { %v3099_v8 = vadd.f32 %v3086_v38, %v3071_v44  ;;  %v3070_v49 = vadd.f32 %v3051_v45, %v2846_v41 }
 0x7cf   : > { %v9786_v14 = vpop.f32.mrf.mxu1 }
 0x7d0   : > { %v11420_v48 = vmax.f32 %v3099_v8, 0.0  ;;  %v3098_v18 = vadd.f32 %v3081_v13, %v3070_v49  ;;  %v3073_v21 = vadd.f32 %v9786_v14, %v2849_v19 }
 0x7d1   : > { %v3061_v47 = vpop.f32.mrf.mxu1 }
 0x7d2   : > { %v11422_v50 = vmax.f32 %v3098_v18, 0.0  ;;  %v3072_v43 = vadd.f32 %v3061_v47, %v2848_v46  ;;  %v3110_v9 = vsel %vm3106_vm3, %v11420_v48, 0.0  ;;  %v3129_v51 = vmul.f32 %v11420_v48, %v11420_v48 }
 0x7d3   : > { %3111 = vadd.xlane.f32.xlu1 %v3110_v9  ;;  %v3101_v52 = vadd.f32 %v3096_v15, %v3073_v21 }
 0x7d4   : > { %v3100_v25 = vadd.f32 %v3091_v27, %v3072_v43  ;;  %v3107_v53 = vsel %vm3106_vm3, %v11422_v50, 0.0  ;;  %v3128_v32 = vmul.f32 %v11422_v50, %v11422_v50  ;;  %v3135_v54 = vsel %vm3106_vm3, %v3129_v51, 0.0 }
 0x7d5   : > { %3108 = vadd.xlane.f32.xlu0 %v3107_v53  ;;  %v11435_v55 = vmax.f32 %v3101_v52, 0.0 }
 0x7d6   : > { %v11432_v35 = vmax.f32 %v3100_v25, 0.0  ;;  %v3132_v36 = vsel %vm3106_vm3, %v3128_v32, 0.0 }
 0x7d7   : > { %3136 = vadd.xlane.f32.xlu1 %v3135_v54  ;;  %v3116_v56 = vsel %vm3106_vm3, %v11435_v55, 0.0  ;;  %v3131_v57 = vmul.f32 %v11435_v55, %v11435_v55 }
 0x7d8   : > { %v3130_v37 = vmul.f32 %v11432_v35, %v11432_v35  ;;  %v3113_v22 = vsel %vm3106_vm3, %v11432_v35, 0.0 }
 0x7d9   : > { %3133 = vadd.xlane.f32.xlu0 %v3132_v36  ;;  %v3141_v30 = vsel %vm3106_vm3, %v3131_v57, 0.0 }
 0x7da   : > { %v3138_v11 = vsel %vm3106_vm3, %v3130_v37, 0.0 }
 0x7db   : > { %3139 = vadd.xlane.f32.xlu1 %v3138_v11 }
 0x7dd   : > { %3117 = vadd.xlane.f32.xlu0 %v3116_v56 }
 0x7e1   : > { %3114 = vadd.xlane.f32.xlu0 %v3113_v22 }
 0x7e5   : > { %3142 = vadd.xlane.f32.xlu0 %v3141_v30 }
 0x7ec   : > { %3174 = vperm.xlu1 %10652, %v3168_v58  }
 0x7f0   : > { %3202 = vperm.xlu1 %10652, %v3196_v59  }
 0x7f4   : > { %3207 = vperm.xlu1 %10652, %v3197_v60  }
 0x7f8   : > { %3189 = vperm.xlu1 %10652, %v3171_v61  }
 0x7fb   : > { %3179 = vperm.xlu0 %10651, %v3169_v62  }
 0x7fc   : > { %3217 = vperm.xlu1 %10652, %v3199_v63  }
 0x7ff   : > { %3184 = vperm.xlu0 %10651, %v3170_v0  }
 0x800   : > { %4878 = vperm.xlu1 %10652, %v4870_v1  }
 0x803   : > { %3212 = vperm.xlu0 %10651, %v3198_v2  }
 0x807   : > { %4873 = vperm.xlu0 %10651, %v4869_v3  }
 0x85c   : > { %v3112_v12 = vpop.xlane.xlu1 %3111 }
 0x85e   : > { %v3109_v16 = vpop.xlane.xlu0 %3108 }
 0x85f   : > { %v3119_v26 = vadd.f32 %v3112_v12, %v3109_v16  ;;  %v11532_v12 = vld [vmem:[#allocation4 + $0x58] sm:$0xff] }
 0x860   : > { %v3137_v23 = vpop.xlane.xlu1 %3136 }
 0x862   : > { %v3134_v17 = vpop.xlane.xlu0 %3133 }
 0x863   : > { %v3144_v31 = vadd.f32 %v3137_v23, %v3134_v17  ;;  %v11538_v17 = vld [vmem:[#allocation4 + $0x50] sm:$0xff]  ;;  %v11546_v23 = vld [vmem:[#allocation4 + $0x48] sm:$0xff] }
 0x864   : > { %v3140_v42 = vpop.xlane.xlu1 %3139 }
 0x865   : > { %v3145_v39 = vadd.f32 %v3144_v31, %v3140_v42  ;;  %v3431_v31 = vld [vmem:[#allocation7 + $0x10] sm:$0xff]  ;;  %v3332_v42 = vld [vmem:[#allocation7] sm:$0xff] }
 0x866   : > { %v3118_v24 = vpop.xlane.xlu0 %3117  ;;  %9835 = vmatprep.mubr.msk.f32.mxu0 %vm1311_vm2, %v3431_v31 }
 0x868   : > { %v3175_v52 = vpop.permute.xlu1 %3174 }
 0x86a   : > { %v3115_v20 = vpop.xlane.xlu0 %3114 }
 0x86b   : > { %v3120_v33 = vadd.f32 %v3119_v26, %v3115_v20  ;;  %v11554_v26 = vld [vmem:[#allocation4 + $0x38] sm:$0xff] }
 0x86c   : > { %v3203_v53 = vpop.permute.xlu1 %3202 }
 0x86d   : > { %v3121_v34 = vadd.f32 %v3120_v33, %v3118_v24  ;;  %v11550_v24 = vld [vmem:[#allocation4 + $0x40] sm:$0xff] }
 0x86e   : > { %v3143_v38 = vpop.xlane.xlu0 %3142 }
 0x86f   : > { %v3122_v41 = vrot.slane %v3121_v34, 4  ;;  %v3146_v44 = vadd.f32 %v3145_v39, %v3143_v38  ;;  %v3333_v38 = vld [vmem:[#allocation7 + $0x8] sm:$0xff] }
 0x870   : > { %v3208_v54 = vpop.permute.xlu1 %3207 }
 0x871   : > { %v3123_v13 = vadd.f32 %v3122_v41, %v3121_v34  ;;  %v3147_v45 = vrot.slane %v3146_v44, 4 }
 0x873   : > { %v3124_v19 = vrot.slane %v3123_v13, 2  ;;  %v3148_v8 = vadd.f32 %v3147_v45, %v3146_v44 }
 0x874   : > { %v3190_v61 = vpop.permute.xlu1 %3189 }
 0x875   : > { %v3125_v49 = vadd.f32 %v3124_v19, %v3123_v13  ;;  %v3149_v14 = vrot.slane %v3148_v8, 2  ;;  %v3432_v19 = vld [vmem:[#allocation7 + $0x18] sm:$0xff] }
 0x876   : > { %v3180_v32 = vpop.permute.xlu0 %3179 }
 0x877   : > { %v3126_v46 = vrot.slane %v3125_v49, 1  ;;  %v3150_v18 = vadd.f32 %v3149_v14, %v3148_v8  ;;  %v11569_v8 = vld [vmem:[#allocation4 + $0xa0] sm:$0x1]  ;;  %v11580_v14 = vld [vmem:[#allocation4 + $0x90] sm:$0xff] }
 0x879   : > { %v3127_v21 = vadd.f32 %v3126_v46, %v3125_v49  ;;  %v3151_v47 = vrot.slane %v3150_v18, 1  ;;  %v11571_v49 = vld [vmem:[#allocation4 + $0x98] sm:$0xff]  ;;  %v11584_v46 = vld [vmem:[#allocation4 + $0x88] sm:$0xff] }
 0x87a   : > { %v3185_v57 = vpop.permute.xlu0 %3184 }
 0x87b   : > { %v3154_v43 = vmul.f32 0.0006377551, %v3127_v21  ;;  %v3152_v9 = vadd.f32 %v3151_v47, %v3150_v18  ;;  %v11588_v18 = vld [vmem:[#allocation4 + $0x80] sm:$0xff]  ;;  %v11592_v21 = vld [vmem:[#allocation4 + $0x78] sm:$0xff]  ;;  %v11596_v47 = vld [vmem:[#allocation4 + $0x70] sm:$0xff] }
 0x87d   : > { %v3156_v15 = vmul.f32 %v3154_v43, %v3154_v43  ;;  %v3155_v27 = vmul.f32 0.0006377551, %v3152_v9  ;;  %v3160_v36 = vsub.f32 %v11422_v50, %v3154_v43  ;;  %v3161_v37 = vsub.f32 %v11420_v48, %v3154_v43 }
 0x87e   : > { %v3162_v11 = vsub.f32 %v11432_v35, %v3154_v43  ;;  %v3163_v22 = vsub.f32 %v11435_v55, %v3154_v43  ;;  %v3213_v48 = vpop.permute.xlu0 %3212  ;;  %v11524_v35 = vld [vmem:[#allocation4 + $0x60] sm:$0xff]  ;;  %v3218_v55 = vpop.permute.xlu1 %3217  ;;  %v3692_v43 = vld [vmem:[#allocation7 + $0x20] sm:$0xff] }
 0x87f   : > { %v3157_v51 = vsub.f32 %v3155_v27, %v3156_v15 }
 0x881   : > { %v3158_v25 = vadd.f32 1e-05, %v3157_v51 }
 0x883   : > { %10656 = vrsqrt.f32 %v3158_v25 }
 0x890   : > { %v10657_v56 = vpop.eup %10656 }
 0x891   : > { %v3165_v30 = vmul.f32 %v10657_v56, %v3161_v37  ;;  %v3166_v58 = vmul.f32 %v10657_v56, %v3162_v11  ;;  %v3164_v59 = vmul.f32 %v10657_v56, %v3160_v36  ;;  %v3167_v60 = vmul.f32 %v10657_v56, %v3163_v22  ;;  %v11609_v36 = vld [vmem:[#allocation4 + $0xd8] sm:$0x1]  ;;  %v11611_v37 = vld [vmem:[#allocation4 + $0xd0] sm:$0xff]  ;;  %v11620_v11 = vld [vmem:[#allocation4 + $0xc8] sm:$0xff] }
 0x892   : > { %v11624_v56 = vld [vmem:[#allocation4 + $0xc0] sm:$0xff]  ;;  %v11628_v22 = vld [vmem:[#allocation4 + $0xb8] sm:$0xff] }
 0x893   : > { %v3193_v62 = vmul.f32 %v3180_v32, %v3165_v30  ;;  %v3194_v63 = vmul.f32 %v3185_v57, %v3166_v58  ;;  %v3192_v0 = vmul.f32 %v3175_v52, %v3164_v59  ;;  %v3195_v50 = vmul.f32 %v3190_v61, %v3167_v60  ;;  %v11632_v57 = vld [vmem:[#allocation4 + $0xb0] sm:$0xff]  ;;  %v11636_v30 = vld [vmem:[#allocation4 + $0xa8] sm:$0xff] }
 0x894   : > { %v3874_v58 = vld [vmem:[#allocation7 + $0x30] sm:$0xff] }
 0x895   : > { %v11516_v1 = vadd.f32 %v3208_v54, %v3193_v62  ;;  %v11518_v2 = vadd.f32 %v3203_v53, %v3192_v0  ;;  %v11520_v3 = vadd.f32 %v3213_v48, %v3194_v63  ;;  %v11534_v16 = vadd.f32 %v3218_v55, %v3195_v50  ;;  %v3693_v54 = vld [vmem:[#allocation7 + $0x28] sm:$0xff] }
 0x897   : > { %12487 = vst [vmem:[#allocation14_spill] sm:$0xff] %v11516_v1  ;;  %12488 = vst [vmem:[#allocation15_spill] sm:$0xff] %v11518_v2  ;;  %9801 = vmatprep.mubr.msk.f32.mxu1 %vm3106_vm3, %v11518_v2 }
 0x898   : > { %12489 = vst [vmem:[#allocation16_spill] sm:$0xff] %v11520_v3  ;;  %9802 = vmatmul.mubr.msk.f32.vlgmr.msra.gmra.mxu1 %vm3106_vm3, %v11516_v1  ;;  %12490 = vst [vmem:[#allocation17_spill] sm:$0xff] %v11534_v16 }
 0x899   : > { %9808 = vmatpush3.msk.msra.mxu1 %vm3243_vm4, %v11508_v10  ;;  %9804 = vmatprep.mubr.msk.f32.mxu1 %vm3106_vm3, %v11520_v3 }
 0x89a   : > { %9809 = vmatprep.subr.mxu1 %v11524_v35 }
 0x89b   : > { %9810 = vmatpush3.msra.mxu1 %v11524_v35 }
 0x89c   : > { %9811 = vmatprep.subr.mxu1 %v11532_v12  ;;  %9805 = vmatmul.mubr.msk.f32.gmra.mxu1 %vm3106_vm3, %v11534_v16 }
 0x89d   : > { %9812 = vmatpush3.msra.mxu1 %v11532_v12  ;;  %9821 = vmatprep.mubr.msk.f32.mxu1 %vm3106_vm3, %v11518_v2 }
 0x89e   : > { %9813 = vmatprep.subr.mxu1 %v11538_v17 }
 0x89f   : > { %9814 = vmatpush3.msra.mxu1 %v11538_v17 }
 0x8a0   : > { %9815 = vmatprep.subr.mxu1 %v11546_v23 }
 0x8a1   : > { %9816 = vmatpush3.msra.mxu1 %v11546_v23 }
 0x8a2   : > { %9817 = vmatprep.subr.mxu1 %v11550_v24 }
 0x8a3   : > { %9818 = vmatpush3.msra.mxu1 %v11550_v24 }
 0x8a4   : > { %9819 = vmatprep.subr.mxu1 %v11554_v26 }
 0x8a5   : > { %9820 = vmatpush3.msra.mxu1 %v11554_v26 }
 0x8a6   : > { %9822 = vmatmul.mubr.msk.f32.vlgmr.msra.gmra.mxu1 %vm3106_vm3, %v11516_v1 }
 0x8a7   : > { %9824 = vmatprep.mubr.msk.f32.mxu1 %vm3106_vm3, %v11520_v3 }
 0x8aa   : > { %9825 = vmatmul.mubr.msk.f32.gmra.mxu1 %vm3106_vm3, %v11534_v16 }
 0x8ab   : > { %9846 = vmatprep.mubr.msk.f32.mxu1 %vm1311_vm2, %v3332_v42  ;;  %v3875_v42 = vld [vmem:[#allocation7 + $0x38] sm:$0xff] }
 0x958   : > { %v9803_v20 = vpop.f32.mrf.mxu1 }
 0x95a   : > { %v3313_v33 = vpop.f32.mrf.mxu1 }
 0x95c   : > { %v9806_v39 = vpop.f32.mrf.mxu1 }
 0x95d   : > { %9838 = vmatprep.subr.mxu1 %v9806_v39 }
 0x95e   : > { %v3323_v34 = vpop.f32.mrf.mxu1  ;;  %9839 = vmatpush3.msra.mxu1 %v9806_v39  ;;  %v11660_v39 = vld [vmem:[#allocation4 + $0x100] sm:$0xff] }
 0x95f   : > { %9840 = vmatprep.subr.mxu1 %v3323_v34 }
 0x960   : > { %9841 = vmatpush3.msra.mxu1 %v3323_v34  ;;  %v11664_v34 = vld [vmem:[#allocation4 + $0xf8] sm:$0xff] }
 0x961   : > { %9842 = vmatprep.subr.mxu1 %v9803_v20 }
 0x962   : > { %9843 = vmatpush3.msra.mxu1 %v9803_v20  ;;  %v11649_v20 = vld [vmem:[#allocation4 + $0x110] sm:$0x1] }
 0x963   : > { %9844 = vmatprep.subr.mxu1 %v3313_v33 }
 0x964   : > { %9845 = vmatpush3.msra.mxu1 %v3313_v33  ;;  %v11651_v33 = vld [vmem:[#allocation4 + $0x108] sm:$0xff] }
 0x965   : > { %9847 = vmatmul.mubr.msk.f32.vlgmr.msra.gmra.mxu1 %vm1311_vm2, %v3333_v38  ;;  %v11668_v38 = vld [vmem:[#allocation4 + $0xf0] sm:$0xff] }
 0x966   : > { %v9823_v41 = vpop.f32.mrf.mxu1  ;;  %9877 = vmatprep.mubr.msk.f32.mxu1 %vm1311_vm2, %v3692_v43 }
 0x968   : > { %v3411_v44 = vpop.f32.mrf.mxu1 }
 0x96a   : > { %v9826_v13 = vpop.f32.mrf.mxu1 }
 0x96b   : > { %9827 = vmatprep.subr.mxu0 %v9826_v13 }
 0x96c   : > { %v3421_v45 = vpop.f32.mrf.mxu1  ;;  %9828 = vmatpush3.msra.mxu0 %v9826_v13  ;;  %v4056_v13 = vld [vmem:[#allocation7 + $0x40] sm:$0xff] }
 0x96d   : > { %9829 = vmatprep.subr.mxu0 %v3421_v45 }
 0x96e   : > { %9830 = vmatpush3.msra.mxu0 %v3421_v45 }
 0x96f   : > { %9831 = vmatprep.subr.mxu0 %v9823_v41 }
 0x970   : > { %9832 = vmatpush3.msra.mxu0 %v9823_v41  ;;  %v11672_v41 = vld [vmem:[#allocation4 + $0xe8] sm:$0xff] }
 0x971   : > { %9833 = vmatprep.subr.mxu0 %v3411_v44 }
 0x972   : > { %9834 = vmatpush3.msra.mxu0 %v3411_v44  ;;  %v11676_v44 = vld [vmem:[#allocation4 + $0xe0] sm:$0xff] }
 0x973   : > { %9836 = vmatmul.mubr.msk.f32.vlgmr.msra.gmra.mxu0 %vm1311_vm2, %v3432_v19  ;;  %9849 = vmatprep.subr.msk.mxu0 %vm3243_vm4, %v11569_v8 }
 0x974   : > { %9850 = vmatpush3.msk.msra.mxu0 %vm3243_vm4, %v11569_v8  ;;  %9863 = vmatprep.mubr.msk.f32.mxu0 %vm3106_vm3, %v11518_v2 }
 0x975   : > { %9851 = vmatprep.subr.mxu0 %v11571_v49 }
 0x976   : > { %9852 = vmatpush3.msra.mxu0 %v11571_v49 }
 0x977   : > { %9853 = vmatprep.subr.mxu0 %v11580_v14 }
 0x978   : > { %9854 = vmatpush3.msra.mxu0 %v11580_v14 }
 0x979   : > { %9855 = vmatprep.subr.mxu0 %v11584_v46 }
 0x97a   : > { %9856 = vmatpush3.msra.mxu0 %v11584_v46 }
 0x97b   : > { %9857 = vmatprep.subr.mxu0 %v11588_v18 }
 0x97c   : > { %9858 = vmatpush3.msra.mxu0 %v11588_v18 }
 0x97d   : > { %9859 = vmatprep.subr.mxu0 %v11592_v21 }
 0x97e   : > { %9860 = vmatpush3.msra.mxu0 %v11592_v21 }
 0x97f   : > { %9861 = vmatprep.subr.mxu0 %v11596_v47 }
 0x980   : > { %9862 = vmatpush3.msra.mxu0 %v11596_v47 }
 0x981   : > { %9864 = vmatmul.mubr.msk.f32.vlgmr.msra.gmra.mxu0 %vm3106_vm3, %v11516_v1 }
 0x982   : > { %9866 = vmatprep.mubr.msk.f32.mxu0 %vm3106_vm3, %v11520_v3 }
 0x985   : > { %9867 = vmatmul.mubr.msk.f32.gmra.mxu0 %vm3106_vm3, %v11534_v16 }
 0x986   : > { %9908 = vmatprep.mubr.msk.f32.mxu0 %vm1311_vm2, %v3874_v58  ;;  %v11704_v58 = vld [vmem:[#allocation4 + $0x130] sm:$0xff] }
 0xa25   : > { %v9848_v9 = vpop.f32.mrf.mxu1 }
 0xa27   : > { %v3586_v59 = vpop.f32.mrf.mxu1 }
 0xa33   : > { %v9837_v15 = vpop.f32.mrf.mxu0 }
 0xa34   : > { %v3592_v27 = vadd.f32 %v9848_v9, %v9837_v15 }
 0xa35   : > { %v3505_v51 = vpop.f32.mrf.mxu0 }
 0xa36   : > { %v3587_v61 = vadd.f32 %v3586_v59, %v3505_v51  ;;  %v11708_v59 = vld [vmem:[#allocation4 + $0x128] sm:$0xff] }
 0xa41   : > { %v9865_v52 = vpop.f32.mrf.mxu0 }
 0xa43   : > { %v3672_v25 = vpop.f32.mrf.mxu0 }
 0xa45   : > { %v9868_v53 = vpop.f32.mrf.mxu0 }
 0xa46   : > { %9869 = vmatprep.subr.mxu1 %v9868_v53 }
 0xa47   : > { %v3682_v32 = vpop.f32.mrf.mxu0  ;;  %9870 = vmatpush3.msra.mxu1 %v9868_v53  ;;  %v11689_v53 = vld [vmem:[#allocation4 + $0x148] sm:$0x1] }
 0xa48   : > { %9871 = vmatprep.subr.mxu1 %v3682_v32 }
 0xa49   : > { %9872 = vmatpush3.msra.mxu1 %v3682_v32  ;;  %v11691_v32 = vld [vmem:[#allocation4 + $0x140] sm:$0xff] }
 0xa4a   : > { %9873 = vmatprep.subr.mxu1 %v9865_v52 }
 0xa4b   : > { %9874 = vmatpush3.msra.mxu1 %v9865_v52 }
 0xa4c   : > { %9875 = vmatprep.subr.mxu1 %v3672_v25 }
 0xa4d   : > { %9876 = vmatpush3.msra.mxu1 %v3672_v25  ;;  %v4057_v25 = vld [vmem:[#allocation7 + $0x48] sm:$0xff] }
 0xa4e   : > { %9878 = vmatmul.mubr.msk.f32.vlgmr.msra.gmra.mxu1 %vm1311_vm2, %v3693_v54  ;;  %9880 = vmatprep.subr.msk.mxu1 %vm3243_vm4, %v11609_v36  ;;  %v11700_v54 = vld [vmem:[#allocation4 + $0x138] sm:$0xff] }
 0xa4f   : > { %9881 = vmatpush3.msk.msra.mxu1 %vm3243_vm4, %v11609_v36  ;;  %9894 = vmatprep.mubr.msk.f32.mxu1 %vm3106_vm3, %v11518_v2 }
 0xa50   : > { %9882 = vmatprep.subr.mxu1 %v11611_v37 }
 0xa51   : > { %9883 = vmatpush3.msra.mxu1 %v11611_v37 }
 0xa52   : > { %9884 = vmatprep.subr.mxu1 %v11620_v11 }
 0xa53   : > { %9885 = vmatpush3.msra.mxu1 %v11620_v11 }
 0xa54   : > { %9886 = vmatprep.subr.mxu1 %v11624_v56 }
 0xa55   : > { %9887 = vmatpush3.msra.mxu1 %v11624_v56 }
 0xa56   : > { %9888 = vmatprep.subr.mxu1 %v11628_v22 }
 0xa57   : > { %9889 = vmatpush3.msra.mxu1 %v11628_v22 }
 0xa58   : > { %9890 = vmatprep.subr.mxu1 %v11632_v57 }
 0xa59   : > { %9891 = vmatpush3.msra.mxu1 %v11632_v57 }
 0xa5a   : > { %9892 = vmatprep.subr.mxu1 %v11636_v30 }
 0xa5b   : > { %9893 = vmatpush3.msra.mxu1 %v11636_v30 }
 0xa5c   : > { %9895 = vmatmul.mubr.msk.f32.vlgmr.msra.gmra.mxu1 %vm3106_vm3, %v11516_v1 }
 0xa5d   : > { %9897 = vmatprep.mubr.msk.f32.mxu1 %vm3106_vm3, %v11520_v3 }
 0xa60   : > { %9898 = vmatmul.mubr.msk.f32.gmra.mxu1 %vm3106_vm3, %v11534_v16 }
 0xa61   : > { %9939 = vmatprep.mubr.msk.f32.mxu1 %vm1311_vm2, %v4056_v13 }
 0xb0e   : > { %v9879_v60 = vpop.f32.mrf.mxu1 }
 0xb0f   : > { %v3776_v62 = vadd.f32 %v9879_v60, %v3592_v27  ;;  %v11712_v60 = vld [vmem:[#allocation4 + $0x120] sm:$0xff] }
 0xb10   : > { %v3766_v63 = vpop.f32.mrf.mxu1 }
 0xb11   : > { %v3775_v0 = vadd.f32 %v3766_v63, %v3587_v61  ;;  %v11716_v61 = vld [vmem:[#allocation4 + $0x118] sm:$0xff] }
 0xb1c   : > { %v9896_v50 = vpop.f32.mrf.mxu1 }
 0xb1e   : > { %v3854_v48 = vpop.f32.mrf.mxu1 }
 0xb20   : > { %v9899_v55 = vpop.f32.mrf.mxu1 }
 0xb21   : > { %9900 = vmatprep.subr.mxu0 %v9899_v55 }
 0xb22   : > { %v3864_v31 = vpop.f32.mrf.mxu1  ;;  %9901 = vmatpush3.msra.mxu0 %v9899_v55 }
 0xb23   : > { %9902 = vmatprep.subr.mxu0 %v3864_v31 }
 0xb24   : > { %9903 = vmatpush3.msra.mxu0 %v3864_v31 }
 0xb25   : > { %9904 = vmatprep.subr.mxu0 %v9896_v50 }
 0xb26   : > { %9905 = vmatpush3.msra.mxu0 %v9896_v50 }
 0xb27   : > { %9906 = vmatprep.subr.mxu0 %v3854_v48 }
 0xb28   : > { %9907 = vmatpush3.msra.mxu0 %v3854_v48 }
 0xb29   : > { %9909 = vmatmul.mubr.msk.f32.vlgmr.msra.gmra.mxu0 %vm1311_vm2, %v3875_v42  ;;  %9911 = vmatprep.subr.msk.mxu0 %vm3243_vm4, %v11649_v20 }
 0xb2a   : > { %9912 = vmatpush3.msk.msra.mxu0 %vm3243_vm4, %v11649_v20  ;;  %9925 = vmatprep.mubr.msk.f32.mxu0 %vm3106_vm3, %v11518_v2 }
 0xb2b   : > { %9913 = vmatprep.subr.mxu0 %v11651_v33 }
 0xb2c   : > { %9914 = vmatpush3.msra.mxu0 %v11651_v33 }
 0xb2d   : > { %9915 = vmatprep.subr.mxu0 %v11660_v39 }
 0xb2e   : > { %9916 = vmatpush3.msra.mxu0 %v11660_v39 }
 0xb2f   : > { %9917 = vmatprep.subr.mxu0 %v11664_v34 }
 0xb30   : > { %9918 = vmatpush3.msra.mxu0 %v11664_v34 }
 0xb31   : > { %9919 = vmatprep.subr.mxu0 %v11668_v38 }
 0xb32   : > { %9920 = vmatpush3.msra.mxu0 %v11668_v38 }
 0xb33   : > { %9921 = vmatprep.subr.mxu0 %v11672_v41 }
 0xb34   : > { %9922 = vmatpush3.msra.mxu0 %v11672_v41 }
 0xb35   : > { %9923 = vmatprep.subr.mxu0 %v11676_v44 }
 0xb36   : > { %9924 = vmatpush3.msra.mxu0 %v11676_v44 }
 0xb37   : > { %9926 = vmatmul.mubr.msk.f32.vlgmr.msra.gmra.mxu0 %vm3106_vm3, %v11516_v1 }
 0xb38   : > { %9928 = vmatprep.mubr.msk.f32.mxu0 %vm3106_vm3, %v11520_v3 }
 0xb3b   : > { %9929 = vmatmul.mubr.msk.f32.gmra.mxu0 %vm3106_vm3, %v11534_v16 }
 0xbe9   : > { %v9910_v45 = vpop.f32.mrf.mxu0 }
 0xbea   : > { %v3958_v19 = vadd.f32 %v9910_v45, %v3776_v62  ;;  %v4238_v62 = vld [vmem:[#allocation7 + $0x50] sm:$0xff]  ;;  %v4239_v45 = vld [vmem:[#allocation7 + $0x58] sm:$0xff] }
 0xbeb   : > { %v3948_v43 = vpop.f32.mrf.mxu0  ;;  %9970 = vmatprep.mubr.msk.f32.mxu0 %vm1311_vm2, %v4238_v62 }
 0xbec   : > { %v3957_v9 = vadd.f32 %v3948_v43, %v3775_v0  ;;  %v11729_v43 = vld [vmem:[#allocation4 + $0x180] sm:$0x1] }
 0xbf7   : > { %v9927_v15 = vpop.f32.mrf.mxu0 }
 0xbf9   : > { %v4036_v27 = vpop.f32.mrf.mxu0 }
 0xbfb   : > { %v9930_v51 = vpop.f32.mrf.mxu0 }
 0xbfc   : > { %9931 = vmatprep.subr.mxu1 %v9930_v51 }
 0xbfd   : > { %v4046_v52 = vpop.f32.mrf.mxu0  ;;  %9932 = vmatpush3.msra.mxu1 %v9930_v51  ;;  %v11752_v51 = vld [vmem:[#allocation4 + $0x158] sm:$0xff] }
 0xbfe   : > { %9933 = vmatprep.subr.mxu1 %v4046_v52  ;;  %12491 = vst [vmem:[#allocation18_spill] sm:$0xff] %v11752_v51 }
 0xbff   : > { %9934 = vmatpush3.msra.mxu1 %v4046_v52  ;;  %v11756_v52 = vld [vmem:[#allocation4 + $0x150] sm:$0xff] }
 0xc00   : > { %9935 = vmatprep.subr.mxu1 %v9927_v15  ;;  %12492 = vst [vmem:[#allocation19_spill] sm:$0xff] %v11756_v52 }
 0xc01   : > { %9936 = vmatpush3.msra.mxu1 %v9927_v15  ;;  %v11731_v15 = vld [vmem:[#allocation4 + $0x178] sm:$0xff] }
 0xc02   : > { %9937 = vmatprep.subr.mxu1 %v4036_v27 }
 0xc03   : > { %9938 = vmatpush3.msra.mxu1 %v4036_v27  ;;  %v11748_v27 = vld [vmem:[#allocation4 + $0x160] sm:$0xff] }
 0xc04   : > { %9940 = vmatmul.mubr.msk.f32.vlgmr.msra.gmra.mxu1 %vm1311_vm2, %v4057_v25  ;;  %9942 = vmatprep.subr.msk.mxu1 %vm3243_vm4, %v11689_v53  ;;  %v4420_v25 = vld [vmem:[#allocation7 + $0x60] sm:$0xff] }
 0xc05   : > { %9943 = vmatpush3.msk.msra.mxu1 %vm3243_vm4, %v11689_v53  ;;  %9956 = vmatprep.mubr.msk.f32.mxu1 %vm3106_vm3, %v11518_v2 }
 0xc06   : > { %9944 = vmatprep.subr.mxu1 %v11691_v32 }
 0xc07   : > { %9945 = vmatpush3.msra.mxu1 %v11691_v32 }
 0xc08   : > { %9946 = vmatprep.subr.mxu1 %v11700_v54 }
 0xc09   : > { %9947 = vmatpush3.msra.mxu1 %v11700_v54 }
 0xc0a   : > { %9948 = vmatprep.subr.mxu1 %v11704_v58 }
 0xc0b   : > { %9949 = vmatpush3.msra.mxu1 %v11704_v58 }
 0xc0c   : > { %9950 = vmatprep.subr.mxu1 %v11708_v59 }
 0xc0d   : > { %9951 = vmatpush3.msra.mxu1 %v11708_v59 }
 0xc0e   : > { %9952 = vmatprep.subr.mxu1 %v11712_v60 }
 0xc0f   : > { %9953 = vmatpush3.msra.mxu1 %v11712_v60 }
 0xc10   : > { %9954 = vmatprep.subr.mxu1 %v11716_v61 }
 0xc11   : > { %9955 = vmatpush3.msra.mxu1 %v11716_v61 }
 0xc12   : > { %9957 = vmatmul.mubr.msk.f32.vlgmr.msra.gmra.mxu1 %vm3106_vm3, %v11516_v1 }
 0xc13   : > { %9959 = vmatprep.mubr.msk.f32.mxu1 %vm3106_vm3, %v11520_v3 }
 0xc16   : > { %9960 = vmatmul.mubr.msk.f32.gmra.mxu1 %vm3106_vm3, %v11534_v16 }
 0xc17   : > { %10001 = vmatprep.mubr.msk.f32.mxu1 %vm1311_vm2, %v4420_v25  ;;  %v11771_v25 = vld [vmem:[#allocation4 + $0x1b0] sm:$0xff] }
 0xc18   : > { %12494 = vst [vmem:[#allocation21_spill] sm:$0xff] %v11771_v25 }
 0xcc4   : > { %v9941_v63 = vpop.f32.mrf.mxu1 }
 0xcc5   : > { %v4140_v0 = vadd.f32 %v9941_v63, %v3958_v19  ;;  %v11740_v19 = vld [vmem:[#allocation4 + $0x170] sm:$0xff] }
 0xcc6   : > { %v4130_v50 = vpop.f32.mrf.mxu1 }
 0xcc7   : > { %v4139_v48 = vadd.f32 %v4130_v50, %v3957_v9  ;;  %v11744_v9 = vld [vmem:[#allocation4 + $0x168] sm:$0xff] }
 0xcd2   : > { %v9958_v55 = vpop.f32.mrf.mxu1 }
 0xcd4   : > { %v4218_v31 = vpop.f32.mrf.mxu1 }
 0xcd6   : > { %v9961_v42 = vpop.f32.mrf.mxu1 }
 0xcd7   : > { %9962 = vmatprep.subr.mxu0 %v9961_v42 }
 0xcd8   : > { %v4228_v13 = vpop.f32.mrf.mxu1  ;;  %9963 = vmatpush3.msra.mxu0 %v9961_v42 }
 0xcd9   : > { %9964 = vmatprep.subr.mxu0 %v4228_v13 }
 0xcda   : > { %9965 = vmatpush3.msra.mxu0 %v4228_v13 }
 0xcdb   : > { %9966 = vmatprep.subr.mxu0 %v9958_v55 }
 0xcdc   : > { %9967 = vmatpush3.msra.mxu0 %v9958_v55 }
 0xcdd   : > { %9968 = vmatprep.subr.mxu0 %v4218_v31 }
 0xcde   : > { %9969 = vmatpush3.msra.mxu0 %v4218_v31 }
 0xcdf   : > { %9971 = vmatmul.mubr.msk.f32.vlgmr.msra.gmra.mxu0 %vm1311_vm2, %v4239_v45  ;;  %9973 = vmatprep.subr.msk.mxu0 %vm3243_vm4, %v11729_v43 }
 0xce0   : > { %9974 = vmatpush3.msk.msra.mxu0 %vm3243_vm4, %v11729_v43  ;;  %9987 = vmatprep.mubr.msk.f32.mxu0 %vm3106_vm3, %v11518_v2 }
 0xce1   : > { %9975 = vmatprep.subr.mxu0 %v11731_v15 }
 0xce2   : > { %9976 = vmatpush3.msra.mxu0 %v11731_v15 }
 0xce3   : > { %9977 = vmatprep.subr.mxu0 %v11740_v19 }
 0xce4   : > { %9978 = vmatpush3.msra.mxu0 %v11740_v19 }
 0xce5   : > { %9979 = vmatprep.subr.mxu0 %v11744_v9 }
 0xce6   : > { %9980 = vmatpush3.msra.mxu0 %v11744_v9 }
 0xce7   : > { %9981 = vmatprep.subr.mxu0 %v11748_v27 }
 0xce8   : > { %9982 = vmatpush3.msra.mxu0 %v11748_v27 }
 0xce9   : > { %9983 = vmatprep.subr.mxu0 %v11752_v51 }
 0xcea   : > { %9984 = vmatpush3.msra.mxu0 %v11752_v51  ;;  %v11769_v51 = vld [vmem:[#allocation4 + $0x1b8] sm:$0x1] }
 0xceb   : > { %9985 = vmatprep.subr.mxu0 %v11756_v52  ;;  %12493 = vst [vmem:[#allocation20_spill] sm:$0xff] %v11769_v51 }
 0xcec   : > { %9986 = vmatpush3.msra.mxu0 %v11756_v52  ;;  %v4421_v52 = vld [vmem:[#allocation7 + $0x68] sm:$0xff] }
 0xced   : > { %9988 = vmatmul.mubr.msk.f32.vlgmr.msra.gmra.mxu0 %vm3106_vm3, %v11516_v1 }
 0xcee   : > { %9990 = vmatprep.mubr.msk.f32.mxu0 %vm3106_vm3, %v11520_v3 }
 0xcf1   : > { %9991 = vmatmul.mubr.msk.f32.gmra.mxu0 %vm3106_vm3, %v11534_v16 }
 0xd9f   : > { %v9972_v62 = vpop.f32.mrf.mxu0 }
 0xda0   : > { %v4322_v63 = vadd.f32 %v9972_v62, %v4140_v0  ;;  %v11780_v0 = vld [vmem:[#allocation4 + $0x1a8] sm:$0xff]  ;;  %v11792_v62 = vld [vmem:[#allocation4 + $0x190] sm:$0xff] }
 0xda1   : > { %v4312_v50 = vpop.f32.mrf.mxu0  ;;  %12495 = vst [vmem:[#allocation22_spill] sm:$0xff] %v11780_v0  ;;  %12498 = vst [vmem:[#allocation25_spill] sm:$0xff] %v11792_v62 }
 0xda2   : > { %v4321_v55 = vadd.f32 %v4312_v50, %v4139_v48  ;;  %v11784_v48 = vld [vmem:[#allocation4 + $0x1a0] sm:$0xff]  ;;  %v11796_v50 = vld [vmem:[#allocation4 + $0x188] sm:$0xff] }
 0xda3   : > { %12496 = vst [vmem:[#allocation23_spill] sm:$0xff] %v11784_v48  ;;  %12499 = vst [vmem:[#allocation26_spill] sm:$0xff] %v11796_v50 }
 0xdad   : > { %v9989_v31 = vpop.f32.mrf.mxu0 }
 0xdaf   : > { %v4400_v42 = vpop.f32.mrf.mxu0 }
 0xdb1   : > { %v9992_v13 = vpop.f32.mrf.mxu0 }
 0xdb2   : > { %9993 = vmatprep.subr.mxu1 %v9992_v13 }
 0xdb3   : > { %v4410_v45 = vpop.f32.mrf.mxu0  ;;  %9994 = vmatpush3.msra.mxu1 %v9992_v13 }
 0xdb4   : > { %9995 = vmatprep.subr.mxu1 %v4410_v45 }
 0xdb5   : > { %9996 = vmatpush3.msra.mxu1 %v4410_v45 }
 0xdb6   : > { %9997 = vmatprep.subr.mxu1 %v9989_v31 }
 0xdb7   : > { %9998 = vmatpush3.msra.mxu1 %v9989_v31  ;;  %v4602_v31 = vld [vmem:[#allocation7 + $0x70] sm:$0xff] }
 0xdb8   : > { %9999 = vmatprep.subr.mxu1 %v4400_v42  ;;  %10032 = vmatprep.mubr.msk.f32.mxu0 %vm1311_vm2, %v4602_v31  ;;  %v11811_v31 = vld [vmem:[#allocation4 + $0x1e8] sm:$0xff] }
 0xdb9   : > { %10000 = vmatpush3.msra.mxu1 %v4400_v42 }
 0xdba   : > { %10002 = vmatmul.mubr.msk.f32.vlgmr.msra.gmra.mxu1 %vm1311_vm2, %v4421_v52  ;;  %10004 = vmatprep.subr.msk.mxu1 %vm3243_vm4, %v11769_v51  ;;  %v11788_v52 = vld [vmem:[#allocation4 + $0x198] sm:$0xff] }
 0xdbb   : > { %10005 = vmatpush3.msk.msra.mxu1 %vm3243_vm4, %v11769_v51  ;;  %10018 = vmatprep.mubr.msk.f32.mxu1 %vm3106_vm3, %v11518_v2  ;;  %12497 = vst [vmem:[#allocation24_spill] sm:$0xff] %v11788_v52  ;;  %v11809_v51 = vld [vmem:[#allocation4 + $0x1f0] sm:$0x1] }
 0xdbc   : > { %10006 = vmatprep.subr.mxu1 %v11771_v25 }
 0xdbd   : > { %10007 = vmatpush3.msra.mxu1 %v11771_v25  ;;  %v4603_v25 = vld [vmem:[#allocation7 + $0x78] sm:$0xff] }
 0xdbe   : > { %10008 = vmatprep.subr.mxu1 %v11780_v0 }
 0xdbf   : > { %10009 = vmatpush3.msra.mxu1 %v11780_v0 }
 0xdc0   : > { %10010 = vmatprep.subr.mxu1 %v11784_v48 }
 0xdc1   : > { %10011 = vmatpush3.msra.mxu1 %v11784_v48 }
 0xdc2   : > { %10012 = vmatprep.subr.mxu1 %v11788_v52 }
 0xdc3   : > { %10013 = vmatpush3.msra.mxu1 %v11788_v52 }
 0xdc4   : > { %10014 = vmatprep.subr.mxu1 %v11792_v62 }
 0xdc5   : > { %10015 = vmatpush3.msra.mxu1 %v11792_v62 }
 0xdc6   : > { %10016 = vmatprep.subr.mxu1 %v11796_v50 }
 0xdc7   : > { %10017 = vmatpush3.msra.mxu1 %v11796_v50 }
 0xdc8   : > { %10019 = vmatmul.mubr.msk.f32.vlgmr.msra.gmra.mxu1 %vm3106_vm3, %v11516_v1 }
 0xdc9   : > { %10021 = vmatprep.mubr.msk.f32.mxu1 %vm3106_vm3, %v11520_v3 }
 0xdcc   : > { %10022 = vmatmul.mubr.msk.f32.gmra.mxu1 %vm3106_vm3, %v11534_v16 }
 0xe7a   : > { %v10003_v42 = vpop.f32.mrf.mxu1 }
 0xe7b   : > { %v4504_v13 = vadd.f32 %v10003_v42, %v4322_v63  ;;  %v11820_v63 = vld [vmem:[#allocation4 + $0x1e0] sm:$0xff] }
 0xe7c   : > { %v4494_v45 = vpop.f32.mrf.mxu1 }
 0xe7d   : > { %v4503_v62 = vadd.f32 %v4494_v45, %v4321_v55  ;;  %v11824_v55 = vld [vmem:[#allocation4 + $0x1d8] sm:$0xff] }
 0xe88   : > { %v10020_v52 = vpop.f32.mrf.mxu1 }
 0xe8a   : > { %v4582_v48 = vpop.f32.mrf.mxu1 }
 0xe8c   : > { %v10023_v0 = vpop.f32.mrf.mxu1 }
 0xe8d   : > { %10024 = vmatprep.subr.mxu0 %v10023_v0 }
 0xe8e   : > { %v4592_v50 = vpop.f32.mrf.mxu1  ;;  %10025 = vmatpush3.msra.mxu0 %v10023_v0  ;;  %v11832_v0 = vld [vmem:[#allocation4 + $0x1c8] sm:$0xff] }
 0xe8f   : > { %10026 = vmatprep.subr.mxu0 %v4592_v50 }
 0xe90   : > { %10027 = vmatpush3.msra.mxu0 %v4592_v50 }
 0xe91   : > { %10028 = vmatprep.subr.mxu0 %v10020_v52 }
 0xe92   : > { %10029 = vmatpush3.msra.mxu0 %v10020_v52 }
 0xe93   : > { %10030 = vmatprep.subr.mxu0 %v4582_v48 }
 0xe94   : > { %10031 = vmatpush3.msra.mxu0 %v4582_v48  ;;  %v11836_v48 = vld [vmem:[#allocation4 + $0x1c0] sm:$0xff] }
 0xe95   : > { %10033 = vmatmul.mubr.msk.f32.vlgmr.msra.gmra.mxu0 %vm1311_vm2, %v4603_v25  ;;  %10035 = vmatprep.subr.msk.mxu0 %vm3243_vm4, %v11809_v51  ;;  %v11828_v25 = vld [vmem:[#allocation4 + $0x1d0] sm:$0xff]  ;;  %12500 = vst [vmem:[#allocation27_spill] sm:$0xff] %v11836_v48 }
 0xe96   : > { %10036 = vmatpush3.msk.msra.mxu0 %vm3243_vm4, %v11809_v51  ;;  %10049 = vmatprep.mubr.msk.f32.mxu0 %vm3106_vm3, %v11518_v2 }
 0xe97   : > { %10037 = vmatprep.subr.mxu0 %v11811_v31 }
 0xe98   : > { %10038 = vmatpush3.msra.mxu0 %v11811_v31 }
 0xe99   : > { %10039 = vmatprep.subr.mxu0 %v11820_v63 }
 0xe9a   : > { %10040 = vmatpush3.msra.mxu0 %v11820_v63 }
 0xe9b   : > { %10041 = vmatprep.subr.mxu0 %v11824_v55 }
 0xe9c   : > { %10042 = vmatpush3.msra.mxu0 %v11824_v55 }
 0xe9d   : > { %10043 = vmatprep.subr.mxu0 %v11828_v25 }
 0xe9e   : > { %10044 = vmatpush3.msra.mxu0 %v11828_v25 }
 0xe9f   : > { %10045 = vmatprep.subr.mxu0 %v11832_v0 }
 0xea0   : > { %10046 = vmatpush3.msra.mxu0 %v11832_v0 }
 0xea1   : > { %10047 = vmatprep.subr.mxu0 %v11836_v48 }
 0xea2   : > { %10048 = vmatpush3.msra.mxu0 %v11836_v48 }
 0xea3   : > { %10050 = vmatmul.mubr.msk.f32.vlgmr.msra.gmra.mxu0 %vm3106_vm3, %v11516_v1  ;;  %10083 = vmatprep.subr.msk.mxu0 %vm3243_vm4, %v11508_v10 }
 0xea4   : > { %10052 = vmatprep.mubr.msk.f32.mxu0 %vm3106_vm3, %v11520_v3  ;;  %10084 = vmatpush3.msk.msra.mxu0 %vm3243_vm4, %v11508_v10  ;;  %v4784_v10 = vld [vmem:[#allocation7 + $0x80] sm:$0xff] }
 0xea5   : > { %10085 = vmatprep.subr.mxu0 %v11524_v35  ;;  %10063 = vmatprep.mubr.msk.f32.mxu1 %vm1311_vm2, %v4784_v10  ;;  %v4874_v10 = vpop.permute.xlu0 %4873 }
 0xea6   : > { %10086 = vmatpush3.msra.mxu0 %v11524_v35 }
 0xea7   : > { %10053 = vmatmul.mubr.msk.f32.gmra.mxu0 %vm3106_vm3, %v11534_v16  ;;  %10087 = vmatprep.subr.mxu0 %v11532_v12 }
 0xea8   : > { %10088 = vmatpush3.msra.mxu0 %v11532_v12 }
 0xea9   : > { %10089 = vmatprep.subr.mxu0 %v11538_v17 }
 0xeaa   : > { %10090 = vmatpush3.msra.mxu0 %v11538_v17 }
 0xeab   : > { %10091 = vmatprep.subr.mxu0 %v11546_v23 }
 0xeac   : > { %10092 = vmatpush3.msra.mxu0 %v11546_v23 }
 0xead   : > { %10093 = vmatprep.subr.mxu0 %v11550_v24 }
 0xeae   : > { %10094 = vmatpush3.msra.mxu0 %v11550_v24  ;;  %v4785_v24 = vld [vmem:[#allocation7 + $0x88] sm:$0xff] }
 0xeaf   : > { %10095 = vmatprep.subr.mxu0 %v11554_v26 }
 0xeb0   : > { %10096 = vmatpush3.msra.mxu0 %v11554_v26  ;;  %v4879_v26 = vpop.permute.xlu1 %4878 }
 0xf55   : > { %v10034_v35 = vpop.f32.mrf.mxu0 }
 0xf56   : > { %v4686_v12 = vadd.f32 %v10034_v35, %v4504_v13 }
 0xf57   : > { %v4676_v52 = vpop.f32.mrf.mxu0 }
 0xf58   : > { %v4685_v50 = vadd.f32 %v4676_v52, %v4503_v62 }
 0xf63   : > { %v10051_v17 = vpop.f32.mrf.mxu0 }
 0xf65   : > { %v4764_v42 = vpop.f32.mrf.mxu0 }
 0xf67   : > { %v10054_v45 = vpop.f32.mrf.mxu0 }
 0xf68   : > { %10055 = vmatprep.subr.mxu1 %v10054_v45 }
 0xf69   : > { %v4774_v23 = vpop.f32.mrf.mxu0  ;;  %10056 = vmatpush3.msra.mxu1 %v10054_v45  ;;  %v4938_v45 = vld [vmem:[%s12427_s14] sm:$0xff] }
 0xf6a   : > { %10057 = vmatprep.subr.mxu1 %v4774_v23 }
 0xf6b   : > { %10058 = vmatpush3.msra.mxu1 %v4774_v23  ;;  %v4939_v23 = vld [vmem:[%s12427_s14 + $0x8] sm:$0xff] }
 0xf6c   : > { %10059 = vmatprep.subr.mxu1 %v10051_v17 }
 0xf6d   : > { %10060 = vmatpush3.msra.mxu1 %v10051_v17 }
 0xf6e   : > { %10061 = vmatprep.subr.mxu1 %v4764_v42 }
 0xf6f   : > { %10062 = vmatpush3.msra.mxu1 %v4764_v42 }
 0xf70   : > { %10064 = vmatmul.mubr.msk.f32.vlgmr.msra.gmra.mxu1 %vm1311_vm2, %v4785_v24  ;;  %10066 = vmatprep.subr.msk.mxu1 %vm3243_vm4, %v11478_v4  ;;  %v6580_v24 = vld [vmem:[%s12429_s16 + $0x8] sm:$0xff] }
 0xf71   : > { %10067 = vmatpush3.msk.msra.mxu1 %vm3243_vm4, %v11478_v4 }
 0xf72   : > { %10068 = vmatprep.subr.mxu1 %v11484_v29 }
 0xf73   : > { %10069 = vmatpush3.msra.mxu1 %v11484_v29 }
 0xf74   : > { %10070 = vmatprep.subr.mxu1 %v11488_v5 }
 0xf75   : > { %10071 = vmatpush3.msra.mxu1 %v11488_v5 }
 0xf76   : > { %10072 = vmatprep.subr.mxu1 %v11492_v28 }
 0xf77   : > { %10073 = vmatpush3.msra.mxu1 %v11492_v28 }
 0xf78   : > { %10074 = vmatprep.subr.mxu1 %v11496_v6 }
 0xf79   : > { %10075 = vmatpush3.msra.mxu1 %v11496_v6 }
 0xf7a   : > { %10076 = vmatprep.subr.mxu1 %v11500_v7 }
 0xf7b   : > { %10077 = vmatpush3.msra.mxu1 %v11500_v7 }
 0xf7c   : > { %10078 = vmatprep.subr.mxu1 %v11504_v40 }
 0xf7d   : > { %10079 = vmatpush3.msra.mxu1 %v11504_v40 }
0x1030   : > { %v10065_v4 = vpop.f32.mrf.mxu1 }
0x1031   : > { %v4868_v29 = vadd.f32 %v10065_v4, %v4686_v12  ;;  %v4925_v4 = vld [vmem:[%s12426_s13 + $0x8] sm:$0xff] }
0x1032   : > { %v4858_v5 = vpop.f32.mrf.mxu1 }
0x1033   : > { %v4882_v62 = vadd.f32 %v4879_v26, %v4868_v29  ;;  %v4867_v13 = vadd.f32 %v4858_v5, %v4685_v50  ;;  %v4924_v50 = vld [vmem:[%s12426_s13] sm:$0xff]  ;;  %v6582_v29 = vld [vmem:[%s12429_s16 + $0x18] sm:$0xff]  ;;  %v6581_v5 = vld [vmem:[%s12429_s16 + $0x10] sm:$0xff] }
0x1034   : > { %v6579_v26 = vld [vmem:[%s12429_s16] sm:$0xff] }
0x1035   : > { %v4884_v28 = vmax.f32 %v4882_v62, 0.0  ;;  %v4881_v35 = vadd.f32 %v4874_v10, %v4867_v13 }
0x1037   : > { %v4883_v52 = vmax.f32 %v4881_v35, 0.0  ;;  %v4888_v6 = vsel %vm3106_vm3, %v4884_v28, 0.0  ;;  %v4899_v40 = vmul.f32 %v4884_v28, %v4884_v28 }
0x1038   : > { %4889 = vadd.xlane.f32.xlu1 %v4888_v6 }
0x1039   : > { %v4885_v17 = vsel %vm3106_vm3, %v4883_v52, 0.0  ;;  %v4898_v7 = vmul.f32 %v4883_v52, %v4883_v52  ;;  %v4903_v12 = vsel %vm3106_vm3, %v4899_v40, 0.0 }
0x103a   : > { %4886 = vadd.xlane.f32.xlu0 %v4885_v17 }
0x103b   : > { %v4900_v42 = vsel %vm3106_vm3, %v4898_v7, 0.0 }
0x103e   : > { %4901 = vadd.xlane.f32.xlu0 %v4900_v42 }
0x1042   : > { %4904 = vadd.xlane.f32.xlu0 %v4903_v12 }
0x1049   : > { %4928 = vperm.xlu1 %10652, %v4924_v50  }
0x104d   : > { %4942 = vperm.xlu1 %10652, %v4938_v45  }
0x1051   : > { %4947 = vperm.xlu1 %10652, %v4939_v23  }
0x1055   : > { %6590 = vperm.xlu1 %10652, %v6580_v24  }
0x1058   : > { %4933 = vperm.xlu0 %10651, %v4925_v4  }
0x1059   : > { %6600 = vperm.xlu1 %10652, %v6582_v29  }
0x105c   : > { %6585 = vperm.xlu0 %10651, %v6579_v26  }
0x1060   : > { %6595 = vperm.xlu0 %10651, %v6581_v5  }
0x10c1   : > { %v4890_v62 = vpop.xlane.xlu1 %4889 }
0x10c3   : > { %v4887_v13 = vpop.xlane.xlu0 %4886 }
0x10c4   : > { %v4891_v10 = vadd.f32 %v4890_v62, %v4887_v13 }
0x10c5   : > { %v4929_v13 = vpop.permute.xlu1 %4928 }
0x10c6   : > { %v4892_v35 = vrot.slane %v4891_v10, 4 }
0x10c7   : > { %v4902_v6 = vpop.xlane.xlu0 %4901 }
0x10c8   : > { %v4893_v17 = vadd.f32 %v4892_v35, %v4891_v10 }
0x10c9   : > { %v4943_v10 = vpop.permute.xlu1 %4942 }
0x10ca   : > { %v4894_v7 = vrot.slane %v4893_v17, 2 }
0x10cb   : > { %v4905_v42 = vpop.xlane.xlu0 %4904 }
0x10cc   : > { %v4895_v40 = vadd.f32 %v4894_v7, %v4893_v17  ;;  %v4906_v12 = vadd.f32 %v4905_v42, %v4902_v6 }
0x10ce   : > { %v4896_v50 = vrot.slane %v4895_v40, 1  ;;  %v4907_v45 = vrot.slane %v4906_v12, 4 }
0x10d0   : > { %v4908_v23 = vadd.f32 %v4907_v45, %v4906_v12  ;;  %v4897_v24 = vadd.f32 %v4896_v50, %v4895_v40  ;;  %v4948_v50 = vpop.permute.xlu1 %4947 }
0x10d2   : > { %v4909_v4 = vrot.slane %v4908_v23, 2  ;;  %v4914_v26 = vmul.f32 0.0012755102, %v4897_v24  ;;  %v8598_v24 = vld [vmem:[%s12428_s15 + $0x30] sm:$0xff] }
0x10d3   : > { %v4934_v42 = vpop.permute.xlu0 %4933 }
0x10d4   : > { %v4910_v29 = vadd.f32 %v4909_v4, %v4908_v23  ;;  %v4916_v5 = vmul.f32 %v4914_v26, %v4914_v26  ;;  %v4920_v35 = vsub.f32 %v4883_v52, %v4914_v26  ;;  %v4921_v48 = vsub.f32 %v4884_v28, %v4914_v26  ;;  %v8597_v52 = vld [vmem:[%s12428_s15 + $0x28] sm:$0xff]  ;;  %v8599_v26 = vld [vmem:[%s12428_s15 + $0x38] sm:$0xff] }
0x10d5   : > { %v5034_v4 = vld [vmem:[%s12428_s15 + $0x8] sm:$0xff] }
0x10d6   : > { %v4911_v16 = vrot.slane %v4910_v29, 1 }
0x10d8   : > { %v4912_v3 = vadd.f32 %v4911_v16, %v4910_v29  ;;  %v5035_v29 = vld [vmem:[%s12428_s15 + $0x10] sm:$0xff] }
0x10da   : > { %v4915_v2 = vmul.f32 0.0012755102, %v4912_v3 }
0x10dc   : > { %v4917_v1 = vsub.f32 %v4915_v2, %v4916_v5  ;;  %v5033_v2 = vld [vmem:[%s12428_s15] sm:$0xff]  ;;  %v5036_v5 = vld [vmem:[%s12428_s15 + $0x18] sm:$0xff] }
0x10de   : > { %v4918_v62 = vadd.f32 1e-05, %v4917_v1  ;;  %v8596_v1 = vld [vmem:[%s12428_s15 + $0x20] sm:$0xff] }
0x10e0   : > { %10658 = vrsqrt.f32 %v4918_v62 }
0x10ed   : > { %v10659_v17 = vpop.eup %10658 }
0x10ee   : > { %v4922_v6 = vmul.f32 %v10659_v17, %v4920_v35  ;;  %v4923_v7 = vmul.f32 %v10659_v17, %v4921_v48 }
0x10f0   : > { %v4936_v12 = vmul.f32 %v4929_v13, %v4922_v6  ;;  %v4937_v40 = vmul.f32 %v4934_v42, %v4923_v7  ;;  %v8612_v7 = vld [vmem:[%s12428_s15 + $0x48] sm:$0xff]  ;;  %v8613_v42 = vld [vmem:[%s12428_s15 + $0x50] sm:$0xff] }
0x10f2   : > { %v11910_v45 = vadd.f32 %v4943_v10, %v4936_v12  ;;  %v11912_v23 = vadd.f32 %v4948_v50, %v4937_v40  ;;  %v8614_v12 = vld [vmem:[%s12428_s15 + $0x58] sm:$0xff] }
0x10f4   : > { %10080 = vmatprep.mubr.msk.f32.mxu1 %vm3106_vm3, %v11910_v45  ;;  %10097 = vmatprep.mubr.msk.f32.mxu0 %vm3106_vm3, %v11910_v45 }
0x10f5   : > { %10081 = vmatmul.mubr.msk.f32.vlgmr.msra.gmra.mxu1 %vm3106_vm3, %v11912_v23  ;;  %10098 = vmatmul.mubr.msk.f32.vlgmr.msra.gmra.mxu0 %vm3106_vm3, %v11912_v23 }
0x10f6   : > { %10104 = vmatprep.mubr.msk.f32.mxu1 %vm5117_vm5, %v8596_v1  ;;  %10114 = vmatprep.mubr.msk.f32.mxu0 %vm5117_vm5, %v5033_v2 }
0x11b5   : > { %v10082_v3 = vpop.f32.mrf.mxu1  ;;  %v10099_v16 = vpop.f32.mrf.mxu0 }
0x11b6   : > { %10100 = vmatprep.subr.mxu1 %v10099_v16  ;;  %10110 = vmatprep.subr.mxu0 %v10082_v3 }
0x11b7   : > { %v5024_v48 = vpop.f32.mrf.mxu1  ;;  %v5103_v28 = vpop.f32.mrf.mxu0  ;;  %10101 = vmatpush3.msra.mxu1 %v10099_v16  ;;  %10111 = vmatpush3.msra.mxu0 %v10082_v3 }
0x11b8   : > { %10102 = vmatprep.subr.mxu1 %v5103_v28  ;;  %10112 = vmatprep.subr.mxu0 %v5024_v48 }
0x11b9   : > { %10103 = vmatpush3.msra.mxu1 %v5103_v28  ;;  %10113 = vmatpush3.msra.mxu0 %v5024_v48  ;;  %v8623_v48 = vld [vmem:[%s12428_s15 + $0x68] sm:$0xff]  ;;  %v8624_v28 = vld [vmem:[%s12428_s15 + $0x70] sm:$0xff] }
0x11ba   : > { %10105 = vmatmul.mubr.msk.f32.vlgmr.msra.gmra.mxu1 %vm5117_vm5, %v8597_v52  ;;  %10120 = vmatprep.subr.msk.mxu1 %vm3243_vm4, %v11569_v8  ;;  %v8625_v52 = vld [vmem:[%s12428_s15 + $0x78] sm:$0xff] }
0x11bb   : > { %10121 = vmatpush3.msk.msra.mxu1 %vm3243_vm4, %v11569_v8  ;;  %10107 = vmatprep.mubr.msk.f32.mxu1 %vm5117_vm5, %v8598_v24  ;;  %v8611_v8 = vld [vmem:[%s12428_s15 + $0x40] sm:$0xff] }
0x11bc   : > { %10122 = vmatprep.subr.mxu1 %v11571_v49  ;;  %10115 = vmatmul.mubr.msk.f32.vlgmr.msra.gmra.mxu0 %vm5117_vm5, %v5034_v4 }
0x11bd   : > { %10123 = vmatpush3.msra.mxu1 %v11571_v49  ;;  %10117 = vmatprep.mubr.msk.f32.mxu0 %vm5117_vm5, %v5035_v29 }
0x11be   : > { %10108 = vmatmul.mubr.msk.f32.gmra.mxu1 %vm5117_vm5, %v8599_v26  ;;  %10124 = vmatprep.subr.mxu1 %v11580_v14 }
0x11bf   : > { %10125 = vmatpush3.msra.mxu1 %v11580_v14  ;;  %10134 = vmatprep.mubr.msk.f32.mxu1 %vm3106_vm3, %v11910_v45 }
0x11c0   : > { %10126 = vmatprep.subr.mxu1 %v11584_v46  ;;  %10118 = vmatmul.mubr.msk.f32.gmra.mxu0 %vm5117_vm5, %v5036_v5  ;;  %v8634_v5 = vld [vmem:[%s12428_s15 + $0x88] sm:$0xff] }
0x11c1   : > { %10127 = vmatpush3.msra.mxu1 %v11584_v46  ;;  %10141 = vmatprep.mubr.msk.f32.mxu0 %vm5117_vm5, %v8611_v8  ;;  %v8635_v8 = vld [vmem:[%s12428_s15 + $0x90] sm:$0xff] }
0x11c2   : > { %10128 = vmatprep.subr.mxu1 %v11588_v18 }
0x11c3   : > { %10129 = vmatpush3.msra.mxu1 %v11588_v18 }
0x11c4   : > { %10130 = vmatprep.subr.mxu1 %v11592_v21 }
0x11c5   : > { %10131 = vmatpush3.msra.mxu1 %v11592_v21 }
0x11c6   : > { %10132 = vmatprep.subr.mxu1 %v11596_v47 }
0x11c7   : > { %10133 = vmatpush3.msra.mxu1 %v11596_v47 }
0x11c8   : > { %10135 = vmatmul.mubr.msk.f32.vlgmr.msra.gmra.mxu1 %vm3106_vm3, %v11912_v23 }
0x127a   : > { %v10106_v49 = vpop.f32.mrf.mxu1 }
0x127c   : > { %v10116_v14 = vpop.f32.mrf.mxu0  ;;  %v5196_v46 = vpop.f32.mrf.mxu1 }
0x127d   : > { %v5299_v18 = vadd.f32 %v10116_v14, %v10106_v49  ;;  %v8636_v49 = vld [vmem:[%s12428_s15 + $0x98] sm:$0xff] }
0x127e   : > { %v5293_v62 = vpop.f32.mrf.mxu0  ;;  %v10109_v21 = vpop.f32.mrf.mxu1 }
0x127f   : > { %v5294_v13 = vadd.f32 %v5293_v62, %v5196_v46 }
0x1280   : > { %v10119_v10 = vpop.f32.mrf.mxu0  ;;  %v5206_v17 = vpop.f32.mrf.mxu1 }
0x1281   : > { %v5309_v35 = vadd.f32 %v10119_v10, %v10109_v21  ;;  %v8646_v21 = vld [vmem:[%s12428_s15 + $0xb0] sm:$0xff]  ;;  %v8647_v10 = vld [vmem:[%s12428_s15 + $0xb8] sm:$0xff] }
0x1288   : > { %v10136_v47 = vpop.f32.mrf.mxu1 }
0x1289   : > { %10137 = vmatprep.subr.mxu0 %v10136_v47 }
0x128a   : > { %v5378_v6 = vpop.f32.mrf.mxu1  ;;  %10138 = vmatpush3.msra.mxu0 %v10136_v47 }
0x128b   : > { %10139 = vmatprep.subr.mxu0 %v5378_v6 }
0x128c   : > { %10140 = vmatpush3.msra.mxu0 %v5378_v6 }
0x128d   : > { %10142 = vmatmul.mubr.msk.f32.vlgmr.msra.gmra.mxu0 %vm5117_vm5, %v8612_v7  ;;  %10147 = vmatprep.subr.msk.mxu0 %vm3243_vm4, %v11609_v36 }
0x128e   : > { %10148 = vmatpush3.msk.msra.mxu0 %vm3243_vm4, %v11609_v36  ;;  %10144 = vmatprep.mubr.msk.f32.mxu0 %vm5117_vm5, %v8613_v42  ;;  %v8622_v36 = vld [vmem:[%s12428_s15 + $0x60] sm:$0xff] }
0x128f   : > { %10149 = vmatprep.subr.mxu0 %v11611_v37  ;;  %10168 = vmatprep.mubr.msk.f32.mxu1 %vm5117_vm5, %v8622_v36 }
0x1290   : > { %10150 = vmatpush3.msra.mxu0 %v11611_v37  ;;  %v5303_v37 = vpop.f32.mrf.mxu0 }
0x1291   : > { %10145 = vmatmul.mubr.msk.f32.gmra.mxu0 %vm5117_vm5, %v8614_v12  ;;  %10151 = vmatprep.subr.mxu0 %v11620_v11 }
0x1292   : > { %10152 = vmatpush3.msra.mxu0 %v11620_v11  ;;  %10161 = vmatprep.mubr.msk.f32.mxu0 %vm3106_vm3, %v11910_v45 }
0x1293   : > { %10153 = vmatprep.subr.mxu0 %v11624_v56 }
0x1294   : > { %10154 = vmatpush3.msra.mxu0 %v11624_v56 }
0x1295   : > { %10155 = vmatprep.subr.mxu0 %v11628_v22 }
0x1296   : > { %10156 = vmatpush3.msra.mxu0 %v11628_v22 }
0x1297   : > { %10157 = vmatprep.subr.mxu0 %v11632_v57 }
0x1298   : > { %10158 = vmatpush3.msra.mxu0 %v11632_v57  ;;  %v5304_v57 = vadd.f32 %v5303_v37, %v5206_v17  ;;  %v8656_v37 = vld [vmem:[%s12428_s15 + $0xc8] sm:$0xff] }
0x1299   : > { %10159 = vmatprep.subr.mxu0 %v11636_v30 }
0x129a   : > { %10160 = vmatpush3.msra.mxu0 %v11636_v30 }
0x129b   : > { %10162 = vmatmul.mubr.msk.f32.vlgmr.msra.gmra.mxu0 %vm3106_vm3, %v11912_v23 }
0x134d   : > { %v10143_v11 = vpop.f32.mrf.mxu0 }
0x134e   : > { %v5490_v56 = vadd.f32 %v10143_v11, %v5299_v18  ;;  %v8657_v11 = vld [vmem:[%s12428_s15 + $0xd0] sm:$0xff] }
0x134f   : > { %v5470_v22 = vpop.f32.mrf.mxu0 }
0x1350   : > { %v5489_v40 = vadd.f32 %v5470_v22, %v5294_v13  ;;  %v8645_v13 = vld [vmem:[%s12428_s15 + $0xa8] sm:$0xff]  ;;  %v8658_v22 = vld [vmem:[%s12428_s15 + $0xd8] sm:$0xff] }
0x1351   : > { %v10146_v50 = vpop.f32.mrf.mxu0 }
0x1352   : > { %v5492_v1 = vadd.f32 %v10146_v50, %v5309_v35  ;;  %v12505_v50 = vld [vmem:[#allocation22_spill] sm:$0xff] }
0x1353   : > { %v5480_v2 = vpop.f32.mrf.mxu0 }
0x1354   : > { %v5491_v3 = vadd.f32 %v5480_v2, %v5304_v57  ;;  %v12506_v57 = vld [vmem:[#allocation23_spill] sm:$0xff]  ;;  %v12508_v2 = vld [vmem:[#allocation25_spill] sm:$0xff] }
0x135b   : > { %v10163_v30 = vpop.f32.mrf.mxu0 }
0x135c   : > { %10164 = vmatprep.subr.mxu1 %v10163_v30 }
0x135d   : > { %v5559_v16 = vpop.f32.mrf.mxu0  ;;  %10165 = vmatpush3.msra.mxu1 %v10163_v30  ;;  %v10664_v30 = vld [vmem:[#allocation4 + $0x30] sm:$0x1] }
0x135e   : > { %10166 = vmatprep.subr.mxu1 %v5559_v16 }
0x135f   : > { %10167 = vmatpush3.msra.mxu1 %v5559_v16  ;;  %v10665_v16 = vld [vmem:[#allocation4 + $0x28] sm:$0xff] }
0x1360   : > { %10169 = vmatmul.mubr.msk.f32.vlgmr.msra.gmra.mxu1 %vm5117_vm5, %v8623_v48  ;;  %10174 = vmatprep.subr.msk.mxu1 %vm3243_vm4, %v11649_v20  ;;  %v10666_v48 = vld [vmem:[#allocation4 + $0x20] sm:$0xff] }
0x1361   : > { %10175 = vmatpush3.msk.msra.mxu1 %vm3243_vm4, %v11649_v20  ;;  %10171 = vmatprep.mubr.msk.f32.mxu1 %vm5117_vm5, %v8624_v28  ;;  %v8633_v20 = vld [vmem:[%s12428_s15 + $0x80] sm:$0xff]  ;;  %v10667_v28 = vld [vmem:[#allocation4 + $0x18] sm:$0xff] }
0x1362   : > { %10176 = vmatprep.subr.mxu1 %v11651_v33  ;;  %10195 = vmatprep.mubr.msk.f32.mxu0 %vm5117_vm5, %v8633_v20  ;;  %v10669_v20 = vld [vmem:[#allocation4 + $0x8] sm:$0xff] }
0x1363   : > { %10177 = vmatpush3.msra.mxu1 %v11651_v33 }
0x1364   : > { %10172 = vmatmul.mubr.msk.f32.gmra.mxu1 %vm5117_vm5, %v8625_v52  ;;  %10178 = vmatprep.subr.mxu1 %v11660_v39  ;;  %v10668_v52 = vld [vmem:[#allocation4 + $0x10] sm:$0xff] }
0x1365   : > { %10179 = vmatpush3.msra.mxu1 %v11660_v39  ;;  %10188 = vmatprep.mubr.msk.f32.mxu1 %vm3106_vm3, %v11910_v45 }
0x1366   : > { %10180 = vmatprep.subr.mxu1 %v11664_v34 }
0x1367   : > { %10181 = vmatpush3.msra.mxu1 %v11664_v34 }
0x1368   : > { %10182 = vmatprep.subr.mxu1 %v11668_v38 }
0x1369   : > { %10183 = vmatpush3.msra.mxu1 %v11668_v38 }
0x136a   : > { %10184 = vmatprep.subr.mxu1 %v11672_v41 }
0x136b   : > { %10185 = vmatpush3.msra.mxu1 %v11672_v41 }
0x136c   : > { %10186 = vmatprep.subr.mxu1 %v11676_v44 }
0x136d   : > { %10187 = vmatpush3.msra.mxu1 %v11676_v44 }
0x136e   : > { %10189 = vmatmul.mubr.msk.f32.vlgmr.msra.gmra.mxu1 %vm3106_vm3, %v11912_v23 }
0x1420   : > { %v10170_v33 = vpop.f32.mrf.mxu1 }
0x1421   : > { %v5671_v39 = vadd.f32 %v10170_v33, %v5490_v56  ;;  %v12503_v56 = vld [vmem:[#allocation20_spill] sm:$0xff]  ;;  %v10670_v33 = vld [vmem:[#allocation4] sm:$0xff] }
0x1422   : > { %v5651_v34 = vpop.f32.mrf.mxu1 }
0x1423   : > { %v5670_v38 = vadd.f32 %v5651_v34, %v5489_v40  ;;  %v12504_v40 = vld [vmem:[#allocation21_spill] sm:$0xff] }
0x1424   : > { %v10173_v24 = vpop.f32.mrf.mxu1 }
0x1425   : > { %v5673_v4 = vadd.f32 %v10173_v24, %v5492_v1  ;;  %v12507_v1 = vld [vmem:[#allocation24_spill] sm:$0xff] }
0x1426   : > { %v5661_v41 = vpop.f32.mrf.mxu1 }
0x1427   : > { %v5672_v29 = vadd.f32 %v5661_v41, %v5491_v3  ;;  %v12509_v3 = vld [vmem:[#allocation26_spill] sm:$0xff] }
0x142e   : > { %v10190_v26 = vpop.f32.mrf.mxu1 }
0x142f   : > { %10191 = vmatprep.subr.mxu0 %v10190_v26 }
0x1430   : > { %v5740_v44 = vpop.f32.mrf.mxu1  ;;  %10192 = vmatpush3.msra.mxu0 %v10190_v26 }
0x1431   : > { %10193 = vmatprep.subr.mxu0 %v5740_v44 }
0x1432   : > { %10194 = vmatpush3.msra.mxu0 %v5740_v44 }
0x1433   : > { %10196 = vmatmul.mubr.msk.f32.vlgmr.msra.gmra.mxu0 %vm5117_vm5, %v8634_v5  ;;  %10201 = vmatprep.subr.msk.mxu0 %vm3243_vm4, %v11689_v53 }
0x1434   : > { %10202 = vmatpush3.msk.msra.mxu0 %vm3243_vm4, %v11689_v53  ;;  %10198 = vmatprep.mubr.msk.f32.mxu0 %vm5117_vm5, %v8635_v8  ;;  %v8644_v53 = vld [vmem:[%s12428_s15 + $0xa0] sm:$0xff] }
0x1435   : > { %10203 = vmatprep.subr.mxu0 %v11691_v32  ;;  %10222 = vmatprep.mubr.msk.f32.mxu1 %vm5117_vm5, %v8644_v53  ;;  %v8668_v53 = vld [vmem:[%s12428_s15 + $0xf0] sm:$0xff] }
0x1436   : > { %10204 = vmatpush3.msra.mxu0 %v11691_v32 }
0x1437   : > { %10199 = vmatmul.mubr.msk.f32.gmra.mxu0 %vm5117_vm5, %v8636_v49  ;;  %10205 = vmatprep.subr.mxu0 %v11700_v54  ;;  %v8667_v49 = vld [vmem:[%s12428_s15 + $0xe8] sm:$0xff] }
0x1438   : > { %10206 = vmatpush3.msra.mxu0 %v11700_v54  ;;  %10215 = vmatprep.mubr.msk.f32.mxu0 %vm3106_vm3, %v11910_v45 }
0x1439   : > { %10207 = vmatprep.subr.mxu0 %v11704_v58 }
0x143a   : > { %10208 = vmatpush3.msra.mxu0 %v11704_v58 }
0x143b   : > { %10209 = vmatprep.subr.mxu0 %v11708_v59 }
0x143c   : > { %10210 = vmatpush3.msra.mxu0 %v11708_v59 }
0x143d   : > { %10211 = vmatprep.subr.mxu0 %v11712_v60 }
0x143e   : > { %10212 = vmatpush3.msra.mxu0 %v11712_v60 }
0x143f   : > { %10213 = vmatprep.subr.mxu0 %v11716_v61 }
0x1440   : > { %10214 = vmatpush3.msra.mxu0 %v11716_v61 }
0x1441   : > { %10216 = vmatmul.mubr.msk.f32.vlgmr.msra.gmra.mxu0 %vm3106_vm3, %v11912_v23 }
0x14f3   : > { %v10197_v32 = vpop.f32.mrf.mxu0 }
0x14f4   : > { %v5852_v54 = vadd.f32 %v10197_v32, %v5671_v39  ;;  %v8666_v39 = vld [vmem:[%s12428_s15 + $0xe0] sm:$0xff]  ;;  %v8669_v32 = vld [vmem:[%s12428_s15 + $0xf8] sm:$0xff] }
0x14f5   : > { %v5832_v58 = vpop.f32.mrf.mxu0 }
0x14f6   : > { %v5851_v59 = vadd.f32 %v5832_v58, %v5670_v38 }
0x14f7   : > { %v10200_v14 = vpop.f32.mrf.mxu0 }
0x14f8   : > { %v5854_v46 = vadd.f32 %v10200_v14, %v5673_v4 }
0x14f9   : > { %v5842_v60 = vpop.f32.mrf.mxu0 }
0x14fa   : > { %v5853_v18 = vadd.f32 %v5842_v60, %v5672_v29  ;;  %v8679_v60 = vld [vmem:[%s12428_s15 + $0x110] sm:$0xff] }
0x1501   : > { %v10217_v62 = vpop.f32.mrf.mxu0 }
0x1502   : > { %10218 = vmatprep.subr.mxu1 %v10217_v62 }
0x1503   : > { %v5921_v61 = vpop.f32.mrf.mxu0  ;;  %10219 = vmatpush3.msra.mxu1 %v10217_v62  ;;  %v8680_v62 = vld [vmem:[%s12428_s15 + $0x118] sm:$0xff] }
0x1504   : > { %10220 = vmatprep.subr.mxu1 %v5921_v61 }
0x1505   : > { %10221 = vmatpush3.msra.mxu1 %v5921_v61  ;;  %v10672_v61 = vld [vmem:[#allocation4 + $0x60] sm:$0xff] }
0x1506   : > { %10223 = vmatmul.mubr.msk.f32.vlgmr.msra.gmra.mxu1 %vm5117_vm5, %v8645_v13  ;;  %10228 = vmatprep.subr.msk.mxu1 %vm3243_vm4, %v11729_v43  ;;  %v10673_v13 = vld [vmem:[#allocation4 + $0x58] sm:$0xff] }
0x1507   : > { %10229 = vmatpush3.msk.msra.mxu1 %vm3243_vm4, %v11729_v43  ;;  %10225 = vmatprep.mubr.msk.f32.mxu1 %vm5117_vm5, %v8646_v21  ;;  %v12501_v43 = vld [vmem:[#allocation18_spill] sm:$0xff]  ;;  %v10674_v21 = vld [vmem:[#allocation4 + $0x50] sm:$0xff] }
0x1508   : > { %10230 = vmatprep.subr.mxu1 %v11731_v15 }
0x1509   : > { %10231 = vmatpush3.msra.mxu1 %v11731_v15  ;;  %v12502_v15 = vld [vmem:[#allocation19_spill] sm:$0xff] }
0x150a   : > { %10226 = vmatmul.mubr.msk.f32.gmra.mxu1 %vm5117_vm5, %v8647_v10  ;;  %10232 = vmatprep.subr.mxu1 %v11740_v19  ;;  %v10675_v10 = vld [vmem:[#allocation4 + $0x48] sm:$0xff] }
0x150b   : > { %10233 = vmatpush3.msra.mxu1 %v11740_v19  ;;  %10242 = vmatprep.mubr.msk.f32.mxu1 %vm3106_vm3, %v11910_v45  ;;  %v8655_v19 = vld [vmem:[%s12428_s15 + $0xc0] sm:$0xff] }
0x150c   : > { %10234 = vmatprep.subr.mxu1 %v11744_v9  ;;  %10249 = vmatprep.mubr.msk.f32.mxu0 %vm5117_vm5, %v8655_v19 }
0x150d   : > { %10235 = vmatpush3.msra.mxu1 %v11744_v9 }
0x150e   : > { %10236 = vmatprep.subr.mxu1 %v11748_v27 }
0x150f   : > { %10237 = vmatpush3.msra.mxu1 %v11748_v27 }
0x1510   : > { %10238 = vmatprep.subr.mxu1 %v12501_v43 }
0x1511   : > { %10239 = vmatpush3.msra.mxu1 %v12501_v43  ;;  %v10676_v43 = vld [vmem:[#allocation4 + $0x40] sm:$0xff] }
0x1512   : > { %10240 = vmatprep.subr.mxu1 %v12502_v15 }
0x1513   : > { %10241 = vmatpush3.msra.mxu1 %v12502_v15  ;;  %v10677_v15 = vld [vmem:[#allocation4 + $0x38] sm:$0xff] }
0x1514   : > { %10243 = vmatmul.mubr.msk.f32.vlgmr.msra.gmra.mxu1 %vm3106_vm3, %v11912_v23 }
0x1515   : > { %10276 = vmatprep.mubr.msk.f32.mxu1 %vm5117_vm5, %v8666_v39 }
0x15c6   : > { %v10224_v9 = vpop.f32.mrf.mxu1 }
0x15c7   : > { %v6033_v35 = vadd.f32 %v10224_v9, %v5852_v54  ;;  %v6591_v9 = vpop.permute.xlu1 %6590 }
0x15c8   : > { %v6013_v27 = vpop.f32.mrf.mxu1 }
0x15c9   : > { %v6032_v17 = vadd.f32 %v6013_v27, %v5851_v59  ;;  %v6586_v27 = vpop.permute.xlu0 %6585 }
0x15ca   : > { %v10227_v47 = vpop.f32.mrf.mxu1 }
0x15cb   : > { %v6035_v6 = vadd.f32 %v10227_v47, %v5854_v46 }
0x15cc   : > { %v6023_v7 = vpop.f32.mrf.mxu1 }
0x15cd   : > { %v6034_v42 = vadd.f32 %v6023_v7, %v5853_v18  ;;  %v10671_v18 = vld [vmem:[#allocation4 + $0x68] sm:$0x1] }
0x15d4   : > { %v10244_v12 = vpop.f32.mrf.mxu1 }
0x15d5   : > { %10245 = vmatprep.subr.mxu0 %v10244_v12 }
0x15d6   : > { %v6102_v36 = vpop.f32.mrf.mxu1  ;;  %10246 = vmatpush3.msra.mxu0 %v10244_v12 }
0x15d7   : > { %10247 = vmatprep.subr.mxu0 %v6102_v36 }
0x15d8   : > { %10248 = vmatpush3.msra.mxu0 %v6102_v36 }
0x15d9   : > { %10250 = vmatmul.mubr.msk.f32.vlgmr.msra.gmra.mxu0 %vm5117_vm5, %v8656_v37  ;;  %10255 = vmatprep.subr.msk.mxu0 %vm3243_vm4, %v12503_v56 }
0x15da   : > { %10256 = vmatpush3.msk.msra.mxu0 %vm3243_vm4, %v12503_v56  ;;  %10252 = vmatprep.mubr.msk.f32.mxu0 %vm5117_vm5, %v8657_v11 }
0x15db   : > { %10257 = vmatprep.subr.mxu0 %v12504_v40 }
0x15dc   : > { %10258 = vmatpush3.msra.mxu0 %v12504_v40  ;;  %v6601_v40 = vpop.permute.xlu1 %6600 }
0x15dd   : > { %10253 = vmatmul.mubr.msk.f32.gmra.mxu0 %vm5117_vm5, %v8658_v22  ;;  %10259 = vmatprep.subr.mxu0 %v12505_v50 }
0x15de   : > { %10260 = vmatpush3.msra.mxu0 %v12505_v50  ;;  %10269 = vmatprep.mubr.msk.f32.mxu0 %vm3106_vm3, %v11910_v45  ;;  %v6596_v50 = vpop.permute.xlu0 %6595 }
0x15df   : > { %10261 = vmatprep.subr.mxu0 %v12506_v57 }
0x15e0   : > { %10262 = vmatpush3.msra.mxu0 %v12506_v57 }
0x15e1   : > { %10263 = vmatprep.subr.mxu0 %v12507_v1 }
0x15e2   : > { %10264 = vmatpush3.msra.mxu0 %v12507_v1 }
0x15e3   : > { %10265 = vmatprep.subr.mxu0 %v12508_v2 }
0x15e4   : > { %10266 = vmatpush3.msra.mxu0 %v12508_v2 }
0x15e5   : > { %10267 = vmatprep.subr.mxu0 %v12509_v3 }
0x15e6   : > { %10268 = vmatpush3.msra.mxu0 %v12509_v3 }
0x15e7   : > { %10270 = vmatmul.mubr.msk.f32.vlgmr.msra.gmra.mxu0 %vm3106_vm3, %v11912_v23  ;;  %10309 = vmatprep.subr.msk.mxu0 %vm3243_vm4, %v10664_v30 }
0x15e8   : > { %10310 = vmatpush3.msk.msra.mxu0 %vm3243_vm4, %v10664_v30 }
0x15e9   : > { %10311 = vmatprep.subr.mxu0 %v10665_v16 }
0x15ea   : > { %10312 = vmatpush3.msra.mxu0 %v10665_v16 }
0x15eb   : > { %10313 = vmatprep.subr.mxu0 %v10666_v48 }
0x15ec   : > { %10314 = vmatpush3.msra.mxu0 %v10666_v48 }
0x15ed   : > { %10315 = vmatprep.subr.mxu0 %v10667_v28 }
0x15ee   : > { %10316 = vmatpush3.msra.mxu0 %v10667_v28 }
0x15ef   : > { %10317 = vmatprep.subr.mxu0 %v10668_v52 }
0x15f0   : > { %10318 = vmatpush3.msra.mxu0 %v10668_v52 }
0x15f1   : > { %10319 = vmatprep.subr.mxu0 %v10669_v20 }
0x15f2   : > { %10320 = vmatpush3.msra.mxu0 %v10669_v20 }
0x15f3   : > { %10321 = vmatprep.subr.mxu0 %v10670_v33 }
0x15f4   : > { %10322 = vmatpush3.msra.mxu0 %v10670_v33 }
0x1699   : > { %v10251_v34 = vpop.f32.mrf.mxu0 }
0x169a   : > { %v6214_v38 = vadd.f32 %v10251_v34, %v6033_v35 }
0x169b   : > { %v6194_v24 = vpop.f32.mrf.mxu0 }
0x169c   : > { %v6213_v4 = vadd.f32 %v6194_v24, %v6032_v17 }
0x169d   : > { %v10254_v41 = vpop.f32.mrf.mxu0 }
0x169e   : > { %v6216_v29 = vadd.f32 %v10254_v41, %v6035_v6  ;;  %v6699_v41 = vld [vmem:[%s12431_s18] sm:$0xff] }
0x169f   : > { %v6204_v26 = vpop.f32.mrf.mxu0 }
0x16a0   : > { %v6215_v44 = vadd.f32 %v6204_v26, %v6034_v42  ;;  %v6674_v26 = vld [vmem:[%s12430_s17 + $0x18] sm:$0xff] }
0x16a7   : > { %v10271_v5 = vpop.f32.mrf.mxu0 }
0x16a8   : > { %10272 = vmatprep.subr.mxu1 %v10271_v5 }
0x16a9   : > { %v6283_v8 = vpop.f32.mrf.mxu0  ;;  %10273 = vmatpush3.msra.mxu1 %v10271_v5  ;;  %v6702_v5 = vld [vmem:[%s12431_s18 + $0x18] sm:$0xff] }
0x16aa   : > { %10274 = vmatprep.subr.mxu1 %v6283_v8 }
0x16ab   : > { %10275 = vmatpush3.msra.mxu1 %v6283_v8  ;;  %v6673_v8 = vld [vmem:[%s12430_s17 + $0x10] sm:$0xff] }
0x16ac   : > { %10277 = vmatmul.mubr.msk.f32.vlgmr.msra.gmra.mxu1 %vm5117_vm5, %v8667_v49  ;;  %10282 = vmatprep.subr.msk.mxu1 %vm3243_vm4, %v11809_v51  ;;  %v8278_v49 = vld [vmem:[%s12433_s20 + $0x8] sm:$0xff] }
0x16ad   : > { %10283 = vmatpush3.msk.msra.mxu1 %vm3243_vm4, %v11809_v51  ;;  %10279 = vmatprep.mubr.msk.f32.mxu1 %vm5117_vm5, %v8668_v53  ;;  %v12510_v51 = vld [vmem:[#allocation27_spill] sm:$0xff]  ;;  %v6701_v53 = vld [vmem:[%s12431_s18 + $0x10] sm:$0xff] }
0x16ae   : > { %10284 = vmatprep.subr.mxu1 %v11811_v31 }
0x16af   : > { %10285 = vmatpush3.msra.mxu1 %v11811_v31  ;;  %v8677_v31 = vld [vmem:[%s12428_s15 + $0x100] sm:$0xff] }
0x16b0   : > { %10280 = vmatmul.mubr.msk.f32.gmra.mxu1 %vm5117_vm5, %v8669_v32  ;;  %10286 = vmatprep.subr.mxu1 %v11820_v63  ;;  %v8277_v32 = vld [vmem:[%s12433_s20] sm:$0xff] }
0x16b1   : > { %10287 = vmatpush3.msra.mxu1 %v11820_v63  ;;  %10296 = vmatprep.mubr.msk.f32.mxu1 %vm3106_vm3, %v11910_v45 }
0x16b2   : > { %10288 = vmatprep.subr.mxu1 %v11824_v55 }
0x16b3   : > { %10289 = vmatpush3.msra.mxu1 %v11824_v55 }
0x16b4   : > { %10290 = vmatprep.subr.mxu1 %v11828_v25 }
0x16b5   : > { %10291 = vmatpush3.msra.mxu1 %v11828_v25 }
0x16b6   : > { %10292 = vmatprep.subr.mxu1 %v11832_v0 }
0x16b7   : > { %10293 = vmatpush3.msra.mxu1 %v11832_v0 }
0x16b8   : > { %10294 = vmatprep.subr.mxu1 %v12510_v51 }
0x16b9   : > { %10295 = vmatpush3.msra.mxu1 %v12510_v51 }
0x16ba   : > { %10297 = vmatmul.mubr.msk.f32.vlgmr.msra.gmra.mxu1 %vm3106_vm3, %v11912_v23  ;;  %v8678_v23 = vld [vmem:[%s12428_s15 + $0x108] sm:$0xff] }
0x16bb   : > { %10303 = vmatprep.mubr.msk.f32.mxu1 %vm5117_vm5, %v8677_v31 }
0x176c   : > { %v10278_v63 = vpop.f32.mrf.mxu1 }
0x176d   : > { %v6395_v55 = vadd.f32 %v10278_v63, %v6214_v38 }
0x176e   : > { %v6375_v25 = vpop.f32.mrf.mxu1 }
0x176f   : > { %v6394_v45 = vadd.f32 %v6375_v25, %v6213_v4  ;;  %v6671_v4 = vld [vmem:[%s12430_s17] sm:$0xff] }
0x1770   : > { %v10281_v54 = vpop.f32.mrf.mxu1 }
0x1771   : > { %v6397_v58 = vadd.f32 %v10281_v54, %v6216_v29  ;;  %v6700_v29 = vld [vmem:[%s12431_s18 + $0x8] sm:$0xff] }
0x1772   : > { %v6385_v0 = vpop.f32.mrf.mxu1 }
0x1773   : > { %v6396_v59 = vadd.f32 %v6385_v0, %v6215_v44  ;;  %v6672_v44 = vld [vmem:[%s12430_s17 + $0x8] sm:$0xff] }
0x177a   : > { %v10298_v14 = vpop.f32.mrf.mxu1 }
0x177b   : > { %10299 = vmatprep.subr.mxu1 %v10298_v14 }
0x177c   : > { %v6464_v46 = vpop.f32.mrf.mxu1  ;;  %10300 = vmatpush3.msra.mxu1 %v10298_v14 }
0x177d   : > { %10301 = vmatprep.subr.mxu1 %v6464_v46 }
0x177e   : > { %10302 = vmatpush3.msra.mxu1 %v6464_v46 }
0x177f   : > { %10304 = vmatmul.mubr.msk.f32.vlgmr.msra.gmra.mxu1 %vm5117_vm5, %v8678_v23  ;;  %10329 = vmatprep.subr.msk.mxu1 %vm3243_vm4, %v10671_v18 }
0x1780   : > { %10306 = vmatprep.mubr.msk.f32.mxu1 %vm5117_vm5, %v8679_v60  ;;  %10330 = vmatpush3.msk.msra.mxu1 %vm3243_vm4, %v10671_v18 }
0x1781   : > { %10331 = vmatprep.subr.mxu1 %v10672_v61 }
0x1782   : > { %10332 = vmatpush3.msra.mxu1 %v10672_v61 }
0x1783   : > { %10307 = vmatmul.mubr.msk.f32.gmra.mxu1 %vm5117_vm5, %v8680_v62  ;;  %10333 = vmatprep.subr.mxu1 %v10673_v13 }
0x1784   : > { %10334 = vmatpush3.msra.mxu1 %v10673_v13 }
0x1785   : > { %10335 = vmatprep.subr.mxu1 %v10674_v21 }
0x1786   : > { %10336 = vmatpush3.msra.mxu1 %v10674_v21 }
0x1787   : > { %10337 = vmatprep.subr.mxu1 %v10675_v10 }
0x1788   : > { %10338 = vmatpush3.msra.mxu1 %v10675_v10 }
0x1789   : > { %10339 = vmatprep.subr.mxu1 %v10676_v43 }
0x178a   : > { %10340 = vmatpush3.msra.mxu1 %v10676_v43 }
0x178b   : > { %10341 = vmatprep.subr.mxu1 %v10677_v15 }
0x178c   : > { %10342 = vmatpush3.msra.mxu1 %v10677_v15 }
0x183f   : > { %v10305_v19 = vpop.f32.mrf.mxu1 }
0x1840   : > { %v6576_v35 = vadd.f32 %v10305_v19, %v6395_v55 }
0x1841   : > { %v6556_v17 = vpop.f32.mrf.mxu1 }
0x1842   : > { %v6604_v47 = vadd.f32 %v6591_v9, %v6576_v35  ;;  %v6575_v6 = vadd.f32 %v6556_v17, %v6394_v45 }
0x1843   : > { %v10308_v7 = vpop.f32.mrf.mxu1 }
0x1844   : > { %v12210_v42 = vmax.f32 %v6604_v47, 0.0  ;;  %v6603_v12 = vadd.f32 %v6586_v27, %v6575_v6  ;;  %v6578_v36 = vadd.f32 %v10308_v7, %v6397_v58 }
0x1845   : > { %v6566_v37 = vpop.f32.mrf.mxu1 }
0x1846   : > { %v12212_v11 = vmax.f32 %v6603_v12, 0.0  ;;  %v6577_v56 = vadd.f32 %v6566_v37, %v6396_v59  ;;  %v6614_v22 = vsel %vm3106_vm3, %v12210_v42, 0.0  ;;  %v6633_v57 = vmul.f32 %v12210_v42, %v12210_v42 }
0x1847   : > { %6615 = vadd.xlane.f32.xlu1 %v6614_v22  ;;  %v6606_v1 = vadd.f32 %v6601_v40, %v6578_v36 }
0x1848   : > { %v6605_v2 = vadd.f32 %v6596_v50, %v6577_v56  ;;  %v6611_v3 = vsel %vm3106_vm3, %v12212_v11, 0.0  ;;  %v6632_v30 = vmul.f32 %v12212_v11, %v12212_v11  ;;  %v6639_v48 = vsel %vm3106_vm3, %v6633_v57, 0.0 }
0x1849   : > { %6612 = vadd.xlane.f32.xlu0 %v6611_v3  ;;  %v12225_v28 = vmax.f32 %v6606_v1, 0.0 }
0x184a   : > { %v12222_v16 = vmax.f32 %v6605_v2, 0.0  ;;  %v6636_v52 = vsel %vm3106_vm3, %v6632_v30, 0.0 }
0x184b   : > { %6640 = vadd.xlane.f32.xlu1 %v6639_v48  ;;  %v6620_v39 = vsel %vm3106_vm3, %v12225_v28, 0.0  ;;  %v6635_v38 = vmul.f32 %v12225_v28, %v12225_v28 }
0x184c   : > { %v6634_v20 = vmul.f32 %v12222_v16, %v12222_v16  ;;  %v6617_v34 = vsel %vm3106_vm3, %v12222_v16, 0.0 }
0x184d   : > { %6637 = vadd.xlane.f32.xlu0 %v6636_v52  ;;  %v6645_v24 = vsel %vm3106_vm3, %v6635_v38, 0.0 }
0x184e   : > { %v6642_v33 = vsel %vm3106_vm3, %v6634_v20, 0.0 }
0x184f   : > { %6643 = vadd.xlane.f32.xlu1 %v6642_v33 }
0x1851   : > { %6621 = vadd.xlane.f32.xlu0 %v6620_v39 }
0x1855   : > { %6618 = vadd.xlane.f32.xlu0 %v6617_v34 }
0x1859   : > { %6646 = vadd.xlane.f32.xlu0 %v6645_v24 }
0x1860   : > { %6677 = vperm.xlu1 %10652, %v6671_v4  }
0x1864   : > { %6705 = vperm.xlu1 %10652, %v6699_v41  }
0x1868   : > { %6710 = vperm.xlu1 %10652, %v6700_v29  }
0x186c   : > { %6692 = vperm.xlu1 %10652, %v6674_v26   ;;  %v12511_v26 = vld [vmem:[#allocation14_spill] sm:$0xff] }
0x186f   : > { %6682 = vperm.xlu0 %10651, %v6672_v44   ;;  %v12512_v44 = vld [vmem:[#allocation15_spill] sm:$0xff] }
0x1870   : > { %6720 = vperm.xlu1 %10652, %v6702_v5  }
0x1873   : > { %6687 = vperm.xlu0 %10651, %v6673_v8   ;;  %v12513_v8 = vld [vmem:[#allocation16_spill] sm:$0xff] }
0x1874   : > { %8286 = vperm.xlu1 %10652, %v8278_v49  }
0x1877   : > { %6715 = vperm.xlu0 %10651, %v6701_v53   ;;  %v12514_v53 = vld [vmem:[#allocation17_spill] sm:$0xff] }
0x187b   : > { %8281 = vperm.xlu0 %10651, %v8277_v32  }
0x18d0   : > { %v6616_v51 = vpop.xlane.xlu1 %6615 }
0x18d2   : > { %v6613_v31 = vpop.xlane.xlu0 %6612 }
0x18d3   : > { %v6623_v45 = vadd.f32 %v6616_v51, %v6613_v31  ;;  %v6916_v51 = vld [vmem:[#allocation9 + $0x10] sm:$0xff]  ;;  %v6828_v31 = vld [vmem:[#allocation9] sm:$0xff] }
0x18d4   : > { %v6641_v55 = vpop.xlane.xlu1 %6640 }
0x18d6   : > { %v6638_v63 = vpop.xlane.xlu0 %6637 }
0x18d7   : > { %v6648_v54 = vadd.f32 %v6641_v55, %v6638_v63 }
0x18d8   : > { %v6644_v58 = vpop.xlane.xlu1 %6643 }
0x18d9   : > { %v6649_v14 = vadd.f32 %v6648_v54, %v6644_v58 }
0x18da   : > { %v6622_v25 = vpop.xlane.xlu0 %6621 }
0x18dc   : > { %v6678_v7 = vpop.permute.xlu1 %6677 }
0x18de   : > { %v6619_v0 = vpop.xlane.xlu0 %6618 }
0x18df   : > { %v6624_v59 = vadd.f32 %v6623_v45, %v6619_v0 }
0x18e0   : > { %v6706_v37 = vpop.permute.xlu1 %6705 }
0x18e1   : > { %v6625_v46 = vadd.f32 %v6624_v59, %v6622_v25 }
0x18e2   : > { %v6647_v23 = vpop.xlane.xlu0 %6646 }
0x18e3   : > { %v6626_v60 = vrot.slane %v6625_v46, 4  ;;  %v6650_v18 = vadd.f32 %v6649_v14, %v6647_v23  ;;  %v6917_v14 = vld [vmem:[#allocation9 + $0x18] sm:$0xff] }
0x18e4   : > { %v6711_v22 = vpop.permute.xlu1 %6710  ;;  %v10678_v23 = vld [vmem:[#allocation4 + $0xa0] sm:$0x1] }
0x18e5   : > { %v6627_v62 = vadd.f32 %v6626_v60, %v6625_v46  ;;  %v6651_v61 = vrot.slane %v6650_v18, 4  ;;  %v6829_v46 = vld [vmem:[#allocation9 + $0x8] sm:$0xff]  ;;  %v10679_v60 = vld [vmem:[#allocation4 + $0x98] sm:$0xff] }
0x18e7   : > { %v6628_v13 = vrot.slane %v6627_v62, 2  ;;  %v6652_v21 = vadd.f32 %v6651_v61, %v6650_v18  ;;  %v10680_v18 = vld [vmem:[#allocation4 + $0x90] sm:$0xff]  ;;  %v10682_v61 = vld [vmem:[#allocation4 + $0x80] sm:$0xff] }
0x18e8   : > { %v6693_v30 = vpop.permute.xlu1 %6692 }
0x18e9   : > { %v6629_v10 = vadd.f32 %v6628_v13, %v6627_v62  ;;  %v6653_v43 = vrot.slane %v6652_v21, 2  ;;  %v10681_v62 = vld [vmem:[#allocation4 + $0x88] sm:$0xff]  ;;  %v10683_v13 = vld [vmem:[#allocation4 + $0x78] sm:$0xff] }
0x18ea   : > { %v6683_v56 = vpop.permute.xlu0 %6682 }
0x18eb   : > { %v6630_v15 = vrot.slane %v6629_v10, 1  ;;  %v6654_v19 = vadd.f32 %v6653_v43, %v6652_v21  ;;  %v10684_v21 = vld [vmem:[#allocation4 + $0x70] sm:$0xff] }
0x18ed   : > { %v6631_v9 = vadd.f32 %v6630_v15, %v6629_v10  ;;  %v6655_v35 = vrot.slane %v6654_v19, 1  ;;  %v7166_v10 = vld [vmem:[#allocation9 + $0x20] sm:$0xff] }
0x18ee   : > { %v6688_v40 = vpop.permute.xlu0 %6687 }
0x18ef   : > { %v6657_v27 = vmul.f32 0.0006377551, %v6631_v9  ;;  %v6656_v17 = vadd.f32 %v6655_v35, %v6654_v19 }
0x18f1   : > { %v6659_v47 = vmul.f32 %v6657_v27, %v6657_v27  ;;  %v6658_v6 = vmul.f32 0.0006377551, %v6656_v17  ;;  %v6663_v50 = vsub.f32 %v12212_v11, %v6657_v27  ;;  %v6666_v57 = vsub.f32 %v12225_v28, %v6657_v27 }
0x18f2   : > { %v6664_v1 = vsub.f32 %v12210_v42, %v6657_v27  ;;  %v6665_v2 = vsub.f32 %v12222_v16, %v6657_v27  ;;  %v6716_v4 = vpop.permute.xlu0 %6715  ;;  %v6721_v42 = vpop.permute.xlu1 %6720 }
0x18f3   : > { %v6660_v12 = vsub.f32 %v6658_v6, %v6659_v47  ;;  %v7167_v6 = vld [vmem:[#allocation9 + $0x28] sm:$0xff] }
0x18f5   : > { %v6661_v36 = vadd.f32 1e-05, %v6660_v12  ;;  %v10686_v12 = vld [vmem:[#allocation4 + $0xd0] sm:$0xff] }
0x18f7   : > { %10660 = vrsqrt.f32 %v6661_v36  ;;  %v10687_v36 = vld [vmem:[#allocation4 + $0xc8] sm:$0xff] }
0x1904   : > { %v10661_v3 = vpop.eup %10660 }
0x1905   : > { %v6670_v48 = vmul.f32 %v10661_v3, %v6666_v57  ;;  %v6668_v52 = vmul.f32 %v10661_v3, %v6664_v1  ;;  %v6669_v20 = vmul.f32 %v10661_v3, %v6665_v2  ;;  %v6667_v33 = vmul.f32 %v10661_v3, %v6663_v50  ;;  %v7337_v50 = vld [vmem:[#allocation9 + $0x30] sm:$0xff] }
0x1907   : > { %v6696_v39 = vmul.f32 %v6683_v56, %v6668_v52  ;;  %v6697_v34 = vmul.f32 %v6688_v40, %v6669_v20  ;;  %v6695_v38 = vmul.f32 %v6678_v7, %v6667_v33  ;;  %v6698_v24 = vmul.f32 %v6693_v30, %v6670_v48  ;;  %v10685_v7 = vld [vmem:[#allocation4 + $0xd8] sm:$0x1]  ;;  %v10691_v40 = vld [vmem:[#allocation4 + $0xa8] sm:$0xff] }
0x1908   : > { %v10689_v56 = vld [vmem:[#allocation4 + $0xb8] sm:$0xff] }
0x1909   : > { %v6724_v41 = vadd.f32 %v6711_v22, %v6696_v39  ;;  %v6725_v29 = vadd.f32 %v6716_v4, %v6697_v34  ;;  %v6723_v11 = vadd.f32 %v6706_v37, %v6695_v38  ;;  %v6726_v5 = vadd.f32 %v6721_v42, %v6698_v24  ;;  %v10688_v37 = vld [vmem:[#allocation4 + $0xc0] sm:$0xff]  ;;  %v10690_v22 = vld [vmem:[#allocation4 + $0xb0] sm:$0xff]  ;;  %v10693_v24 = vld [vmem:[#allocation4 + $0x108] sm:$0xff] }
0x190a   : > { %v7338_v34 = vld [vmem:[#allocation9 + $0x38] sm:$0xff]  ;;  %v10692_v38 = vld [vmem:[#allocation4 + $0x110] sm:$0x1]  ;;  %v7508_v42 = vld [vmem:[#allocation9 + $0x40] sm:$0xff] }
0x190b   : > { %v12273_v28 = vadd.f32 %v6724_v41, %v12511_v26  ;;  %v12276_v16 = vadd.f32 %v6723_v11, %v12512_v44  ;;  %v12279_v49 = vadd.f32 %v6725_v29, %v12513_v8  ;;  %v12294_v32 = vadd.f32 %v6726_v5, %v12514_v53  ;;  %v10694_v4 = vld [vmem:[#allocation4 + $0x100] sm:$0xff]  ;;  %v10695_v41 = vld [vmem:[#allocation4 + $0xf8] sm:$0xff]  ;;  %v10696_v29 = vld [vmem:[#allocation4 + $0xf0] sm:$0xff] }
0x190c   : > { %v10697_v11 = vld [vmem:[#allocation4 + $0xe8] sm:$0xff]  ;;  %v10698_v26 = vld [vmem:[#allocation4 + $0xe0] sm:$0xff] }
0x190d   : > { %10323 = vmatprep.mubr.msk.f32.mxu0 %vm3106_vm3, %v12276_v16  ;;  %10343 = vmatprep.mubr.msk.f32.mxu1 %vm3106_vm3, %v12276_v16 }
0x190e   : > { %10324 = vmatmul.mubr.msk.f32.vlgmr.msra.gmra.mxu0 %vm3106_vm3, %v12273_v28  ;;  %10344 = vmatmul.mubr.msk.f32.vlgmr.msra.gmra.mxu1 %vm3106_vm3, %v12273_v28 }
0x190f   : > { %10326 = vmatprep.mubr.msk.f32.mxu0 %vm3106_vm3, %v12279_v49  ;;  %10346 = vmatprep.mubr.msk.f32.mxu1 %vm3106_vm3, %v12279_v49 }
0x1912   : > { %10327 = vmatmul.mubr.msk.f32.gmra.mxu0 %vm3106_vm3, %v12294_v32  ;;  %10347 = vmatmul.mubr.msk.f32.gmra.mxu1 %vm3106_vm3, %v12294_v32 }
0x1913   : > { %10357 = vmatprep.mubr.msk.f32.mxu0 %vm1311_vm2, %v6916_v51  ;;  %10368 = vmatprep.mubr.msk.f32.mxu1 %vm1311_vm2, %v6828_v31 }
0x19ce   : > { %v10325_v63 = vpop.f32.mrf.mxu0  ;;  %v10345_v55 = vpop.f32.mrf.mxu1 }
0x19d0   : > { %v6809_v25 = vpop.f32.mrf.mxu0  ;;  %v6896_v45 = vpop.f32.mrf.mxu1 }
0x19d2   : > { %v10328_v54 = vpop.f32.mrf.mxu0  ;;  %v10348_v58 = vpop.f32.mrf.mxu1 }
0x19d3   : > { %10349 = vmatprep.subr.mxu0 %v10348_v58  ;;  %10360 = vmatprep.subr.mxu1 %v10328_v54 }
0x19d4   : > { %v6819_v0 = vpop.f32.mrf.mxu0  ;;  %v6906_v59 = vpop.f32.mrf.mxu1  ;;  %10350 = vmatpush3.msra.mxu0 %v10348_v58  ;;  %10361 = vmatpush3.msra.mxu1 %v10328_v54  ;;  %v10700_v54 = vld [vmem:[#allocation4 + $0x140] sm:$0xff]  ;;  %v10701_v58 = vld [vmem:[#allocation4 + $0x138] sm:$0xff] }
0x19d5   : > { %10351 = vmatprep.subr.mxu0 %v6906_v59  ;;  %10362 = vmatprep.subr.mxu1 %v6819_v0 }
0x19d6   : > { %10352 = vmatpush3.msra.mxu0 %v6906_v59  ;;  %10363 = vmatpush3.msra.mxu1 %v6819_v0  ;;  %v10702_v0 = vld [vmem:[#allocation4 + $0x130] sm:$0xff]  ;;  %v10703_v59 = vld [vmem:[#allocation4 + $0x128] sm:$0xff] }
0x19d7   : > { %10353 = vmatprep.subr.mxu0 %v10345_v55  ;;  %10364 = vmatprep.subr.mxu1 %v10325_v63 }
0x19d8   : > { %10354 = vmatpush3.msra.mxu0 %v10345_v55  ;;  %10365 = vmatpush3.msra.mxu1 %v10325_v63 }
0x19d9   : > { %10355 = vmatprep.subr.mxu0 %v6896_v45  ;;  %10366 = vmatprep.subr.mxu1 %v6809_v25 }
0x19da   : > { %10356 = vmatpush3.msra.mxu0 %v6896_v45  ;;  %10367 = vmatpush3.msra.mxu1 %v6809_v25  ;;  %v7509_v25 = vld [vmem:[#allocation9 + $0x48] sm:$0xff]  ;;  %v10699_v45 = vld [vmem:[#allocation4 + $0x148] sm:$0x1] }
0x19db   : > { %10358 = vmatmul.mubr.msk.f32.vlgmr.msra.gmra.mxu0 %vm1311_vm2, %v6917_v14  ;;  %10371 = vmatprep.subr.msk.mxu0 %vm3243_vm4, %v10678_v23  ;;  %v10704_v14 = vld [vmem:[#allocation4 + $0x120] sm:$0xff] }
0x19dc   : > { %10372 = vmatpush3.msk.msra.mxu0 %vm3243_vm4, %v10678_v23  ;;  %10385 = vmatprep.mubr.msk.f32.mxu0 %vm3106_vm3, %v12276_v16  ;;  %v7679_v23 = vld [vmem:[#allocation9 + $0x50] sm:$0xff] }
0x19dd   : > { %10373 = vmatprep.subr.mxu0 %v10679_v60  ;;  %10369 = vmatmul.mubr.msk.f32.vlgmr.msra.gmra.mxu1 %vm1311_vm2, %v6829_v46  ;;  %v10705_v46 = vld [vmem:[#allocation4 + $0x118] sm:$0xff] }
0x19de   : > { %10374 = vmatpush3.msra.mxu0 %v10679_v60  ;;  %10399 = vmatprep.mubr.msk.f32.mxu1 %vm1311_vm2, %v7166_v10 }
0x19df   : > { %10375 = vmatprep.subr.mxu0 %v10680_v18 }
0x19e0   : > { %10376 = vmatpush3.msra.mxu0 %v10680_v18 }
0x19e1   : > { %10377 = vmatprep.subr.mxu0 %v10681_v62 }
0x19e2   : > { %10378 = vmatpush3.msra.mxu0 %v10681_v62 }
0x19e3   : > { %10379 = vmatprep.subr.mxu0 %v10682_v61 }
0x19e4   : > { %10380 = vmatpush3.msra.mxu0 %v10682_v61 }
0x19e5   : > { %10381 = vmatprep.subr.mxu0 %v10683_v13 }
0x19e6   : > { %10382 = vmatpush3.msra.mxu0 %v10683_v13 }
0x19e7   : > { %10383 = vmatprep.subr.mxu0 %v10684_v21 }
0x19e8   : > { %10384 = vmatpush3.msra.mxu0 %v10684_v21 }
0x19e9   : > { %10386 = vmatmul.mubr.msk.f32.vlgmr.msra.gmra.mxu0 %vm3106_vm3, %v12273_v28 }
0x19ea   : > { %10388 = vmatprep.mubr.msk.f32.mxu0 %vm3106_vm3, %v12279_v49 }
0x19ed   : > { %10389 = vmatmul.mubr.msk.f32.gmra.mxu0 %vm3106_vm3, %v12294_v32 }
0x19ee   : > { %10430 = vmatprep.mubr.msk.f32.mxu0 %vm1311_vm2, %v7337_v50 }
0x1a9b   : > { %v10359_v43 = vpop.f32.mrf.mxu0 }
0x1a9d   : > { %v10370_v15 = vpop.f32.mrf.mxu1  ;;  %v6990_v9 = vpop.f32.mrf.mxu0 }
0x1a9e   : > { %v7077_v19 = vadd.f32 %v10370_v15, %v10359_v43  ;;  %v7680_v15 = vld [vmem:[#allocation9 + $0x58] sm:$0xff] }
0x1a9f   : > { %v7071_v57 = vpop.f32.mrf.mxu1 }
0x1aa0   : > { %v7072_v2 = vadd.f32 %v7071_v57, %v6990_v9  ;;  %v10707_v9 = vld [vmem:[#allocation4 + $0x178] sm:$0xff] }
0x1aa9   : > { %v10387_v35 = vpop.f32.mrf.mxu0 }
0x1aab   : > { %v7146_v27 = vpop.f32.mrf.mxu0 }
0x1aad   : > { %v10390_v17 = vpop.f32.mrf.mxu0 }
0x1aae   : > { %10391 = vmatprep.subr.mxu1 %v10390_v17 }
0x1aaf   : > { %v7156_v47 = vpop.f32.mrf.mxu0  ;;  %10392 = vmatpush3.msra.mxu1 %v10390_v17  ;;  %v10710_v17 = vld [vmem:[#allocation4 + $0x160] sm:$0xff] }
0x1ab0   : > { %10393 = vmatprep.subr.mxu1 %v7156_v47 }
0x1ab1   : > { %10394 = vmatpush3.msra.mxu1 %v7156_v47  ;;  %v10711_v47 = vld [vmem:[#allocation4 + $0x158] sm:$0xff] }
0x1ab2   : > { %10395 = vmatprep.subr.mxu1 %v10387_v35 }
0x1ab3   : > { %10396 = vmatpush3.msra.mxu1 %v10387_v35  ;;  %v10708_v35 = vld [vmem:[#allocation4 + $0x170] sm:$0xff] }
0x1ab4   : > { %10397 = vmatprep.subr.mxu1 %v7146_v27 }
0x1ab5   : > { %10398 = vmatpush3.msra.mxu1 %v7146_v27  ;;  %v10709_v27 = vld [vmem:[#allocation4 + $0x168] sm:$0xff] }
0x1ab6   : > { %10400 = vmatmul.mubr.msk.f32.vlgmr.msra.gmra.mxu1 %vm1311_vm2, %v7167_v6  ;;  %10402 = vmatprep.subr.msk.mxu1 %vm3243_vm4, %v10685_v7  ;;  %v10712_v6 = vld [vmem:[#allocation4 + $0x150] sm:$0xff] }
0x1ab7   : > { %10403 = vmatpush3.msk.msra.mxu1 %vm3243_vm4, %v10685_v7  ;;  %10416 = vmatprep.mubr.msk.f32.mxu1 %vm3106_vm3, %v12276_v16  ;;  %v7850_v7 = vld [vmem:[#allocation9 + $0x60] sm:$0xff] }
0x1ab8   : > { %10404 = vmatprep.subr.mxu1 %v10686_v12 }
0x1ab9   : > { %10405 = vmatpush3.msra.mxu1 %v10686_v12 }
0x1aba   : > { %10406 = vmatprep.subr.mxu1 %v10687_v36 }
0x1abb   : > { %10407 = vmatpush3.msra.mxu1 %v10687_v36 }
0x1abc   : > { %10408 = vmatprep.subr.mxu1 %v10688_v37 }
0x1abd   : > { %10409 = vmatpush3.msra.mxu1 %v10688_v37 }
0x1abe   : > { %10410 = vmatprep.subr.mxu1 %v10689_v56 }
0x1abf   : > { %10411 = vmatpush3.msra.mxu1 %v10689_v56 }
0x1ac0   : > { %10412 = vmatprep.subr.mxu1 %v10690_v22 }
0x1ac1   : > { %10413 = vmatpush3.msra.mxu1 %v10690_v22 }
0x1ac2   : > { %10414 = vmatprep.subr.mxu1 %v10691_v40 }
0x1ac3   : > { %10415 = vmatpush3.msra.mxu1 %v10691_v40 }
0x1ac4   : > { %10417 = vmatmul.mubr.msk.f32.vlgmr.msra.gmra.mxu1 %vm3106_vm3, %v12273_v28 }
0x1ac5   : > { %10419 = vmatprep.mubr.msk.f32.mxu1 %vm3106_vm3, %v12279_v49 }
0x1ac8   : > { %10420 = vmatmul.mubr.msk.f32.gmra.mxu1 %vm3106_vm3, %v12294_v32 }
0x1ac9   : > { %10461 = vmatprep.mubr.msk.f32.mxu1 %vm1311_vm2, %v7508_v42  ;;  %v8022_v42 = vld [vmem:[#allocation9 + $0x78] sm:$0xff] }
0x1b76   : > { %v10401_v1 = vpop.f32.mrf.mxu1 }
0x1b77   : > { %v7250_v3 = vadd.f32 %v10401_v1, %v7077_v19  ;;  %v10706_v19 = vld [vmem:[#allocation4 + $0x180] sm:$0x1]  ;;  %v7851_v1 = vld [vmem:[#allocation9 + $0x68] sm:$0xff] }
0x1b78   : > { %v7240_v30 = vpop.f32.mrf.mxu1 }
0x1b79   : > { %v7249_v48 = vadd.f32 %v7240_v30, %v7072_v2  ;;  %v10713_v2 = vld [vmem:[#allocation4 + $0x1b8] sm:$0x1]  ;;  %v10715_v30 = vld [vmem:[#allocation4 + $0x1a8] sm:$0xff] }
0x1b84   : > { %v10418_v52 = vpop.f32.mrf.mxu1 }
0x1b86   : > { %v7317_v20 = vpop.f32.mrf.mxu1 }
0x1b88   : > { %v10421_v33 = vpop.f32.mrf.mxu1 }
0x1b89   : > { %10422 = vmatprep.subr.mxu0 %v10421_v33 }
0x1b8a   : > { %v7327_v39 = vpop.f32.mrf.mxu1  ;;  %10423 = vmatpush3.msra.mxu0 %v10421_v33  ;;  %v10719_v33 = vld [vmem:[#allocation4 + $0x188] sm:$0xff] }
0x1b8b   : > { %10424 = vmatprep.subr.mxu0 %v7327_v39 }
0x1b8c   : > { %10425 = vmatpush3.msra.mxu0 %v7327_v39  ;;  %v8021_v39 = vld [vmem:[#allocation9 + $0x70] sm:$0xff] }
0x1b8d   : > { %10426 = vmatprep.subr.mxu0 %v10418_v52 }
0x1b8e   : > { %10427 = vmatpush3.msra.mxu0 %v10418_v52  ;;  %v10717_v52 = vld [vmem:[#allocation4 + $0x198] sm:$0xff] }
0x1b8f   : > { %10428 = vmatprep.subr.mxu0 %v7317_v20 }
0x1b90   : > { %10429 = vmatpush3.msra.mxu0 %v7317_v20  ;;  %v10718_v20 = vld [vmem:[#allocation4 + $0x190] sm:$0xff] }
0x1b91   : > { %10431 = vmatmul.mubr.msk.f32.vlgmr.msra.gmra.mxu0 %vm1311_vm2, %v7338_v34  ;;  %10433 = vmatprep.subr.msk.mxu0 %vm3243_vm4, %v10692_v38 }
0x1b92   : > { %10434 = vmatpush3.msk.msra.mxu0 %vm3243_vm4, %v10692_v38  ;;  %10447 = vmatprep.mubr.msk.f32.mxu0 %vm3106_vm3, %v12276_v16 }
0x1b93   : > { %10435 = vmatprep.subr.mxu0 %v10693_v24 }
0x1b94   : > { %10436 = vmatpush3.msra.mxu0 %v10693_v24 }
0x1b95   : > { %10437 = vmatprep.subr.mxu0 %v10694_v4 }
0x1b96   : > { %10438 = vmatpush3.msra.mxu0 %v10694_v4 }
0x1b97   : > { %10439 = vmatprep.subr.mxu0 %v10695_v41 }
0x1b98   : > { %10440 = vmatpush3.msra.mxu0 %v10695_v41 }
0x1b99   : > { %10441 = vmatprep.subr.mxu0 %v10696_v29 }
0x1b9a   : > { %10442 = vmatpush3.msra.mxu0 %v10696_v29 }
0x1b9b   : > { %10443 = vmatprep.subr.mxu0 %v10697_v11 }
0x1b9c   : > { %10444 = vmatpush3.msra.mxu0 %v10697_v11 }
0x1b9d   : > { %10445 = vmatprep.subr.mxu0 %v10698_v26 }
0x1b9e   : > { %10446 = vmatpush3.msra.mxu0 %v10698_v26 }
0x1b9f   : > { %10448 = vmatmul.mubr.msk.f32.vlgmr.msra.gmra.mxu0 %vm3106_vm3, %v12273_v28 }
0x1ba0   : > { %10450 = vmatprep.mubr.msk.f32.mxu0 %vm3106_vm3, %v12279_v49 }
0x1ba3   : > { %10451 = vmatmul.mubr.msk.f32.gmra.mxu0 %vm3106_vm3, %v12294_v32 }
0x1ba4   : > { %10492 = vmatprep.mubr.msk.f32.mxu0 %vm1311_vm2, %v7679_v23 }
0x1c51   : > { %v10432_v44 = vpop.f32.mrf.mxu0 }
0x1c52   : > { %v7421_v5 = vadd.f32 %v10432_v44, %v7250_v3  ;;  %v10714_v3 = vld [vmem:[#allocation4 + $0x1b0] sm:$0xff] }
0x1c53   : > { %v7411_v8 = vpop.f32.mrf.mxu0  ;;  %v10720_v44 = vld [vmem:[#allocation4 + $0x1f0] sm:$0x1] }
0x1c54   : > { %v7420_v53 = vadd.f32 %v7411_v8, %v7249_v48  ;;  %v10716_v48 = vld [vmem:[#allocation4 + $0x1a0] sm:$0xff] }
0x1c55   : > { %v10722_v8 = vld [vmem:[#allocation4 + $0x1e0] sm:$0xff] }
0x1c5f   : > { %v10449_v51 = vpop.f32.mrf.mxu0 }
0x1c61   : > { %v7488_v31 = vpop.f32.mrf.mxu0 }
0x1c63   : > { %v10452_v63 = vpop.f32.mrf.mxu0 }
0x1c64   : > { %10453 = vmatprep.subr.mxu1 %v10452_v63 }
0x1c65   : > { %v7498_v55 = vpop.f32.mrf.mxu0  ;;  %10454 = vmatpush3.msra.mxu1 %v10452_v63  ;;  %v10726_v63 = vld [vmem:[#allocation4 + $0x1c0] sm:$0xff] }
0x1c66   : > { %10455 = vmatprep.subr.mxu1 %v7498_v55 }
0x1c67   : > { %10456 = vmatpush3.msra.mxu1 %v7498_v55 }
0x1c68   : > { %10457 = vmatprep.subr.mxu1 %v10449_v51 }
0x1c69   : > { %10458 = vmatpush3.msra.mxu1 %v10449_v51  ;;  %v10724_v51 = vld [vmem:[#allocation4 + $0x1d0] sm:$0xff] }
0x1c6a   : > { %10459 = vmatprep.subr.mxu1 %v7488_v31 }
0x1c6b   : > { %10460 = vmatpush3.msra.mxu1 %v7488_v31  ;;  %v10725_v31 = vld [vmem:[#allocation4 + $0x1c8] sm:$0xff] }
0x1c6c   : > { %10462 = vmatmul.mubr.msk.f32.vlgmr.msra.gmra.mxu1 %vm1311_vm2, %v7509_v25  ;;  %10464 = vmatprep.subr.msk.mxu1 %vm3243_vm4, %v10699_v45 }
0x1c6d   : > { %10465 = vmatpush3.msk.msra.mxu1 %vm3243_vm4, %v10699_v45  ;;  %10478 = vmatprep.mubr.msk.f32.mxu1 %vm3106_vm3, %v12276_v16 }
0x1c6e   : > { %10466 = vmatprep.subr.mxu1 %v10700_v54 }
0x1c6f   : > { %10467 = vmatpush3.msra.mxu1 %v10700_v54 }
0x1c70   : > { %10468 = vmatprep.subr.mxu1 %v10701_v58 }
0x1c71   : > { %10469 = vmatpush3.msra.mxu1 %v10701_v58 }
0x1c72   : > { %10470 = vmatprep.subr.mxu1 %v10702_v0 }
0x1c73   : > { %10471 = vmatpush3.msra.mxu1 %v10702_v0 }
0x1c74   : > { %10472 = vmatprep.subr.mxu1 %v10703_v59 }
0x1c75   : > { %10473 = vmatpush3.msra.mxu1 %v10703_v59 }
0x1c76   : > { %10474 = vmatprep.subr.mxu1 %v10704_v14 }
0x1c77   : > { %10475 = vmatpush3.msra.mxu1 %v10704_v14 }
0x1c78   : > { %10476 = vmatprep.subr.mxu1 %v10705_v46 }
0x1c79   : > { %10477 = vmatpush3.msra.mxu1 %v10705_v46  ;;  %v8287_v46 = vpop.permute.xlu1 %8286 }
0x1c7a   : > { %10479 = vmatmul.mubr.msk.f32.vlgmr.msra.gmra.mxu1 %vm3106_vm3, %v12273_v28 }
0x1c7b   : > { %10481 = vmatprep.mubr.msk.f32.mxu1 %vm3106_vm3, %v12279_v49 }
0x1c7e   : > { %10482 = vmatmul.mubr.msk.f32.gmra.mxu1 %vm3106_vm3, %v12294_v32 }
0x1c7f   : > { %10523 = vmatprep.mubr.msk.f32.mxu1 %vm1311_vm2, %v7850_v7 }
0x1d2c   : > { %v10463_v60 = vpop.f32.mrf.mxu1 }
0x1d2d   : > { %v7592_v18 = vadd.f32 %v10463_v60, %v7421_v5  ;;  %v10721_v5 = vld [vmem:[#allocation4 + $0x1e8] sm:$0xff] }
0x1d2e   : > { %v7582_v62 = vpop.f32.mrf.mxu1 }
0x1d2f   : > { %v7591_v61 = vadd.f32 %v7582_v62, %v7420_v53  ;;  %v10723_v53 = vld [vmem:[#allocation4 + $0x1d8] sm:$0xff]  ;;  %v8282_v62 = vpop.permute.xlu0 %8281 }
0x1d3a   : > { %v10480_v13 = vpop.f32.mrf.mxu1 }
0x1d3c   : > { %v7659_v21 = vpop.f32.mrf.mxu1 }
0x1d3e   : > { %v10483_v10 = vpop.f32.mrf.mxu1 }
0x1d3f   : > { %10484 = vmatprep.subr.mxu0 %v10483_v10 }
0x1d40   : > { %v7669_v43 = vpop.f32.mrf.mxu1  ;;  %10485 = vmatpush3.msra.mxu0 %v10483_v10 }
0x1d41   : > { %10486 = vmatprep.subr.mxu0 %v7669_v43 }
0x1d42   : > { %10487 = vmatpush3.msra.mxu0 %v7669_v43 }
0x1d43   : > { %10488 = vmatprep.subr.mxu0 %v10480_v13 }
0x1d44   : > { %10489 = vmatpush3.msra.mxu0 %v10480_v13 }
0x1d45   : > { %10490 = vmatprep.subr.mxu0 %v7659_v21 }
0x1d46   : > { %10491 = vmatpush3.msra.mxu0 %v7659_v21 }
0x1d47   : > { %10493 = vmatmul.mubr.msk.f32.vlgmr.msra.gmra.mxu0 %vm1311_vm2, %v7680_v15  ;;  %10495 = vmatprep.subr.msk.mxu0 %vm3243_vm4, %v10706_v19 }
0x1d48   : > { %10496 = vmatpush3.msk.msra.mxu0 %vm3243_vm4, %v10706_v19  ;;  %10509 = vmatprep.mubr.msk.f32.mxu0 %vm3106_vm3, %v12276_v16 }
0x1d49   : > { %10497 = vmatprep.subr.mxu0 %v10707_v9 }
0x1d4a   : > { %10498 = vmatpush3.msra.mxu0 %v10707_v9 }
0x1d4b   : > { %10499 = vmatprep.subr.mxu0 %v10708_v35 }
0x1d4c   : > { %10500 = vmatpush3.msra.mxu0 %v10708_v35 }
0x1d4d   : > { %10501 = vmatprep.subr.mxu0 %v10709_v27 }
0x1d4e   : > { %10502 = vmatpush3.msra.mxu0 %v10709_v27  ;;  %v8331_v27 = vld [vmem:[%s12434_s21] sm:$0xff] }
0x1d4f   : > { %10503 = vmatprep.subr.mxu0 %v10710_v17 }
0x1d50   : > { %10504 = vmatpush3.msra.mxu0 %v10710_v17  ;;  %v8345_v17 = vld [vmem:[%s12435_s22] sm:$0xff] }
0x1d51   : > { %10505 = vmatprep.subr.mxu0 %v10711_v47 }
0x1d52   : > { %10506 = vmatpush3.msra.mxu0 %v10711_v47  ;;  %v8346_v47 = vld [vmem:[%s12435_s22 + $0x8] sm:$0xff] }
0x1d53   : > { %10507 = vmatprep.subr.mxu0 %v10712_v6 }
0x1d54   : > { %10508 = vmatpush3.msra.mxu0 %v10712_v6  ;;  %v8332_v6 = vld [vmem:[%s12434_s21 + $0x8] sm:$0xff] }
0x1d55   : > { %10510 = vmatmul.mubr.msk.f32.vlgmr.msra.gmra.mxu0 %vm3106_vm3, %v12273_v28 }
0x1d56   : > { %10512 = vmatprep.mubr.msk.f32.mxu0 %vm3106_vm3, %v12279_v49 }
0x1d59   : > { %10513 = vmatmul.mubr.msk.f32.gmra.mxu0 %vm3106_vm3, %v12294_v32 }
0x1d5a   : > { %10554 = vmatprep.mubr.msk.f32.mxu0 %vm1311_vm2, %v8021_v39 }
0x1e07   : > { %v10494_v12 = vpop.f32.mrf.mxu0 }
0x1e08   : > { %v7763_v36 = vadd.f32 %v10494_v12, %v7592_v18 }
0x1e09   : > { %v7753_v37 = vpop.f32.mrf.mxu0 }
0x1e0a   : > { %v7762_v56 = vadd.f32 %v7753_v37, %v7591_v61 }
0x1e15   : > { %v10511_v22 = vpop.f32.mrf.mxu0 }
0x1e17   : > { %v7830_v40 = vpop.f32.mrf.mxu0 }
0x1e19   : > { %v10514_v50 = vpop.f32.mrf.mxu0 }
0x1e1a   : > { %10515 = vmatprep.subr.mxu1 %v10514_v50 }
0x1e1b   : > { %v7840_v57 = vpop.f32.mrf.mxu0  ;;  %10516 = vmatpush3.msra.mxu1 %v10514_v50 }
0x1e1c   : > { %10517 = vmatprep.subr.mxu1 %v7840_v57 }
0x1e1d   : > { %10518 = vmatpush3.msra.mxu1 %v7840_v57 }
0x1e1e   : > { %10519 = vmatprep.subr.mxu1 %v10511_v22 }
0x1e1f   : > { %10520 = vmatpush3.msra.mxu1 %v10511_v22 }
0x1e20   : > { %10521 = vmatprep.subr.mxu1 %v7830_v40 }
0x1e21   : > { %10522 = vmatpush3.msra.mxu1 %v7830_v40 }
0x1e22   : > { %10524 = vmatmul.mubr.msk.f32.vlgmr.msra.gmra.mxu1 %vm1311_vm2, %v7851_v1  ;;  %10526 = vmatprep.subr.msk.mxu1 %vm3243_vm4, %v10713_v2 }
0x1e23   : > { %10527 = vmatpush3.msk.msra.mxu1 %vm3243_vm4, %v10713_v2  ;;  %10540 = vmatprep.mubr.msk.f32.mxu1 %vm3106_vm3, %v12276_v16 }
0x1e24   : > { %10528 = vmatprep.subr.mxu1 %v10714_v3 }
0x1e25   : > { %10529 = vmatpush3.msra.mxu1 %v10714_v3 }
0x1e26   : > { %10530 = vmatprep.subr.mxu1 %v10715_v30 }
0x1e27   : > { %10531 = vmatpush3.msra.mxu1 %v10715_v30 }
0x1e28   : > { %10532 = vmatprep.subr.mxu1 %v10716_v48 }
0x1e29   : > { %10533 = vmatpush3.msra.mxu1 %v10716_v48 }
0x1e2a   : > { %10534 = vmatprep.subr.mxu1 %v10717_v52 }
0x1e2b   : > { %10535 = vmatpush3.msra.mxu1 %v10717_v52 }
0x1e2c   : > { %10536 = vmatprep.subr.mxu1 %v10718_v20 }
0x1e2d   : > { %10537 = vmatpush3.msra.mxu1 %v10718_v20 }
0x1e2e   : > { %10538 = vmatprep.subr.mxu1 %v10719_v33 }
0x1e2f   : > { %10539 = vmatpush3.msra.mxu1 %v10719_v33 }
0x1e30   : > { %10541 = vmatmul.mubr.msk.f32.vlgmr.msra.gmra.mxu1 %vm3106_vm3, %v12273_v28 }
0x1e31   : > { %10543 = vmatprep.mubr.msk.f32.mxu1 %vm3106_vm3, %v12279_v49 }
0x1e34   : > { %10544 = vmatmul.mubr.msk.f32.gmra.mxu1 %vm3106_vm3, %v12294_v32 }
0x1ee2   : > { %v10525_v34 = vpop.f32.mrf.mxu1 }
0x1ee3   : > { %v7934_v38 = vadd.f32 %v10525_v34, %v7763_v36 }
0x1ee4   : > { %v7924_v24 = vpop.f32.mrf.mxu1 }
0x1ee5   : > { %v7933_v4 = vadd.f32 %v7924_v24, %v7762_v56 }
0x1ef0   : > { %v10542_v41 = vpop.f32.mrf.mxu1 }
0x1ef2   : > { %v8001_v29 = vpop.f32.mrf.mxu1 }
0x1ef4   : > { %v10545_v11 = vpop.f32.mrf.mxu1 }
0x1ef5   : > { %10546 = vmatprep.subr.mxu0 %v10545_v11 }
0x1ef6   : > { %v8011_v26 = vpop.f32.mrf.mxu1  ;;  %10547 = vmatpush3.msra.mxu0 %v10545_v11 }
0x1ef7   : > { %10548 = vmatprep.subr.mxu0 %v8011_v26 }
0x1ef8   : > { %10549 = vmatpush3.msra.mxu0 %v8011_v26 }
0x1ef9   : > { %10550 = vmatprep.subr.mxu0 %v10542_v41 }
0x1efa   : > { %10551 = vmatpush3.msra.mxu0 %v10542_v41 }
0x1efb   : > { %10552 = vmatprep.subr.mxu0 %v8001_v29 }
0x1efc   : > { %10553 = vmatpush3.msra.mxu0 %v8001_v29 }
0x1efd   : > { %10555 = vmatmul.mubr.msk.f32.vlgmr.msra.gmra.mxu0 %vm1311_vm2, %v8022_v42  ;;  %10557 = vmatprep.subr.msk.mxu0 %vm3243_vm4, %v10720_v44 }
0x1efe   : > { %10558 = vmatpush3.msk.msra.mxu0 %vm3243_vm4, %v10720_v44  ;;  %10571 = vmatprep.mubr.msk.f32.mxu0 %vm3106_vm3, %v12276_v16  ;;  %v8192_v16 = vld [vmem:[#allocation9 + $0x80] sm:$0xff] }
0x1eff   : > { %10559 = vmatprep.subr.mxu0 %v10721_v5  ;;  %10585 = vmatprep.mubr.msk.f32.mxu1 %vm1311_vm2, %v8192_v16 }
0x1f00   : > { %10560 = vmatpush3.msra.mxu0 %v10721_v5 }
0x1f01   : > { %10561 = vmatprep.subr.mxu0 %v10722_v8 }
0x1f02   : > { %10562 = vmatpush3.msra.mxu0 %v10722_v8 }
0x1f03   : > { %10563 = vmatprep.subr.mxu0 %v10723_v53 }
0x1f04   : > { %10564 = vmatpush3.msra.mxu0 %v10723_v53 }
0x1f05   : > { %10565 = vmatprep.subr.mxu0 %v10724_v51 }
0x1f06   : > { %10566 = vmatpush3.msra.mxu0 %v10724_v51 }
0x1f07   : > { %10567 = vmatprep.subr.mxu0 %v10725_v31 }
0x1f08   : > { %10568 = vmatpush3.msra.mxu0 %v10725_v31 }
0x1f09   : > { %10569 = vmatprep.subr.mxu0 %v10726_v63 }
0x1f0a   : > { %10570 = vmatpush3.msra.mxu0 %v10726_v63 }
0x1f0b   : > { %10572 = vmatmul.mubr.msk.f32.vlgmr.msra.gmra.mxu0 %vm3106_vm3, %v12273_v28  ;;  %v8193_v28 = vld [vmem:[#allocation9 + $0x88] sm:$0xff] }
0x1f0c   : > { %10574 = vmatprep.mubr.msk.f32.mxu0 %vm3106_vm3, %v12279_v49 }
0x1f0f   : > { %10575 = vmatmul.mubr.msk.f32.gmra.mxu0 %vm3106_vm3, %v12294_v32 }
0x1fbd   : > { %v10556_v55 = vpop.f32.mrf.mxu0 }
0x1fbe   : > { %v8105_v25 = vadd.f32 %v10556_v55, %v7934_v38 }
0x1fbf   : > { %v8095_v45 = vpop.f32.mrf.mxu0 }
0x1fc0   : > { %v8104_v54 = vadd.f32 %v8095_v45, %v7933_v4 }
0x1fcb   : > { %v10573_v58 = vpop.f32.mrf.mxu0 }
0x1fcd   : > { %v8172_v0 = vpop.f32.mrf.mxu0 }
0x1fcf   : > { %v10576_v59 = vpop.f32.mrf.mxu0 }
0x1fd0   : > { %10577 = vmatprep.subr.mxu1 %v10576_v59 }
0x1fd1   : > { %v8182_v14 = vpop.f32.mrf.mxu0  ;;  %10578 = vmatpush3.msra.mxu1 %v10576_v59 }
0x1fd2   : > { %10579 = vmatprep.subr.mxu1 %v8182_v14 }
0x1fd3   : > { %10580 = vmatpush3.msra.mxu1 %v8182_v14 }
0x1fd4   : > { %10581 = vmatprep.subr.mxu1 %v10573_v58 }
0x1fd5   : > { %10582 = vmatpush3.msra.mxu1 %v10573_v58 }
0x1fd6   : > { %10583 = vmatprep.subr.mxu1 %v8172_v0 }
0x1fd7   : > { %10584 = vmatpush3.msra.mxu1 %v8172_v0 }
0x1fd8   : > { %10586 = vmatmul.mubr.msk.f32.vlgmr.msra.gmra.mxu1 %vm1311_vm2, %v8193_v28 }
0x2098   : > { %v10587_v49 = vpop.f32.mrf.mxu1 }
0x2099   : > { %v8276_v32 = vadd.f32 %v10587_v49, %v8105_v25 }
0x209a   : > { %v8266_v23 = vpop.f32.mrf.mxu1 }
0x209b   : > { %v8290_v60 = vadd.f32 %v8287_v46, %v8276_v32  ;;  %v8275_v18 = vadd.f32 %v8266_v23, %v8104_v54 }
0x209d   : > { %v8292_v61 = vmax.f32 %v8290_v60, 0.0  ;;  %v8289_v13 = vadd.f32 %v8282_v62, %v8275_v18 }
0x209f   : > { %v8291_v21 = vmax.f32 %v8289_v13, 0.0  ;;  %v8296_v10 = vsel %vm3106_vm3, %v8292_v61, 0.0  ;;  %v8307_v9 = vmul.f32 %v8292_v61, %v8292_v61 }
0x20a0   : > { %8297 = vadd.xlane.f32.xlu1 %v8296_v10 }
0x20a1   : > { %v8293_v43 = vsel %vm3106_vm3, %v8291_v21, 0.0  ;;  %v8306_v15 = vmul.f32 %v8291_v21, %v8291_v21  ;;  %v8311_v35 = vsel %vm3106_vm3, %v8307_v9, 0.0 }
0x20a2   : > { %8294 = vadd.xlane.f32.xlu0 %v8293_v43 }
0x20a3   : > { %v8308_v19 = vsel %vm3106_vm3, %v8306_v15, 0.0 }
0x20a6   : > { %8309 = vadd.xlane.f32.xlu0 %v8308_v19 }
0x20aa   : > { %8312 = vadd.xlane.f32.xlu0 %v8311_v35 }
0x20b1   : > { %8335 = vperm.xlu1 %10652, %v8331_v27  }
0x20b5   : > { %8349 = vperm.xlu1 %10652, %v8345_v17  }
0x20b9   : > { %8354 = vperm.xlu1 %10652, %v8346_v47  }
0x20c0   : > { %8340 = vperm.xlu0 %10651, %v8332_v6  }
0x2129   : > { %v8298_v7 = vpop.xlane.xlu1 %8297 }
0x212b   : > { %v8295_v12 = vpop.xlane.xlu0 %8294 }
0x212c   : > { %v8299_v36 = vadd.f32 %v8298_v7, %v8295_v12 }
0x212d   : > { %v8336_v29 = vpop.permute.xlu1 %8335 }
0x212e   : > { %v8300_v37 = vrot.slane %v8299_v36, 4 }
0x212f   : > { %v8310_v56 = vpop.xlane.xlu0 %8309 }
0x2130   : > { %v8301_v22 = vadd.f32 %v8300_v37, %v8299_v36 }
0x2131   : > { %v8350_v11 = vpop.permute.xlu1 %8349 }
0x2132   : > { %v8302_v40 = vrot.slane %v8301_v22, 2 }
0x2133   : > { %v8313_v50 = vpop.xlane.xlu0 %8312 }
0x2134   : > { %v8303_v57 = vadd.f32 %v8302_v40, %v8301_v22  ;;  %v8314_v1 = vadd.f32 %v8313_v50, %v8310_v56 }
0x2135   : > { %v8355_v63 = vpop.permute.xlu1 %8354 }
0x2136   : > { %v8304_v2 = vrot.slane %v8303_v57, 1  ;;  %v8315_v3 = vrot.slane %v8314_v1, 4 }
0x2138   : > { %v8316_v30 = vadd.f32 %v8315_v3, %v8314_v1  ;;  %v8305_v48 = vadd.f32 %v8304_v2, %v8303_v57 }
0x213a   : > { %v8317_v52 = vrot.slane %v8316_v30, 2  ;;  %v8321_v33 = vmul.f32 0.0012755102, %v8305_v48 }
0x213b   : > { %v8341_v53 = vpop.permute.xlu0 %8340 }
0x213c   : > { %v8318_v20 = vadd.f32 %v8317_v52, %v8316_v30  ;;  %v8323_v38 = vmul.f32 %v8321_v33, %v8321_v33  ;;  %v8327_v26 = vsub.f32 %v8291_v21, %v8321_v33  ;;  %v8328_v42 = vsub.f32 %v8292_v61, %v8321_v33 }
0x213e   : > { %v8319_v39 = vrot.slane %v8318_v20, 1 }
0x2140   : > { %v8320_v34 = vadd.f32 %v8319_v39, %v8318_v20 }
0x2142   : > { %v8322_v24 = vmul.f32 0.0012755102, %v8320_v34 }
0x2144   : > { %v8324_v4 = vsub.f32 %v8322_v24, %v8323_v38 }
0x2146   : > { %v8325_v41 = vadd.f32 1e-05, %v8324_v4 }
0x2148   : > { %10662 = vrsqrt.f32 %v8325_v41 }
0x2155   : > { %v10663_v44 = vpop.eup %10662 }
0x2156   : > { %v8329_v5 = vmul.f32 %v10663_v44, %v8327_v26  ;;  %v8330_v8 = vmul.f32 %v10663_v44, %v8328_v42 }
0x2158   : > { %v8343_v51 = vmul.f32 %v8336_v29, %v8329_v5  ;;  %v8344_v31 = vmul.f32 %v8341_v53, %v8330_v8 }
0x215a   : > { %v8357_v16 = vadd.f32 %v8350_v11, %v8343_v51  ;;  %v8358_v55 = vadd.f32 %v8355_v63, %v8344_v31 }
0x215c   : > { %8359 = vst.msk [vmem:[%s783_s29] sm:$0xff] %vm3106_vm3, %v8357_v16  ;;  %8360 = vst.msk [vmem:[%s783_s29 + $0x8] sm:$0xff] %vm3106_vm3, %v8358_v55 }
0x215d PF: > { %s12515_s0 = sld [smem:[#allocation13_spill]] }
0x2163   : > { %s36_s4 = sadd.s32 1, %s12515_s0  }
0x2164   : > { %p33_p2 = scmp.ge.s32.totalorder %s36_s4, 4  }
0x2166   :  { %35 = sbr.rel (!%p33_p2) target bundleno = 12 (0xc), region = 211 }
0x216b   :  { %8382 = vsyncpa [#allocation3], 1 }
0x216c   :  { %8384 = vsyncpa [#allocation3 + $0x1], 1 }
0x216d   :  { %8385 = vsyncpa [#allocation5], 1 }
0x216e   :  { %8386 = vsyncpa [#allocation8], 1 }

</bundles_post_ra>
